<compile_context>
chip_gen: v5e
topology: v5e:2x2
jax: 0.10.0
libtpu: 0.0.40
codegen_flags: <defaults>
</compile_context>

<pallas_src>
import math

import jax
import jax.numpy as jnp
import numpy as np
from jax import lax
from jax.experimental import pallas as pl
from jax.experimental.pallas import tpu as pltpu

# ----- toy config (real model: n_embd=1024, n_head=24, n_layer=24, block=128) -----
VOCAB_SIZE = 256          # multiple of 128 -> lane-dense lm_head output
N_EMBD = 128              # multiple of 128 -> lane-dense activations
N_HEAD = 4
HEAD_SIZE = N_EMBD // N_HEAD
N_LAYER = 2
BLOCK_SIZE = 16           # max sequence length (T)
N_SPECIAL = 4             # '<PAD>','<UNK>','<BOS>','<EOS>' rows zeroed in embedding
LN_EPS = 1e-5
NEG_INF = -1e30
VOCAB_TILE = 128          # lm_head vocab-axis tile (lane-dense)


def _layernorm(x, g, b):
    mu = jnp.mean(x, axis=-1, keepdims=True)
    xc = x - mu
    var = jnp.mean(xc * xc, axis=-1, keepdims=True)
    return xc * jax.lax.rsqrt(var + LN_EPS) * g + b


# ------------------------- kernel 1: transformer blocks + final LN -------------------
def blocks_kernel(x0_ref, cos_ref, sin_ref, mask_ref,
                  ln1g_ref, ln1b_ref, wqkv_ref, wo_ref, bo_ref,
                  ln2g_ref, ln2b_ref, w1_ref, b1_ref, w2_ref, b2_ref,
                  lnfg_ref, lnfb_ref,
                  hid_ref, x_vmem):
    C = N_EMBD
    hs = HEAD_SIZE
    half = hs // 2
    layer = pl.program_id(1)
    T = mask_ref.shape[0]
    n_seq = x_vmem.shape[0] // T            # sequences in this batch tile

    @pl.when(layer == 0)
    def _():                                 # load embeddings into resident scratch
        x_vmem[...] = x0_ref[...]

    x = x_vmem[...]                          # (rows_tile, C) f32 resident activations
    mask = mask_ref[...]                     # (T, T) additive causal mask
    cos = cos_ref[...]                       # (T, C) RoPE tables (per sequence)
    sin = sin_ref[...]

    # ---- attention: ONE fused (rows,C)@(C,3C) qkv projection (bf16 in, f32 acc) ----
    h = _layernorm(x, ln1g_ref[0], ln1b_ref[0])
    qkv = jnp.dot(h.astype(jnp.bfloat16), wqkv_ref[0],
                  preferred_element_type=jnp.float32)          # (rows, 3C)
    q = qkv[:, :C]
    k = qkv[:, C:2 * C]
    v = qkv[:, 2 * C:]

    # Per-sequence RoPE + per-head scores/softmax on tiny (T,T) tiles.
    # All head outputs stay in vregs; no masked partial stores to VMEM scratch.
    attn_rows = []
    for s_i in range(n_seq):
        r0 = s_i * T
        q_s = q[r0:r0 + T, :]                # (T, C)
        k_s = k[r0:r0 + T, :]
        # RoPE: grouped evens-first column layout baked into wq/wk; rotate-half
        # via a full-lane-width pltpu.roll (XLU slot).  1/sqrt(hs) folded into wq.
        q_s = q_s * cos + pltpu.roll(q_s, C // 2, 1) * sin
        k_s = k_s * cos + pltpu.roll(k_s, C // 2, 1) * sin

        head_outs = []
        for hi in range(N_HEAD):
            c1 = hi * half                   # this head's "even" half columns
            c2 = C // 2 + hi * half          # this head's "odd" half columns
            qh = jnp.concatenate([q_s[:, c1:c1 + half], q_s[:, c2:c2 + half]], axis=1)
            kh = jnp.concatenate([k_s[:, c1:c1 + half], k_s[:, c2:c2 + half]], axis=1)
            # single MXU push per head: contract dim 1 of both (no explicit k.T)
            s = lax.dot_general(qh, kh, (((1,), (1,)), ((), ())),
                                preferred_element_type=jnp.float32) + mask
            m = jnp.max(s, axis=-1, keepdims=True)
            p = jnp.exp(s - m)
            p = p * pl.reciprocal(jnp.sum(p, axis=-1, keepdims=True))  # exact EUP rcp
            vh = v[r0:r0 + T, hi * hs:(hi + 1) * hs]
            head_outs.append(jnp.dot(p, vh, preferred_element_type=jnp.float32))
        attn_rows.append(jnp.concatenate(head_outs, axis=1))    # (T, C) in vregs

    attn = attn_rows[0] if n_seq == 1 else jnp.concatenate(attn_rows, axis=0)

    # ONE fused (rows,C)@(C,C) output projection straight from vregs
    attn = jnp.dot(attn.astype(jnp.bfloat16), wo_ref[0],
                   preferred_element_type=jnp.float32) + bo_ref[0]
    x = x + attn

    # ---- feed-forward (fused (C,4C)/(4C,C) matmuls) ----
    h2 = _layernorm(x, ln2g_ref[0], ln2b_ref[0])
    f = jnp.dot(h2.astype(jnp.bfloat16), w1_ref[0],
                preferred_element_type=jnp.float32) + b1_ref[0]
    f = jnp.maximum(f, 0.0)
    f = jnp.dot(f.astype(jnp.bfloat16), w2_ref[0],
                preferred_element_type=jnp.float32) + b2_ref[0]
    x = x + f
    x_vmem[...] = x

    # ---- final LayerNorm fused into the last layer step; lm_head is a 2nd kernel ----
    @pl.when(layer == pl.num_programs(1) - 1)
    def _():
        hid_ref[...] = _layernorm(x, lnfg_ref[...], lnfb_ref[...])


# ------------------------- kernel 2: lm_head tiled over the vocab axis ---------------
def lm_head_kernel(h_ref, w_ref, b_ref, out_ref):
    out_ref[...] = jnp.dot(h_ref[...].astype(jnp.bfloat16), w_ref[...],
                           preferred_element_type=jnp.float32) + b_ref[...]


# ------------------------------- pallas_call wrapper ---------------------------------
def gpt_forward(idx, params, *, seqs_per_tile=None, vocab_tile=VOCAB_TILE):
    """idx: (B, T) int32 token ids -> logits (B, T, vocab_size)."""
    B, T = idx.shape
    C = N_EMBD
    rows = B * T

    if seqs_per_tile is None:
        # Target an MXU M dimension of >=256 rows per batch tile when the batch
        # allows (v6e/v7x systolic height).  On v7x, pass seqs_per_tile explicitly
        # (>=2 tiles) so the two TensorCores split the batch once per-tile compute
        # exceeds the per-tile weight re-streaming cost.
        seqs_per_tile = max(1, min(B, pl.cdiv(256, T)))
        while B % seqs_per_tile:
            seqs_per_tile -= 1
    assert B % seqs_per_tile == 0
    n_tiles = B // seqs_per_tile
    rows_tile = seqs_per_tile * T
    assert rows_tile % 8 == 0, "batch-tile rows must be sublane aligned"

    # embedding gather stays in XLA (glue), then batch is folded into rows
    x0 = jnp.take(params["tok_emb"], idx, axis=0).reshape(rows, C)
    cos = params["cosA"][:T]                 # (T, C) -- NOT tiled by batch
    sin = params["sinA"][:T]
    mask = params["mask"][:T, :T]

    def lspec(shape):                        # per-layer stacked weights (streamed)
        n = len(shape) - 1
        return pl.BlockSpec((1,) + shape[1:], lambda bt, l, _n=n: (l,) + (0,) * _n)

    def cspec(shape):                        # constants: single-buffered (index fixed)
        n = len(shape)
        return pl.BlockSpec(shape, lambda bt, l, _n=n: (0,) * _n,
                            pipeline_mode=pl.Buffered(1))

    in_specs = [
        pl.BlockSpec((rows_tile, C), lambda bt, l: (bt, 0)),      # x0 (embeddings)
        cspec(cos.shape), cspec(sin.shape), cspec(mask.shape),
        lspec(params["ln1g"].shape), lspec(params["ln1b"].shape),
        lspec(params["wqkv"].shape), lspec(params["wo"].shape),
        lspec(params["bo"].shape),
        lspec(params["ln2g"].shape), lspec(params["ln2b"].shape),
        lspec(params["w1"].shape), lspec(params["b1"].shape),
        lspec(params["w2"].shape), lspec(params["b2"].shape),
        cspec(params["lnf_g"].shape), cspec(params["lnf_b"].shape),
    ]

    hidden = pl.pallas_call(
        blocks_kernel,
        out_shape=jax.ShapeDtypeStruct((rows, C), jnp.float32),
        # grid = (batch tiles ["parallel": v7x dual-TC splits batch], layers)
        grid=(n_tiles, N_LAYER),
        in_specs=in_specs,
        out_specs=pl.BlockSpec((rows_tile, C), lambda bt, l: (bt, 0)),
        scratch_shapes=[pltpu.VMEM((rows_tile, C), jnp.float32)],  # resident acts
        compiler_params=pltpu.CompilerParams(
            dimension_semantics=("parallel", "arbitrary"),
            vmem_limit_bytes=48 * 1024 * 1024),
    )(x0, cos, sin, mask,
      params["ln1g"], params["ln1b"], params["wqkv"], params["wo"], params["bo"],
      params["ln2g"], params["ln2b"], params["w1"], params["b1"],
      params["w2"], params["b2"],
      params["lnf_g"], params["lnf_b"])

    v_tile = min(vocab_tile, VOCAB_SIZE)
    assert VOCAB_SIZE % v_tile == 0
    logits = pl.pallas_call(
        lm_head_kernel,
        out_shape=jax.ShapeDtypeStruct((rows, VOCAB_SIZE), jnp.float32),
        grid=(n_tiles, VOCAB_SIZE // v_tile),     # vocab is the inner (streamed) axis
        in_specs=[pl.BlockSpec((rows_tile, C), lambda i, j: (i, 0)),
                  pl.BlockSpec((C, v_tile), lambda i, j: (0, j)),
                  pl.BlockSpec((1, v_tile), lambda i, j: (0, j))],
        out_specs=pl.BlockSpec((rows_tile, v_tile), lambda i, j: (i, j)),
        compiler_params=pltpu.CompilerParams(
            dimension_semantics=("parallel", "parallel")),
    )(hidden, params["w_lm"], params["b_lm"])

    return logits.reshape(B, T, VOCAB_SIZE)


# ------------------------------- parameter init --------------------------------------
def init_params(key):
    keys = iter(jax.random.split(key, 256))
    C, hs = N_EMBD, HEAD_SIZE

    def normal(shape, std):
        return (std * jax.random.normal(next(keys), shape)).astype(jnp.float32)

    tok = normal((VOCAB_SIZE, C), 0.01)
    tok = tok.at[:N_SPECIAL].set(0.0)                   # special tokens zeroed

    # RoPE tables: freqs_cis = polar(1, outer(t, exp(arange(0,hs,2) * -ln(theta)/hs)))
    freqs = np.exp(np.arange(0, hs, 2, dtype=np.float64) * (-math.log(10000.0) / hs))
    t = np.arange(BLOCK_SIZE, dtype=np.float64)
    ang = np.outer(t, freqs)
    cos = np.cos(ang).astype(np.float32)                # (block, half)
    sin = np.sin(ang).astype(np.float32)

    # full-width tables for the kernel's grouped rotate-half layout
    cos_h = np.tile(cos, (1, N_HEAD))                   # (block, C/2)
    sin_h = np.tile(sin, (1, N_HEAD))
    cosA = np.concatenate([cos_h, cos_h], axis=1)       # (block, C)
    sinA = np.concatenate([-sin_h, sin_h], axis=1)

    # column permutation: natural head-interleaved -> [all even halves | all odd halves]
    perm = np.concatenate(
        [np.arange(hi * hs, (hi + 1) * hs, 2) for hi in range(N_HEAD)]
        + [np.arange(hi * hs + 1, (hi + 1) * hs, 2) for hi in range(N_HEAD)])
    scale = 1.0 / math.sqrt(hs)

    mask = np.where(np.arange(BLOCK_SIZE)[None, :] <= np.arange(BLOCK_SIZE)[:, None],
                    0.0, NEG_INF).astype(np.float32)

    names = ["ln1g", "ln1b", "wqkv", "wo", "bo", "ln2g", "ln2b", "w1", "b1", "w2", "b2"]
    stacked = {n: [] for n in names}
    blocks_ref = []
    for _ in range(N_LAYER):
        wq = normal((N_HEAD, C, hs), 0.02)
        wk = normal((N_HEAD, C, hs), 0.02)
        wv = normal((N_HEAD, C, hs), 0.02)
        wo = normal((C, C), 0.02)
        bo = jnp.zeros((1, C), jnp.float32)
        ln1g = jnp.ones((1, C), jnp.float32); ln1b = jnp.zeros((1, C), jnp.float32)
        ln2g = jnp.ones((1, C), jnp.float32); ln2b = jnp.zeros((1, C), jnp.float32)
        w1 = normal((C, 4 * C), 0.02); b1 = jnp.zeros((1, 4 * C), jnp.float32)
        w2 = normal((4 * C, C), 0.02); b2 = jnp.zeros((1, C), jnp.float32)

        # fuse heads along columns (natural head-major order), then apply the
        # RoPE column grouping to q/k and fold the 1/sqrt(hs) scale into wq
        wq_f = jnp.transpose(wq, (1, 0, 2)).reshape(C, C)
        wk_f = jnp.transpose(wk, (1, 0, 2)).reshape(C, C)
        wv_f = jnp.transpose(wv, (1, 0, 2)).reshape(C, C)
        wqkv = jnp.concatenate([wq_f[:, perm] * scale, wk_f[:, perm], wv_f], axis=1)

        for n, a in zip(names, (ln1g, ln1b, wqkv, wo, bo, ln2g, ln2b, w1, b1, w2, b2)):
            stacked[n].append(a)
        blocks_ref.append(dict(wq=wq, wk=wk, wv=wv, wo=wo, bo=bo,
                               ln1g=ln1g, ln1b=ln1b, ln2g=ln2g, ln2b=ln2b,
                               w1=w1, b1=b1, w2=w2, b2=b2))

    def stack(name, dtype=jnp.float32):
        return jnp.stack(stacked[name]).astype(dtype)

    lnf_g = jnp.ones((1, C), jnp.float32)
    lnf_b = jnp.zeros((1, C), jnp.float32)
    w_lm = normal((C, VOCAB_SIZE), 0.02)
    b_lm = jnp.zeros((1, VOCAB_SIZE), jnp.float32)

    params = dict(
        tok_emb=tok,
        cosA=jnp.asarray(cosA), sinA=jnp.asarray(sinA), mask=jnp.asarray(mask),
        ln1g=stack("ln1g"), ln1b=stack("ln1b"),
        wqkv=stack("wqkv", jnp.bfloat16), wo=stack("wo", jnp.bfloat16),
        bo=stack("bo"),
        ln2g=stack("ln2g"), ln2b=stack("ln2b"),
        w1=stack("w1", jnp.bfloat16), b1=stack("b1"),
        w2=stack("w2", jnp.bfloat16), b2=stack("b2"),
        lnf_g=lnf_g, lnf_b=lnf_b, w_lm=w_lm.astype(jnp.bfloat16), b_lm=b_lm)
    raw = dict(tok_emb=tok, cos=jnp.asarray(cos), sin=jnp.asarray(sin),
               blocks=blocks_ref, lnf_g=lnf_g, lnf_b=lnf_b, w_lm=w_lm, b_lm=b_lm)
    return params, raw


# ------------------------------- pure-JAX reference -----------------------------------
def _rope_interleaved(z, cos, sin):
    z0, z1 = z[..., 0::2], z[..., 1::2]
    re = z0 * cos - z1 * sin
    im = z0 * sin + z1 * cos
    return jnp.stack([re, im], axis=-1).reshape(z.shape)


def reference_forward(idx, raw):
    x = jnp.take(raw["tok_emb"], idx, axis=0)
    B, T = idx.shape
    cos, sin = raw["cos"][:T], raw["sin"][:T]
    causal = jnp.tril(jnp.ones((T, T), dtype=bool))
    for lp in raw["blocks"]:
        h = _layernorm(x, lp["ln1g"], lp["ln1b"])
        heads = []
        for hi in range(N_HEAD):
            q = _rope_interleaved(h @ lp["wq"][hi], cos, sin)
            k = _rope_interleaved(h @ lp["wk"][hi], cos, sin)
            v = h @ lp["wv"][hi]
            s = jnp.einsum("btd,bsd->bts", q, k) / math.sqrt(HEAD_SIZE)
            s = jnp.where(causal, s, -jnp.inf)
            p = jax.nn.softmax(s, axis=-1)
            heads.append(jnp.einsum("bts,bsd->btd", p, v))
        x = x + jnp.concatenate(heads, axis=-1) @ lp["wo"] + lp["bo"]
        h2 = _layernorm(x, lp["ln2g"], lp["ln2b"])
        f = jnp.maximum(h2 @ lp["w1"] + lp["b1"], 0.0)
        x = x + f @ lp["w2"] + lp["b2"]
    x = _layernorm(x, raw["lnf_g"], raw["lnf_b"])
    return x @ raw["w_lm"] + raw["b_lm"]


# ---------------------------------------- main ----------------------------------------
if __name__ == "__main__":
    key = jax.random.PRNGKey(0)
    pkey, ikey = jax.random.split(key)
    params, raw = init_params(pkey)

    B, T = 2, BLOCK_SIZE
    idx = jax.random.randint(ikey, (B, T), 0, VOCAB_SIZE, dtype=jnp.int32)

    # default: auto batch-tiling (single 32-row tile at toy size)
    logits = jax.jit(gpt_forward)(idx, params)
    logits = jax.block_until_ready(logits)
    assert logits.shape == (B, T, VOCAB_SIZE)
    assert logits.dtype == jnp.float32

    # per-sequence batch tiles (2 tiles): exercises the "parallel" batch-tile axis
    # that lets v7x's two TensorCores split the batch.
    logits2 = jax.jit(lambda i, p: gpt_forward(i, p, seqs_per_tile=1))(idx, params)
    logits2 = jax.block_until_ready(logits2)

    with jax.default_matmul_precision("highest"):
        ref = jax.jit(reference_forward)(idx, raw)
        ref = jax.block_until_ready(ref)

    # bf16 weights / bf16 MXU inputs -> loosened tolerance
    np.testing.assert_allclose(np.asarray(logits), np.asarray(ref), atol=2e-2, rtol=2e-2)
    np.testing.assert_allclose(np.asarray(logits2), np.asarray(ref), atol=2e-2, rtol=2e-2)

    print("KERNEL_OK")
</pallas_src>

<mosaic_0001>
module attributes {stable_mosaic.version = 11 : i64} {
  func.func @blocks_kernel(%arg0: i32, %arg1: i32, %arg2: memref<32x128xf32, #tpu.memory_space<vmem>>, %arg3: memref<16x128xf32, #tpu.memory_space<vmem>>, %arg4: memref<16x128xf32, #tpu.memory_space<vmem>>, %arg5: memref<16x16xf32, #tpu.memory_space<vmem>>, %arg6: memref<1x1x128xf32, #tpu.memory_space<vmem>>, %arg7: memref<1x1x128xf32, #tpu.memory_space<vmem>>, %arg8: memref<1x128x384xbf16, #tpu.memory_space<vmem>>, %arg9: memref<1x128x128xbf16, #tpu.memory_space<vmem>>, %arg10: memref<1x1x128xf32, #tpu.memory_space<vmem>>, %arg11: memref<1x1x128xf32, #tpu.memory_space<vmem>>, %arg12: memref<1x1x128xf32, #tpu.memory_space<vmem>>, %arg13: memref<1x128x512xbf16, #tpu.memory_space<vmem>>, %arg14: memref<1x1x512xf32, #tpu.memory_space<vmem>>, %arg15: memref<1x512x128xbf16, #tpu.memory_space<vmem>>, %arg16: memref<1x1x128xf32, #tpu.memory_space<vmem>>, %arg17: memref<1x128xf32, #tpu.memory_space<vmem>>, %arg18: memref<1x128xf32, #tpu.memory_space<vmem>>, %arg19: memref<32x128xf32, #tpu.memory_space<vmem>>, %arg20: memref<32x128xf32, #tpu.memory_space<vmem>>) attributes {dimension_semantics = [#tpu.dimension_semantics<parallel>, #tpu.dimension_semantics<arbitrary>], iteration_bounds = array<i64: 1, 2>, scalar_prefetch = 0 : i64, scratch_operands = 1 : i64, tpu.core_type = #tpu.core_type<tc>, window_params = [{transform_indices = @transform_0, window_bounds = array<i64: 32, 128>}, {pipeline_mode = #tpu.pipeline_mode<synchronous>, transform_indices = @transform_1, window_bounds = array<i64: 16, 128>}, {pipeline_mode = #tpu.pipeline_mode<synchronous>, transform_indices = @transform_2, window_bounds = array<i64: 16, 128>}, {pipeline_mode = #tpu.pipeline_mode<synchronous>, transform_indices = @transform_3, window_bounds = array<i64: 16, 16>}, {transform_indices = @transform_4, window_bounds = array<i64: 1, 1, 128>}, {transform_indices = @transform_5, window_bounds = array<i64: 1, 1, 128>}, {transform_indices = @transform_6, window_bounds = array<i64: 1, 128, 384>}, {transform_indices = @transform_7, window_bounds = array<i64: 1, 128, 128>}, {transform_indices = @transform_8, window_bounds = array<i64: 1, 1, 128>}, {transform_indices = @transform_9, window_bounds = array<i64: 1, 1, 128>}, {transform_indices = @transform_10, window_bounds = array<i64: 1, 1, 128>}, {transform_indices = @transform_11, window_bounds = array<i64: 1, 128, 512>}, {transform_indices = @transform_12, window_bounds = array<i64: 1, 1, 512>}, {transform_indices = @transform_13, window_bounds = array<i64: 1, 512, 128>}, {transform_indices = @transform_14, window_bounds = array<i64: 1, 1, 128>}, {pipeline_mode = #tpu.pipeline_mode<synchronous>, transform_indices = @transform_15, window_bounds = array<i64: 1, 128>}, {pipeline_mode = #tpu.pipeline_mode<synchronous>, transform_indices = @transform_16, window_bounds = array<i64: 1, 128>}, {transform_indices = @transform_17, window_bounds = array<i64: 32, 128>}]} {
    %c0_i32 = arith.constant 0 : i32
    %0 = arith.cmpi eq, %arg1, %c0_i32 : i32
    %1 = arith.extui %0 : i1 to i32
    %c0_i32_0 = arith.constant 0 : i32
    %2 = arith.cmpi ne, %1, %c0_i32_0 : i32
    scf.if %2 {
      %c0_93 = arith.constant 0 : index
      %c0_94 = arith.constant 0 : index
      %277 = vector.load %arg2[%c0_93, %c0_94] : memref<32x128xf32, #tpu.memory_space<vmem>>, vector<32x128xf32>
      %c0_95 = arith.constant 0 : index
      %c0_96 = arith.constant 0 : index
      %278 = vector.load %arg20[%c0_95, %c0_96] : memref<32x128xf32, #tpu.memory_space<vmem>>, vector<32x128xf32>
      tpu.vector_store %arg20[%c0_95, %c0_96], %277 {strides = array<i32>} : memref<32x128xf32, #tpu.memory_space<vmem>>, vector<32x128xf32>,
    } else {
    }
    %c0 = arith.constant 0 : index
    %c0_1 = arith.constant 0 : index
    %3 = vector.load %arg20[%c0, %c0_1] : memref<32x128xf32, #tpu.memory_space<vmem>>, vector<32x128xf32>
    %c0_2 = arith.constant 0 : index
    %c0_3 = arith.constant 0 : index
    %4 = vector.load %arg5[%c0_2, %c0_3] : memref<16x16xf32, #tpu.memory_space<vmem>>, vector<16x16xf32>
    %c0_4 = arith.constant 0 : index
    %c0_5 = arith.constant 0 : index
    %5 = vector.load %arg3[%c0_4, %c0_5] : memref<16x128xf32, #tpu.memory_space<vmem>>, vector<16x128xf32>
    %c0_6 = arith.constant 0 : index
    %c0_7 = arith.constant 0 : index
    %6 = vector.load %arg4[%c0_6, %c0_7] : memref<16x128xf32, #tpu.memory_space<vmem>>, vector<16x128xf32>
    %c0_8 = arith.constant 0 : index
    %c0_9 = arith.constant 0 : index
    %c0_10 = arith.constant 0 : index
    %7 = vector.load %arg6[%c0_8, %c0_9, %c0_10] : memref<1x1x128xf32, #tpu.memory_space<vmem>>, vector<1x1x128xf32>
    %8 = vector.shape_cast %7 : vector<1x1x128xf32> to vector<1x128xf32>
    %c0_11 = arith.constant 0 : index
    %c0_12 = arith.constant 0 : index
    %c0_13 = arith.constant 0 : index
    %9 = vector.load %arg7[%c0_11, %c0_12, %c0_13] : memref<1x1x128xf32, #tpu.memory_space<vmem>>, vector<1x1x128xf32>
    %10 = vector.shape_cast %9 : vector<1x1x128xf32> to vector<1x128xf32>
    %cst = arith.constant dense<0.000000e+00> : vector<32xf32>
    %11 = vector.multi_reduction <add>, %3, %cst [1] : vector<32x128xf32> to vector<32xf32>
    %12 = vector.shape_cast %11 : vector<32xf32> to vector<32x1xf32>
    %cst_14 = arith.constant 1.280000e+02 : f32
    %13 = vector.broadcast %cst_14 : f32 to vector<32x1xf32>
    %14 = arith.divf %12, %13 : vector<32x1xf32>
    %15 = vector.broadcast %14 : vector<32x1xf32> to vector<32x128xf32>
    %16 = arith.subf %3, %15 : vector<32x128xf32>
    %17 = arith.mulf %16, %16 : vector<32x128xf32>
    %cst_15 = arith.constant dense<0.000000e+00> : vector<32xf32>
    %18 = vector.multi_reduction <add>, %17, %cst_15 [1] : vector<32x128xf32> to vector<32xf32>
    %19 = vector.shape_cast %18 : vector<32xf32> to vector<32x1xf32>
    %cst_16 = arith.constant 1.280000e+02 : f32
    %20 = vector.broadcast %cst_16 : f32 to vector<32x1xf32>
    %21 = arith.divf %19, %20 : vector<32x1xf32>
    %cst_17 = arith.constant 9.99999974E-6 : f32
    %22 = vector.broadcast %cst_17 : f32 to vector<32x1xf32>
    %23 = arith.addf %21, %22 : vector<32x1xf32>
    %24 = math.rsqrt %23 : vector<32x1xf32>
    %25 = vector.broadcast %24 : vector<32x1xf32> to vector<32x128xf32>
    %26 = arith.mulf %16, %25 : vector<32x128xf32>
    %27 = vector.broadcast %8 : vector<1x128xf32> to vector<32x128xf32>
    %28 = arith.mulf %26, %27 : vector<32x128xf32>
    %29 = vector.broadcast %10 : vector<1x128xf32> to vector<32x128xf32>
    %30 = arith.addf %28, %29 : vector<32x128xf32>
    %31 = arith.truncf %30 : vector<32x128xf32> to vector<32x128xbf16>
    %c0_18 = arith.constant 0 : index
    %c0_19 = arith.constant 0 : index
    %c0_20 = arith.constant 0 : index
    %32 = vector.load %arg8[%c0_18, %c0_19, %c0_20] : memref<1x128x384xbf16, #tpu.memory_space<vmem>>, vector<1x128x384xbf16>
    %33 = vector.shape_cast %32 : vector<1x128x384xbf16> to vector<128x384xbf16>
    %cst_21 = arith.constant dense<0.000000e+00> : vector<32x384xf32>
    %34 = tpu.matmul %31, %33, %cst_21 {dimension_numbers = #tpu.dot_dimension_numbers<[1], [0], [0], [1], [0, 0, 1, 1], [], []>} : vector<32x128xbf16>, vector<128x384xbf16>, vector<32x384xf32> -> vector<32x384xf32>
    %35 = vector.extract_strided_slice %34 {offsets = [0, 0], sizes = [32, 128], strides = [1, 1]} : vector<32x384xf32> to vector<32x128xf32>
    %36 = vector.extract_strided_slice %34 {offsets = [0, 128], sizes = [32, 128], strides = [1, 1]} : vector<32x384xf32> to vector<32x128xf32>
    %37 = vector.extract_strided_slice %34 {offsets = [0, 256], sizes = [32, 128], strides = [1, 1]} : vector<32x384xf32> to vector<32x128xf32>
    %38 = vector.extract_strided_slice %35 {offsets = [0, 0], sizes = [16, 128], strides = [1, 1]} : vector<32x128xf32> to vector<16x128xf32>
    %39 = vector.extract_strided_slice %36 {offsets = [0, 0], sizes = [16, 128], strides = [1, 1]} : vector<32x128xf32> to vector<16x128xf32>
    %40 = arith.mulf %38, %5 : vector<16x128xf32>
    %c64_i32 = arith.constant 64 : i32
    %41 = tpu.dynamic_rotate %38 by %c64_i32 dim 1 : vector<16x128xf32>, i32 -> vector<16x128xf32>
    %42 = arith.mulf %41, %6 : vector<16x128xf32>
    %43 = arith.addf %40, %42 : vector<16x128xf32>
    %44 = arith.mulf %39, %5 : vector<16x128xf32>
    %c64_i32_22 = arith.constant 64 : i32
    %45 = tpu.dynamic_rotate %39 by %c64_i32_22 dim 1 : vector<16x128xf32>, i32 -> vector<16x128xf32>
    %46 = arith.mulf %45, %6 : vector<16x128xf32>
    %47 = arith.addf %44, %46 : vector<16x128xf32>
    %48 = vector.extract_strided_slice %43 {offsets = [0, 0], sizes = [16, 16], strides = [1, 1]} : vector<16x128xf32> to vector<16x16xf32>
    %49 = vector.extract_strided_slice %43 {offsets = [0, 64], sizes = [16, 16], strides = [1, 1]} : vector<16x128xf32> to vector<16x16xf32>
    %50 = tpu.concatenate %48, %49 in 1 : vector<16x16xf32>, vector<16x16xf32> -> vector<16x32xf32>
    %51 = vector.extract_strided_slice %47 {offsets = [0, 0], sizes = [16, 16], strides = [1, 1]} : vector<16x128xf32> to vector<16x16xf32>
    %52 = vector.extract_strided_slice %47 {offsets = [0, 64], sizes = [16, 16], strides = [1, 1]} : vector<16x128xf32> to vector<16x16xf32>
    %53 = tpu.concatenate %51, %52 in 1 : vector<16x16xf32>, vector<16x16xf32> -> vector<16x32xf32>
    %cst_23 = arith.constant dense<0.000000e+00> : vector<16x16xf32>
    %54 = tpu.matmul %50, %53, %cst_23 {dimension_numbers = #tpu.dot_dimension_numbers<[1], [1], [0], [0], [0, 0, 1, 0], [], []>} : vector<16x32xf32>, vector<16x32xf32>, vector<16x16xf32> -> vector<16x16xf32>
    %55 = arith.addf %54, %4 : vector<16x16xf32>
    %cst_24 = arith.constant dense<0xFF800000> : vector<16xf32>
    %56 = vector.multi_reduction <maximumf>, %55, %cst_24 [1] : vector<16x16xf32> to vector<16xf32>
    %57 = vector.shape_cast %56 : vector<16xf32> to vector<16x1xf32>
    %58 = vector.broadcast %57 : vector<16x1xf32> to vector<16x16xf32>
    %59 = arith.subf %55, %58 : vector<16x16xf32>
    %60 = math.exp %59 : vector<16x16xf32>
    %cst_25 = arith.constant dense<0.000000e+00> : vector<16xf32>
    %61 = vector.multi_reduction <add>, %60, %cst_25 [1] : vector<16x16xf32> to vector<16xf32>
    %62 = vector.shape_cast %61 : vector<16xf32> to vector<16x1xf32>
    %63 = tpu.reciprocal %62 : vector<16x1xf32> -> vector<16x1xf32>
    %64 = vector.broadcast %63 : vector<16x1xf32> to vector<16x16xf32>
    %65 = arith.mulf %60, %64 : vector<16x16xf32>
    %66 = vector.extract_strided_slice %37 {offsets = [0, 0], sizes = [16, 32], strides = [1, 1]} : vector<32x128xf32> to vector<16x32xf32>
    %cst_26 = arith.constant dense<0.000000e+00> : vector<16x32xf32>
    %67 = tpu.matmul %65, %66, %cst_26 {dimension_numbers = #tpu.dot_dimension_numbers<[1], [0], [0], [1], [0, 0, 1, 1], [], []>} : vector<16x16xf32>, vector<16x32xf32>, vector<16x32xf32> -> vector<16x32xf32>
    %68 = vector.extract_strided_slice %43 {offsets = [0, 16], sizes = [16, 16], strides = [1, 1]} : vector<16x128xf32> to vector<16x16xf32>
    %69 = vector.extract_strided_slice %43 {offsets = [0, 80], sizes = [16, 16], strides = [1, 1]} : vector<16x128xf32> to vector<16x16xf32>
    %70 = tpu.concatenate %68, %69 in 1 : vector<16x16xf32>, vector<16x16xf32> -> vector<16x32xf32>
    %71 = vector.extract_strided_slice %47 {offsets = [0, 16], sizes = [16, 16], strides = [1, 1]} : vector<16x128xf32> to vector<16x16xf32>
    %72 = vector.extract_strided_slice %47 {offsets = [0, 80], sizes = [16, 16], strides = [1, 1]} : vector<16x128xf32> to vector<16x16xf32>
    %73 = tpu.concatenate %71, %72 in 1 : vector<16x16xf32>, vector<16x16xf32> -> vector<16x32xf32>
    %cst_27 = arith.constant dense<0.000000e+00> : vector<16x16xf32>
    %74 = tpu.matmul %70, %73, %cst_27 {dimension_numbers = #tpu.dot_dimension_numbers<[1], [1], [0], [0], [0, 0, 1, 0], [], []>} : vector<16x32xf32>, vector<16x32xf32>, vector<16x16xf32> -> vector<16x16xf32>
    %75 = arith.addf %74, %4 : vector<16x16xf32>
    %cst_28 = arith.constant dense<0xFF800000> : vector<16xf32>
    %76 = vector.multi_reduction <maximumf>, %75, %cst_28 [1] : vector<16x16xf32> to vector<16xf32>
    %77 = vector.shape_cast %76 : vector<16xf32> to vector<16x1xf32>
    %78 = vector.broadcast %77 : vector<16x1xf32> to vector<16x16xf32>
    %79 = arith.subf %75, %78 : vector<16x16xf32>
    %80 = math.exp %79 : vector<16x16xf32>
    %cst_29 = arith.constant dense<0.000000e+00> : vector<16xf32>
    %81 = vector.multi_reduction <add>, %80, %cst_29 [1] : vector<16x16xf32> to vector<16xf32>
    %82 = vector.shape_cast %81 : vector<16xf32> to vector<16x1xf32>
    %83 = tpu.reciprocal %82 : vector<16x1xf32> -> vector<16x1xf32>
    %84 = vector.broadcast %83 : vector<16x1xf32> to vector<16x16xf32>
    %85 = arith.mulf %80, %84 : vector<16x16xf32>
    %86 = vector.extract_strided_slice %37 {offsets = [0, 32], sizes = [16, 32], strides = [1, 1]} : vector<32x128xf32> to vector<16x32xf32>
    %cst_30 = arith.constant dense<0.000000e+00> : vector<16x32xf32>
    %87 = tpu.matmul %85, %86, %cst_30 {dimension_numbers = #tpu.dot_dimension_numbers<[1], [0], [0], [1], [0, 0, 1, 1], [], []>} : vector<16x16xf32>, vector<16x32xf32>, vector<16x32xf32> -> vector<16x32xf32>
    %88 = vector.extract_strided_slice %43 {offsets = [0, 32], sizes = [16, 16], strides = [1, 1]} : vector<16x128xf32> to vector<16x16xf32>
    %89 = vector.extract_strided_slice %43 {offsets = [0, 96], sizes = [16, 16], strides = [1, 1]} : vector<16x128xf32> to vector<16x16xf32>
    %90 = tpu.concatenate %88, %89 in 1 : vector<16x16xf32>, vector<16x16xf32> -> vector<16x32xf32>
    %91 = vector.extract_strided_slice %47 {offsets = [0, 32], sizes = [16, 16], strides = [1, 1]} : vector<16x128xf32> to vector<16x16xf32>
    %92 = vector.extract_strided_slice %47 {offsets = [0, 96], sizes = [16, 16], strides = [1, 1]} : vector<16x128xf32> to vector<16x16xf32>
    %93 = tpu.concatenate %91, %92 in 1 : vector<16x16xf32>, vector<16x16xf32> -> vector<16x32xf32>
    %cst_31 = arith.constant dense<0.000000e+00> : vector<16x16xf32>
    %94 = tpu.matmul %90, %93, %cst_31 {dimension_numbers = #tpu.dot_dimension_numbers<[1], [1], [0], [0], [0, 0, 1, 0], [], []>} : vector<16x32xf32>, vector<16x32xf32>, vector<16x16xf32> -> vector<16x16xf32>
    %95 = arith.addf %94, %4 : vector<16x16xf32>
    %cst_32 = arith.constant dense<0xFF800000> : vector<16xf32>
    %96 = vector.multi_reduction <maximumf>, %95, %cst_32 [1] : vector<16x16xf32> to vector<16xf32>
    %97 = vector.shape_cast %96 : vector<16xf32> to vector<16x1xf32>
    %98 = vector.broadcast %97 : vector<16x1xf32> to vector<16x16xf32>
    %99 = arith.subf %95, %98 : vector<16x16xf32>
    %100 = math.exp %99 : vector<16x16xf32>
    %cst_33 = arith.constant dense<0.000000e+00> : vector<16xf32>
    %101 = vector.multi_reduction <add>, %100, %cst_33 [1] : vector<16x16xf32> to vector<16xf32>
    %102 = vector.shape_cast %101 : vector<16xf32> to vector<16x1xf32>
    %103 = tpu.reciprocal %102 : vector<16x1xf32> -> vector<16x1xf32>
    %104 = vector.broadcast %103 : vector<16x1xf32> to vector<16x16xf32>
    %105 = arith.mulf %100, %104 : vector<16x16xf32>
    %106 = vector.extract_strided_slice %37 {offsets = [0, 64], sizes = [16, 32], strides = [1, 1]} : vector<32x128xf32> to vector<16x32xf32>
    %cst_34 = arith.constant dense<0.000000e+00> : vector<16x32xf32>
    %107 = tpu.matmul %105, %106, %cst_34 {dimension_numbers = #tpu.dot_dimension_numbers<[1], [0], [0], [1], [0, 0, 1, 1], [], []>} : vector<16x16xf32>, vector<16x32xf32>, vector<16x32xf32> -> vector<16x32xf32>
    %108 = vector.extract_strided_slice %43 {offsets = [0, 48], sizes = [16, 16], strides = [1, 1]} : vector<16x128xf32> to vector<16x16xf32>
    %109 = vector.extract_strided_slice %43 {offsets = [0, 112], sizes = [16, 16], strides = [1, 1]} : vector<16x128xf32> to vector<16x16xf32>
    %110 = tpu.concatenate %108, %109 in 1 : vector<16x16xf32>, vector<16x16xf32> -> vector<16x32xf32>
    %111 = vector.extract_strided_slice %47 {offsets = [0, 48], sizes = [16, 16], strides = [1, 1]} : vector<16x128xf32> to vector<16x16xf32>
    %112 = vector.extract_strided_slice %47 {offsets = [0, 112], sizes = [16, 16], strides = [1, 1]} : vector<16x128xf32> to vector<16x16xf32>
    %113 = tpu.concatenate %111, %112 in 1 : vector<16x16xf32>, vector<16x16xf32> -> vector<16x32xf32>
    %cst_35 = arith.constant dense<0.000000e+00> : vector<16x16xf32>
    %114 = tpu.matmul %110, %113, %cst_35 {dimension_numbers = #tpu.dot_dimension_numbers<[1], [1], [0], [0], [0, 0, 1, 0], [], []>} : vector<16x32xf32>, vector<16x32xf32>, vector<16x16xf32> -> vector<16x16xf32>
    %115 = arith.addf %114, %4 : vector<16x16xf32>
    %cst_36 = arith.constant dense<0xFF800000> : vector<16xf32>
    %116 = vector.multi_reduction <maximumf>, %115, %cst_36 [1] : vector<16x16xf32> to vector<16xf32>
    %117 = vector.shape_cast %116 : vector<16xf32> to vector<16x1xf32>
    %118 = vector.broadcast %117 : vector<16x1xf32> to vector<16x16xf32>
    %119 = arith.subf %115, %118 : vector<16x16xf32>
    %120 = math.exp %119 : vector<16x16xf32>
    %cst_37 = arith.constant dense<0.000000e+00> : vector<16xf32>
    %121 = vector.multi_reduction <add>, %120, %cst_37 [1] : vector<16x16xf32> to vector<16xf32>
    %122 = vector.shape_cast %121 : vector<16xf32> to vector<16x1xf32>
    %123 = tpu.reciprocal %122 : vector<16x1xf32> -> vector<16x1xf32>
    %124 = vector.broadcast %123 : vector<16x1xf32> to vector<16x16xf32>
    %125 = arith.mulf %120, %124 : vector<16x16xf32>
    %126 = vector.extract_strided_slice %37 {offsets = [0, 96], sizes = [16, 32], strides = [1, 1]} : vector<32x128xf32> to vector<16x32xf32>
    %cst_38 = arith.constant dense<0.000000e+00> : vector<16x32xf32>
    %127 = tpu.matmul %125, %126, %cst_38 {dimension_numbers = #tpu.dot_dimension_numbers<[1], [0], [0], [1], [0, 0, 1, 1], [], []>} : vector<16x16xf32>, vector<16x32xf32>, vector<16x32xf32> -> vector<16x32xf32>
    %128 = tpu.concatenate %67, %87, %107, %127 in 1 : vector<16x32xf32>, vector<16x32xf32>, vector<16x32xf32>, vector<16x32xf32> -> vector<16x128xf32>
    %129 = vector.extract_strided_slice %35 {offsets = [16, 0], sizes = [16, 128], strides = [1, 1]} : vector<32x128xf32> to vector<16x128xf32>
    %130 = vector.extract_strided_slice %36 {offsets = [16, 0], sizes = [16, 128], strides = [1, 1]} : vector<32x128xf32> to vector<16x128xf32>
    %131 = arith.mulf %129, %5 : vector<16x128xf32>
    %c64_i32_39 = arith.constant 64 : i32
    %132 = tpu.dynamic_rotate %129 by %c64_i32_39 dim 1 : vector<16x128xf32>, i32 -> vector<16x128xf32>
    %133 = arith.mulf %132, %6 : vector<16x128xf32>
    %134 = arith.addf %131, %133 : vector<16x128xf32>
    %135 = arith.mulf %130, %5 : vector<16x128xf32>
    %c64_i32_40 = arith.constant 64 : i32
    %136 = tpu.dynamic_rotate %130 by %c64_i32_40 dim 1 : vector<16x128xf32>, i32 -> vector<16x128xf32>
    %137 = arith.mulf %136, %6 : vector<16x128xf32>
    %138 = arith.addf %135, %137 : vector<16x128xf32>
    %139 = vector.extract_strided_slice %134 {offsets = [0, 0], sizes = [16, 16], strides = [1, 1]} : vector<16x128xf32> to vector<16x16xf32>
    %140 = vector.extract_strided_slice %134 {offsets = [0, 64], sizes = [16, 16], strides = [1, 1]} : vector<16x128xf32> to vector<16x16xf32>
    %141 = tpu.concatenate %139, %140 in 1 : vector<16x16xf32>, vector<16x16xf32> -> vector<16x32xf32>
    %142 = vector.extract_strided_slice %138 {offsets = [0, 0], sizes = [16, 16], strides = [1, 1]} : vector<16x128xf32> to vector<16x16xf32>
    %143 = vector.extract_strided_slice %138 {offsets = [0, 64], sizes = [16, 16], strides = [1, 1]} : vector<16x128xf32> to vector<16x16xf32>
    %144 = tpu.concatenate %142, %143 in 1 : vector<16x16xf32>, vector<16x16xf32> -> vector<16x32xf32>
    %cst_41 = arith.constant dense<0.000000e+00> : vector<16x16xf32>
    %145 = tpu.matmul %141, %144, %cst_41 {dimension_numbers = #tpu.dot_dimension_numbers<[1], [1], [0], [0], [0, 0, 1, 0], [], []>} : vector<16x32xf32>, vector<16x32xf32>, vector<16x16xf32> -> vector<16x16xf32>
    %146 = arith.addf %145, %4 : vector<16x16xf32>
    %cst_42 = arith.constant dense<0xFF800000> : vector<16xf32>
    %147 = vector.multi_reduction <maximumf>, %146, %cst_42 [1] : vector<16x16xf32> to vector<16xf32>
    %148 = vector.shape_cast %147 : vector<16xf32> to vector<16x1xf32>
    %149 = vector.broadcast %148 : vector<16x1xf32> to vector<16x16xf32>
    %150 = arith.subf %146, %149 : vector<16x16xf32>
    %151 = math.exp %150 : vector<16x16xf32>
    %cst_43 = arith.constant dense<0.000000e+00> : vector<16xf32>
    %152 = vector.multi_reduction <add>, %151, %cst_43 [1] : vector<16x16xf32> to vector<16xf32>
    %153 = vector.shape_cast %152 : vector<16xf32> to vector<16x1xf32>
    %154 = tpu.reciprocal %153 : vector<16x1xf32> -> vector<16x1xf32>
    %155 = vector.broadcast %154 : vector<16x1xf32> to vector<16x16xf32>
    %156 = arith.mulf %151, %155 : vector<16x16xf32>
    %157 = vector.extract_strided_slice %37 {offsets = [16, 0], sizes = [16, 32], strides = [1, 1]} : vector<32x128xf32> to vector<16x32xf32>
    %cst_44 = arith.constant dense<0.000000e+00> : vector<16x32xf32>
    %158 = tpu.matmul %156, %157, %cst_44 {dimension_numbers = #tpu.dot_dimension_numbers<[1], [0], [0], [1], [0, 0, 1, 1], [], []>} : vector<16x16xf32>, vector<16x32xf32>, vector<16x32xf32> -> vector<16x32xf32>
    %159 = vector.extract_strided_slice %134 {offsets = [0, 16], sizes = [16, 16], strides = [1, 1]} : vector<16x128xf32> to vector<16x16xf32>
    %160 = vector.extract_strided_slice %134 {offsets = [0, 80], sizes = [16, 16], strides = [1, 1]} : vector<16x128xf32> to vector<16x16xf32>
    %161 = tpu.concatenate %159, %160 in 1 : vector<16x16xf32>, vector<16x16xf32> -> vector<16x32xf32>
    %162 = vector.extract_strided_slice %138 {offsets = [0, 16], sizes = [16, 16], strides = [1, 1]} : vector<16x128xf32> to vector<16x16xf32>
    %163 = vector.extract_strided_slice %138 {offsets = [0, 80], sizes = [16, 16], strides = [1, 1]} : vector<16x128xf32> to vector<16x16xf32>
    %164 = tpu.concatenate %162, %163 in 1 : vector<16x16xf32>, vector<16x16xf32> -> vector<16x32xf32>
    %cst_45 = arith.constant dense<0.000000e+00> : vector<16x16xf32>
    %165 = tpu.matmul %161, %164, %cst_45 {dimension_numbers = #tpu.dot_dimension_numbers<[1], [1], [0], [0], [0, 0, 1, 0], [], []>} : vector<16x32xf32>, vector<16x32xf32>, vector<16x16xf32> -> vector<16x16xf32>
    %166 = arith.addf %165, %4 : vector<16x16xf32>
    %cst_46 = arith.constant dense<0xFF800000> : vector<16xf32>
    %167 = vector.multi_reduction <maximumf>, %166, %cst_46 [1] : vector<16x16xf32> to vector<16xf32>
    %168 = vector.shape_cast %167 : vector<16xf32> to vector<16x1xf32>
    %169 = vector.broadcast %168 : vector<16x1xf32> to vector<16x16xf32>
    %170 = arith.subf %166, %169 : vector<16x16xf32>
    %171 = math.exp %170 : vector<16x16xf32>
    %cst_47 = arith.constant dense<0.000000e+00> : vector<16xf32>
    %172 = vector.multi_reduction <add>, %171, %cst_47 [1] : vector<16x16xf32> to vector<16xf32>
    %173 = vector.shape_cast %172 : vector<16xf32> to vector<16x1xf32>
    %174 = tpu.reciprocal %173 : vector<16x1xf32> -> vector<16x1xf32>
    %175 = vector.broadcast %174 : vector<16x1xf32> to vector<16x16xf32>
    %176 = arith.mulf %171, %175 : vector<16x16xf32>
    %177 = vector.extract_strided_slice %37 {offsets = [16, 32], sizes = [16, 32], strides = [1, 1]} : vector<32x128xf32> to vector<16x32xf32>
    %cst_48 = arith.constant dense<0.000000e+00> : vector<16x32xf32>
    %178 = tpu.matmul %176, %177, %cst_48 {dimension_numbers = #tpu.dot_dimension_numbers<[1], [0], [0], [1], [0, 0, 1, 1], [], []>} : vector<16x16xf32>, vector<16x32xf32>, vector<16x32xf32> -> vector<16x32xf32>
    %179 = vector.extract_strided_slice %134 {offsets = [0, 32], sizes = [16, 16], strides = [1, 1]} : vector<16x128xf32> to vector<16x16xf32>
    %180 = vector.extract_strided_slice %134 {offsets = [0, 96], sizes = [16, 16], strides = [1, 1]} : vector<16x128xf32> to vector<16x16xf32>
    %181 = tpu.concatenate %179, %180 in 1 : vector<16x16xf32>, vector<16x16xf32> -> vector<16x32xf32>
    %182 = vector.extract_strided_slice %138 {offsets = [0, 32], sizes = [16, 16], strides = [1, 1]} : vector<16x128xf32> to vector<16x16xf32>
    %183 = vector.extract_strided_slice %138 {offsets = [0, 96], sizes = [16, 16], strides = [1, 1]} : vector<16x128xf32> to vector<16x16xf32>
    %184 = tpu.concatenate %182, %183 in 1 : vector<16x16xf32>, vector<16x16xf32> -> vector<16x32xf32>
    %cst_49 = arith.constant dense<0.000000e+00> : vector<16x16xf32>
    %185 = tpu.matmul %181, %184, %cst_49 {dimension_numbers = #tpu.dot_dimension_numbers<[1], [1], [0], [0], [0, 0, 1, 0], [], []>} : vector<16x32xf32>, vector<16x32xf32>, vector<16x16xf32> -> vector<16x16xf32>
    %186 = arith.addf %185, %4 : vector<16x16xf32>
    %cst_50 = arith.constant dense<0xFF800000> : vector<16xf32>
    %187 = vector.multi_reduction <maximumf>, %186, %cst_50 [1] : vector<16x16xf32> to vector<16xf32>
    %188 = vector.shape_cast %187 : vector<16xf32> to vector<16x1xf32>
    %189 = vector.broadcast %188 : vector<16x1xf32> to vector<16x16xf32>
    %190 = arith.subf %186, %189 : vector<16x16xf32>
    %191 = math.exp %190 : vector<16x16xf32>
    %cst_51 = arith.constant dense<0.000000e+00> : vector<16xf32>
    %192 = vector.multi_reduction <add>, %191, %cst_51 [1] : vector<16x16xf32> to vector<16xf32>
    %193 = vector.shape_cast %192 : vector<16xf32> to vector<16x1xf32>
    %194 = tpu.reciprocal %193 : vector<16x1xf32> -> vector<16x1xf32>
    %195 = vector.broadcast %194 : vector<16x1xf32> to vector<16x16xf32>
    %196 = arith.mulf %191, %195 : vector<16x16xf32>
    %197 = vector.extract_strided_slice %37 {offsets = [16, 64], sizes = [16, 32], strides = [1, 1]} : vector<32x128xf32> to vector<16x32xf32>
    %cst_52 = arith.constant dense<0.000000e+00> : vector<16x32xf32>
    %198 = tpu.matmul %196, %197, %cst_52 {dimension_numbers = #tpu.dot_dimension_numbers<[1], [0], [0], [1], [0, 0, 1, 1], [], []>} : vector<16x16xf32>, vector<16x32xf32>, vector<16x32xf32> -> vector<16x32xf32>
    %199 = vector.extract_strided_slice %134 {offsets = [0, 48], sizes = [16, 16], strides = [1, 1]} : vector<16x128xf32> to vector<16x16xf32>
    %200 = vector.extract_strided_slice %134 {offsets = [0, 112], sizes = [16, 16], strides = [1, 1]} : vector<16x128xf32> to vector<16x16xf32>
    %201 = tpu.concatenate %199, %200 in 1 : vector<16x16xf32>, vector<16x16xf32> -> vector<16x32xf32>
    %202 = vector.extract_strided_slice %138 {offsets = [0, 48], sizes = [16, 16], strides = [1, 1]} : vector<16x128xf32> to vector<16x16xf32>
    %203 = vector.extract_strided_slice %138 {offsets = [0, 112], sizes = [16, 16], strides = [1, 1]} : vector<16x128xf32> to vector<16x16xf32>
    %204 = tpu.concatenate %202, %203 in 1 : vector<16x16xf32>, vector<16x16xf32> -> vector<16x32xf32>
    %cst_53 = arith.constant dense<0.000000e+00> : vector<16x16xf32>
    %205 = tpu.matmul %201, %204, %cst_53 {dimension_numbers = #tpu.dot_dimension_numbers<[1], [1], [0], [0], [0, 0, 1, 0], [], []>} : vector<16x32xf32>, vector<16x32xf32>, vector<16x16xf32> -> vector<16x16xf32>
    %206 = arith.addf %205, %4 : vector<16x16xf32>
    %cst_54 = arith.constant dense<0xFF800000> : vector<16xf32>
    %207 = vector.multi_reduction <maximumf>, %206, %cst_54 [1] : vector<16x16xf32> to vector<16xf32>
    %208 = vector.shape_cast %207 : vector<16xf32> to vector<16x1xf32>
    %209 = vector.broadcast %208 : vector<16x1xf32> to vector<16x16xf32>
    %210 = arith.subf %206, %209 : vector<16x16xf32>
    %211 = math.exp %210 : vector<16x16xf32>
    %cst_55 = arith.constant dense<0.000000e+00> : vector<16xf32>
    %212 = vector.multi_reduction <add>, %211, %cst_55 [1] : vector<16x16xf32> to vector<16xf32>
    %213 = vector.shape_cast %212 : vector<16xf32> to vector<16x1xf32>
    %214 = tpu.reciprocal %213 : vector<16x1xf32> -> vector<16x1xf32>
    %215 = vector.broadcast %214 : vector<16x1xf32> to vector<16x16xf32>
    %216 = arith.mulf %211, %215 : vector<16x16xf32>
    %217 = vector.extract_strided_slice %37 {offsets = [16, 96], sizes = [16, 32], strides = [1, 1]} : vector<32x128xf32> to vector<16x32xf32>
    %cst_56 = arith.constant dense<0.000000e+00> : vector<16x32xf32>
    %218 = tpu.matmul %216, %217, %cst_56 {dimension_numbers = #tpu.dot_dimension_numbers<[1], [0], [0], [1], [0, 0, 1, 1], [], []>} : vector<16x16xf32>, vector<16x32xf32>, vector<16x32xf32> -> vector<16x32xf32>
    %219 = tpu.concatenate %158, %178, %198, %218 in 1 : vector<16x32xf32>, vector<16x32xf32>, vector<16x32xf32>, vector<16x32xf32> -> vector<16x128xf32>
    %220 = tpu.concatenate %128, %219 in 0 : vector<16x128xf32>, vector<16x128xf32> -> vector<32x128xf32>
    %221 = arith.truncf %220 : vector<32x128xf32> to vector<32x128xbf16>
    %c0_57 = arith.constant 0 : index
    %c0_58 = arith.constant 0 : index
    %c0_59 = arith.constant 0 : index
    %222 = vector.load %arg9[%c0_57, %c0_58, %c0_59] : memref<1x128x128xbf16, #tpu.memory_space<vmem>>, vector<1x128x128xbf16>
    %223 = vector.shape_cast %222 : vector<1x128x128xbf16> to vector<128x128xbf16>
    %cst_60 = arith.constant dense<0.000000e+00> : vector<32x128xf32>
    %224 = tpu.matmul %221, %223, %cst_60 {dimension_numbers = #tpu.dot_dimension_numbers<[1], [0], [0], [1], [0, 0, 1, 1], [], []>} : vector<32x128xbf16>, vector<128x128xbf16>, vector<32x128xf32> -> vector<32x128xf32>
    %c0_61 = arith.constant 0 : index
    %c0_62 = arith.constant 0 : index
    %c0_63 = arith.constant 0 : index
    %225 = vector.load %arg10[%c0_61, %c0_62, %c0_63] : memref<1x1x128xf32, #tpu.memory_space<vmem>>, vector<1x1x128xf32>
    %226 = vector.shape_cast %225 : vector<1x1x128xf32> to vector<1x128xf32>
    %227 = vector.broadcast %226 : vector<1x128xf32> to vector<32x128xf32>
    %228 = arith.addf %224, %227 : vector<32x128xf32>
    %229 = arith.addf %3, %228 : vector<32x128xf32>
    %c0_64 = arith.constant 0 : index
    %c0_65 = arith.constant 0 : index
    %c0_66 = arith.constant 0 : index
    %230 = vector.load %arg11[%c0_64, %c0_65, %c0_66] : memref<1x1x128xf32, #tpu.memory_space<vmem>>, vector<1x1x128xf32>
    %231 = vector.shape_cast %230 : vector<1x1x128xf32> to vector<1x128xf32>
    %c0_67 = arith.constant 0 : index
    %c0_68 = arith.constant 0 : index
    %c0_69 = arith.constant 0 : index
    %232 = vector.load %arg12[%c0_67, %c0_68, %c0_69] : memref<1x1x128xf32, #tpu.memory_space<vmem>>, vector<1x1x128xf32>
    %233 = vector.shape_cast %232 : vector<1x1x128xf32> to vector<1x128xf32>
    %cst_70 = arith.constant dense<0.000000e+00> : vector<32xf32>
    %234 = vector.multi_reduction <add>, %229, %cst_70 [1] : vector<32x128xf32> to vector<32xf32>
    %235 = vector.shape_cast %234 : vector<32xf32> to vector<32x1xf32>
    %cst_71 = arith.constant 1.280000e+02 : f32
    %236 = vector.broadcast %cst_71 : f32 to vector<32x1xf32>
    %237 = arith.divf %235, %236 : vector<32x1xf32>
    %238 = vector.broadcast %237 : vector<32x1xf32> to vector<32x128xf32>
    %239 = arith.subf %229, %238 : vector<32x128xf32>
    %240 = arith.mulf %239, %239 : vector<32x128xf32>
    %cst_72 = arith.constant dense<0.000000e+00> : vector<32xf32>
    %241 = vector.multi_reduction <add>, %240, %cst_72 [1] : vector<32x128xf32> to vector<32xf32>
    %242 = vector.shape_cast %241 : vector<32xf32> to vector<32x1xf32>
    %cst_73 = arith.constant 1.280000e+02 : f32
    %243 = vector.broadcast %cst_73 : f32 to vector<32x1xf32>
    %244 = arith.divf %242, %243 : vector<32x1xf32>
    %cst_74 = arith.constant 9.99999974E-6 : f32
    %245 = vector.broadcast %cst_74 : f32 to vector<32x1xf32>
    %246 = arith.addf %244, %245 : vector<32x1xf32>
    %247 = math.rsqrt %246 : vector<32x1xf32>
    %248 = vector.broadcast %247 : vector<32x1xf32> to vector<32x128xf32>
    %249 = arith.mulf %239, %248 : vector<32x128xf32>
    %250 = vector.broadcast %231 : vector<1x128xf32> to vector<32x128xf32>
    %251 = arith.mulf %249, %250 : vector<32x128xf32>
    %252 = vector.broadcast %233 : vector<1x128xf32> to vector<32x128xf32>
    %253 = arith.addf %251, %252 : vector<32x128xf32>
    %254 = arith.truncf %253 : vector<32x128xf32> to vector<32x128xbf16>
    %c0_75 = arith.constant 0 : index
    %c0_76 = arith.constant 0 : index
    %c0_77 = arith.constant 0 : index
    %255 = vector.load %arg13[%c0_75, %c0_76, %c0_77] : memref<1x128x512xbf16, #tpu.memory_space<vmem>>, vector<1x128x512xbf16>
    %256 = vector.shape_cast %255 : vector<1x128x512xbf16> to vector<128x512xbf16>
    %cst_78 = arith.constant dense<0.000000e+00> : vector<32x512xf32>
    %257 = tpu.matmul %254, %256, %cst_78 {dimension_numbers = #tpu.dot_dimension_numbers<[1], [0], [0], [1], [0, 0, 1, 1], [], []>} : vector<32x128xbf16>, vector<128x512xbf16>, vector<32x512xf32> -> vector<32x512xf32>
    %c0_79 = arith.constant 0 : index
    %c0_80 = arith.constant 0 : index
    %c0_81 = arith.constant 0 : index
    %258 = vector.load %arg14[%c0_79, %c0_80, %c0_81] : memref<1x1x512xf32, #tpu.memory_space<vmem>>, vector<1x1x512xf32>
    %259 = vector.shape_cast %258 : vector<1x1x512xf32> to vector<1x512xf32>
    %260 = vector.broadcast %259 : vector<1x512xf32> to vector<32x512xf32>
    %261 = arith.addf %257, %260 : vector<32x512xf32>
    %cst_82 = arith.constant 0.000000e+00 : f32
    %262 = vector.broadcast %cst_82 : f32 to vector<32x512xf32>
    %263 = arith.maximumf %261, %262 : vector<32x512xf32>
    %264 = arith.truncf %263 : vector<32x512xf32> to vector<32x512xbf16>
    %c0_83 = arith.constant 0 : index
    %c0_84 = arith.constant 0 : index
    %c0_85 = arith.constant 0 : index
    %265 = vector.load %arg15[%c0_83, %c0_84, %c0_85] : memref<1x512x128xbf16, #tpu.memory_space<vmem>>, vector<1x512x128xbf16>
    %266 = vector.shape_cast %265 : vector<1x512x128xbf16> to vector<512x128xbf16>
    %cst_86 = arith.constant dense<0.000000e+00> : vector<32x128xf32>
    %267 = tpu.matmul %264, %266, %cst_86 {dimension_numbers = #tpu.dot_dimension_numbers<[1], [0], [0], [1], [0, 0, 1, 1], [], []>} : vector<32x512xbf16>, vector<512x128xbf16>, vector<32x128xf32> -> vector<32x128xf32>
    %c0_87 = arith.constant 0 : index
    %c0_88 = arith.constant 0 : index
    %c0_89 = arith.constant 0 : index
    %268 = vector.load %arg16[%c0_87, %c0_88, %c0_89] : memref<1x1x128xf32, #tpu.memory_space<vmem>>, vector<1x1x128xf32>
    %269 = vector.shape_cast %268 : vector<1x1x128xf32> to vector<1x128xf32>
    %270 = vector.broadcast %269 : vector<1x128xf32> to vector<32x128xf32>
    %271 = arith.addf %267, %270 : vector<32x128xf32>
    %272 = arith.addf %229, %271 : vector<32x128xf32>
    %c0_90 = arith.constant 0 : index
    %c0_91 = arith.constant 0 : index
    %273 = vector.load %arg20[%c0_90, %c0_91] : memref<32x128xf32, #tpu.memory_space<vmem>>, vector<32x128xf32>
    tpu.vector_store %arg20[%c0_90, %c0_91], %272 {strides = array<i32>} : memref<32x128xf32, #tpu.memory_space<vmem>>, vector<32x128xf32>,
    %c1_i32 = arith.constant 1 : i32
    %274 = arith.cmpi eq, %arg1, %c1_i32 : i32
    %275 = arith.extui %274 : i1 to i32
    %c0_i32_92 = arith.constant 0 : i32
    %276 = arith.cmpi ne, %275, %c0_i32_92 : i32
    scf.if %276 {
      %c0_93 = arith.constant 0 : index
      %c0_94 = arith.constant 0 : index
      %277 = vector.load %arg17[%c0_93, %c0_94] : memref<1x128xf32, #tpu.memory_space<vmem>>, vector<1x128xf32>
      %c0_95 = arith.constant 0 : index
      %c0_96 = arith.constant 0 : index
      %278 = vector.load %arg18[%c0_95, %c0_96] : memref<1x128xf32, #tpu.memory_space<vmem>>, vector<1x128xf32>
      %cst_97 = arith.constant dense<0.000000e+00> : vector<32xf32>
      %279 = vector.multi_reduction <add>, %272, %cst_97 [1] : vector<32x128xf32> to vector<32xf32>
      %280 = vector.shape_cast %279 : vector<32xf32> to vector<32x1xf32>
      %cst_98 = arith.constant 1.280000e+02 : f32
      %281 = vector.broadcast %cst_98 : f32 to vector<32x1xf32>
      %282 = arith.divf %280, %281 : vector<32x1xf32>
      %283 = vector.broadcast %282 : vector<32x1xf32> to vector<32x128xf32>
      %284 = arith.subf %272, %283 : vector<32x128xf32>
      %285 = arith.mulf %284, %284 : vector<32x128xf32>
      %cst_99 = arith.constant dense<0.000000e+00> : vector<32xf32>
      %286 = vector.multi_reduction <add>, %285, %cst_99 [1] : vector<32x128xf32> to vector<32xf32>
      %287 = vector.shape_cast %286 : vector<32xf32> to vector<32x1xf32>
      %cst_100 = arith.constant 1.280000e+02 : f32
      %288 = vector.broadcast %cst_100 : f32 to vector<32x1xf32>
      %289 = arith.divf %287, %288 : vector<32x1xf32>
      %cst_101 = arith.constant 9.99999974E-6 : f32
      %290 = vector.broadcast %cst_101 : f32 to vector<32x1xf32>
      %291 = arith.addf %289, %290 : vector<32x1xf32>
      %292 = math.rsqrt %291 : vector<32x1xf32>
      %293 = vector.broadcast %292 : vector<32x1xf32> to vector<32x128xf32>
      %294 = arith.mulf %284, %293 : vector<32x128xf32>
      %295 = vector.broadcast %277 : vector<1x128xf32> to vector<32x128xf32>
      %296 = arith.mulf %294, %295 : vector<32x128xf32>
      %297 = vector.broadcast %278 : vector<1x128xf32> to vector<32x128xf32>
      %298 = arith.addf %296, %297 : vector<32x128xf32>
      %c0_102 = arith.constant 0 : index
      %c0_103 = arith.constant 0 : index
      %299 = vector.load %arg19[%c0_102, %c0_103] : memref<32x128xf32, #tpu.memory_space<vmem>>, vector<32x128xf32>
      tpu.vector_store %arg19[%c0_102, %c0_103], %298 {strides = array<i32>} : memref<32x128xf32, #tpu.memory_space<vmem>>, vector<32x128xf32>,
    } else {
    }
    return
  }
  func.func @transform_0(%arg0: i32, %arg1: i32) -> (i32, i32) {
    %c0_i32 = arith.constant 0 : i32
    %c0_i32_0 = arith.constant 0 : i32
    return %arg0, %c0_i32 : i32, i32
  }
  func.func @transform_1(%arg0: i32, %arg1: i32) -> (i32, i32) {
    %c0_i32 = arith.constant 0 : i32
    %c0_i32_0 = arith.constant 0 : i32
    %c0_i32_1 = arith.constant 0 : i32
    return %c0_i32, %c0_i32_0 : i32, i32
  }
  func.func @transform_2(%arg0: i32, %arg1: i32) -> (i32, i32) {
    %c0_i32 = arith.constant 0 : i32
    %c0_i32_0 = arith.constant 0 : i32
    %c0_i32_1 = arith.constant 0 : i32
    return %c0_i32, %c0_i32_0 : i32, i32
  }
  func.func @transform_3(%arg0: i32, %arg1: i32) -> (i32, i32) {
    %c0_i32 = arith.constant 0 : i32
    %c0_i32_0 = arith.constant 0 : i32
    %c0_i32_1 = arith.constant 0 : i32
    return %c0_i32, %c0_i32_0 : i32, i32
  }
  func.func @transform_4(%arg0: i32, %arg1: i32) -> (i32, i32, i32) {
    %c0_i32 = arith.constant 0 : i32
    %c0_i32_0 = arith.constant 0 : i32
    %c0_i32_1 = arith.constant 0 : i32
    return %arg1, %c0_i32, %c0_i32_0 : i32, i32, i32
  }
  func.func @transform_5(%arg0: i32, %arg1: i32) -> (i32, i32, i32) {
    %c0_i32 = arith.constant 0 : i32
    %c0_i32_0 = arith.constant 0 : i32
    %c0_i32_1 = arith.constant 0 : i32
    return %arg1, %c0_i32, %c0_i32_0 : i32, i32, i32
  }
  func.func @transform_6(%arg0: i32, %arg1: i32) -> (i32, i32, i32) {
    %c0_i32 = arith.constant 0 : i32
    %c0_i32_0 = arith.constant 0 : i32
    %c0_i32_1 = arith.constant 0 : i32
    return %arg1, %c0_i32, %c0_i32_0 : i32, i32, i32
  }
  func.func @transform_7(%arg0: i32, %arg1: i32) -> (i32, i32, i32) {
    %c0_i32 = arith.constant 0 : i32
    %c0_i32_0 = arith.constant 0 : i32
    %c0_i32_1 = arith.constant 0 : i32
    return %arg1, %c0_i32, %c0_i32_0 : i32, i32, i32
  }
  func.func @transform_8(%arg0: i32, %arg1: i32) -> (i32, i32, i32) {
    %c0_i32 = arith.constant 0 : i32
    %c0_i32_0 = arith.constant 0 : i32
    %c0_i32_1 = arith.constant 0 : i32
    return %arg1, %c0_i32, %c0_i32_0 : i32, i32, i32
  }
  func.func @transform_9(%arg0: i32, %arg1: i32) -> (i32, i32, i32) {
    %c0_i32 = arith.constant 0 : i32
    %c0_i32_0 = arith.constant 0 : i32
    %c0_i32_1 = arith.constant 0 : i32
    return %arg1, %c0_i32, %c0_i32_0 : i32, i32, i32
  }
  func.func @transform_10(%arg0: i32, %arg1: i32) -> (i32, i32, i32) {
    %c0_i32 = arith.constant 0 : i32
    %c0_i32_0 = arith.constant 0 : i32
    %c0_i32_1 = arith.constant 0 : i32
    return %arg1, %c0_i32, %c0_i32_0 : i32, i32, i32
  }
  func.func @transform_11(%arg0: i32, %arg1: i32) -> (i32, i32, i32) {
    %c0_i32 = arith.constant 0 : i32
    %c0_i32_0 = arith.constant 0 : i32
    %c0_i32_1 = arith.constant 0 : i32
    return %arg1, %c0_i32, %c0_i32_0 : i32, i32, i32
  }
  func.func @transform_12(%arg0: i32, %arg1: i32) -> (i32, i32, i32) {
    %c0_i32 = arith.constant 0 : i32
    %c0_i32_0 = arith.constant 0 : i32
    %c0_i32_1 = arith.constant 0 : i32
    return %arg1, %c0_i32, %c0_i32_0 : i32, i32, i32
  }
  func.func @transform_13(%arg0: i32, %arg1: i32) -> (i32, i32, i32) {
    %c0_i32 = arith.constant 0 : i32
    %c0_i32_0 = arith.constant 0 : i32
    %c0_i32_1 = arith.constant 0 : i32
    return %arg1, %c0_i32, %c0_i32_0 : i32, i32, i32
  }
  func.func @transform_14(%arg0: i32, %arg1: i32) -> (i32, i32, i32) {
    %c0_i32 = arith.constant 0 : i32
    %c0_i32_0 = arith.constant 0 : i32
    %c0_i32_1 = arith.constant 0 : i32
    return %arg1, %c0_i32, %c0_i32_0 : i32, i32, i32
  }
  func.func @transform_15(%arg0: i32, %arg1: i32) -> (i32, i32) {
    %c0_i32 = arith.constant 0 : i32
    %c0_i32_0 = arith.constant 0 : i32
    %c0_i32_1 = arith.constant 0 : i32
    return %c0_i32, %c0_i32_0 : i32, i32
  }
  func.func @transform_16(%arg0: i32, %arg1: i32) -> (i32, i32) {
    %c0_i32 = arith.constant 0 : i32
    %c0_i32_0 = arith.constant 0 : i32
    %c0_i32_1 = arith.constant 0 : i32
    return %c0_i32, %c0_i32_0 : i32, i32
  }
  func.func @transform_17(%arg0: i32, %arg1: i32) -> (i32, i32) {
    %c0_i32 = arith.constant 0 : i32
    %c0_i32_0 = arith.constant 0 : i32
    return %arg0, %c0_i32 : i32, i32
  }
}

module attributes {stable_mosaic.version = 11 : i64} {
  func.func @lm_head_kernel(%arg0: i32, %arg1: i32, %arg2: memref<32x128xf32, #tpu.memory_space<vmem>>, %arg3: memref<128x128xbf16, #tpu.memory_space<vmem>>, %arg4: memref<1x128xf32, #tpu.memory_space<vmem>>, %arg5: memref<32x128xf32, #tpu.memory_space<vmem>>) attributes {dimension_semantics = [#tpu.dimension_semantics<parallel>, #tpu.dimension_semantics<parallel>], iteration_bounds = array<i64: 1, 2>, scalar_prefetch = 0 : i64, scratch_operands = 0 : i64, tpu.core_type = #tpu.core_type<tc>, window_params = [{transform_indices = @transform_0, window_bounds = array<i64: 32, 128>}, {transform_indices = @transform_1, window_bounds = array<i64: 128, 128>}, {transform_indices = @transform_2, window_bounds = array<i64: 1, 128>}, {transform_indices = @transform_3, window_bounds = array<i64: 32, 128>}]} {
    %c0 = arith.constant 0 : index
    %c0_0 = arith.constant 0 : index
    %0 = vector.load %arg2[%c0, %c0_0] : memref<32x128xf32, #tpu.memory_space<vmem>>, vector<32x128xf32>
    %1 = arith.truncf %0 : vector<32x128xf32> to vector<32x128xbf16>
    %c0_1 = arith.constant 0 : index
    %c0_2 = arith.constant 0 : index
    %2 = vector.load %arg3[%c0_1, %c0_2] : memref<128x128xbf16, #tpu.memory_space<vmem>>, vector<128x128xbf16>
    %cst = arith.constant dense<0.000000e+00> : vector<32x128xf32>
    %3 = tpu.matmul %1, %2, %cst {dimension_numbers = #tpu.dot_dimension_numbers<[1], [0], [0], [1], [0, 0, 1, 1], [], []>} : vector<32x128xbf16>, vector<128x128xbf16>, vector<32x128xf32> -> vector<32x128xf32>
    %c0_3 = arith.constant 0 : index
    %c0_4 = arith.constant 0 : index
    %4 = vector.load %arg4[%c0_3, %c0_4] : memref<1x128xf32, #tpu.memory_space<vmem>>, vector<1x128xf32>
    %5 = vector.broadcast %4 : vector<1x128xf32> to vector<32x128xf32>
    %6 = arith.addf %3, %5 : vector<32x128xf32>
    %c0_5 = arith.constant 0 : index
    %c0_6 = arith.constant 0 : index
    %7 = vector.load %arg5[%c0_5, %c0_6] : memref<32x128xf32, #tpu.memory_space<vmem>>, vector<32x128xf32>
    tpu.vector_store %arg5[%c0_5, %c0_6], %6 {strides = array<i32>} : memref<32x128xf32, #tpu.memory_space<vmem>>, vector<32x128xf32>,
    return
  }
  func.func @transform_0(%arg0: i32, %arg1: i32) -> (i32, i32) {
    %c0_i32 = arith.constant 0 : i32
    %c0_i32_0 = arith.constant 0 : i32
    return %arg0, %c0_i32 : i32, i32
  }
  func.func @transform_1(%arg0: i32, %arg1: i32) -> (i32, i32) {
    %c0_i32 = arith.constant 0 : i32
    %c0_i32_0 = arith.constant 0 : i32
    return %c0_i32, %arg1 : i32, i32
  }
  func.func @transform_2(%arg0: i32, %arg1: i32) -> (i32, i32) {
    %c0_i32 = arith.constant 0 : i32
    %c0_i32_0 = arith.constant 0 : i32
    return %c0_i32, %arg1 : i32, i32
  }
  func.func @transform_3(%arg0: i32, %arg1: i32) -> (i32, i32) {
    %c0_i32 = arith.constant 0 : i32
    return %arg0, %arg1 : i32, i32
  }
}

</mosaic_0001>

<bundles_post_ra>
// kernel: gpt_forward.3
= control target key start
LH: loop header
LB: loop body
LE: loop exit
PB: predicated region body
PF: predicated region fallthrough
CT: control target
= control target key end

     0   :  { %8 = vsyncpa [#allocation4], 0  ;;  %s914_s0 = inlined_call_operand.vmem [shape: f32[32,128], index: 0, kind: input, shape index: {}]   ;;  %s915_s1 = inlined_call_operand.vmem [shape: bf16[128,256], index: 1, kind: input, shape index: {}]   ;;  %s916_s2 = inlined_call_operand.vmem [shape: f32[1,256], index: 2, kind: input, shape index: {}]   ;;  %s917_s3 = inlined_call_operand.hbm [shape: f32[32,256], index: 3, kind: output, shape index: {}]  }
   0x1   :  { %10 = vsyncpa [#allocation4 + $0x1], 0  ;;  %s764_s12 = smov 0   ;;  %s766_s13 = smov 0  }
   0x2   :  { %s768_s14 = smov 0   ;;  %s770_s15 = smov 0  }
   0x3   :  { %s772_s16 = smov 0   ;;  %s774_s17 = smov 0  }
   0x4 LB: > { %s540_s18 = sadd.s32 4294967295, %s739_s17   ;;  %s541_s19 = sadd.s32 4294967294, %s739_s17   ;;  %s739_s17 = sphi %s774_s17, %s16_s17   ;;  %s735_s16 = sphi %s772_s16, %s924_s16   ;;  %s731_s15 = sphi %s770_s15, %s923_s15   ;;  %s727_s14 = sphi %s768_s14, %s922_s14   ;;  %s723_s13 = sphi %s766_s13, %s921_s13   ;;  %s719_s12 = sphi %s764_s12, %s920_s12  }
   0x5   : > { %s25_s20 = sadd.s32 1, %s735_s16  ;;  %s61_s21 = sadd.s32 1, %s727_s14 }
   0x6   : > { %p26_p0 = scmp.ge.s32.totalorder %s25_s20, 2  ;;  %p68_p1 = scmp.ne.s32.totalorder %s727_s14, %s723_s13 }
   0x7   : > { %p69_p2 = scmp.eq.s32.totalorder %s739_s17, 0  ;;  %p126_p3 = scmp.eq.s32.totalorder %s540_s18, 1 }
   0x8   : > { %s926_s20 = smov (%p26_p0, %s25_s20), 0  ;;  %p131_p6 = scmp.ne.s32.totalorder %s723_s13, %s719_s12 }
   0x9   : > { %p70_p4 = por %p69_p2, %p68_p1  ;;  %p803_p5 = por %p126_p3, %p68_p1 }
   0xa   : > { %s58_s23 = ssub.s32 %s735_s16, %s926_s20  ;;  %p132_p8 = scmp.eq.s32.totalorder %s541_s19, 1 }
   0xb   : > { %p59_p7 = scmp.eq.s32.totalorder %s58_s23, 0  ;;  %p544_p10 = scmp.ge.s32.totalorder %s739_s17, 2 }
   0xc   : > { %p814_p9 = por %p132_p8, %p131_p6 }
   0xd   : > { %s812_s24 = scalar_select %p59_p7, %s727_s14, %s61_s21  }
   0xe   : > { %157 = sbr.rel (%p544_p10) target bundleno = 39 (0x27), region = 20 }
  0x13   : > { %160 = sbr.rel (!%p70_p4) target bundleno = 39 (0x27), region = 24  ;;  %s162_s26 = sand.u32 (%p70_p4), 1, %s727_s14  }
  0x14   : > { %s546_s27 = sshll.u32 (%p70_p4), %s735_s16, 2  ;;  %s545_s28 = sshll.u32 (%p70_p4), %s162_s26, 6 }
  0x15   : > { %s826_s4 = scalar_lea.vmem (%p70_p4), %s915_s1, %s546_s27  ;;  %s164_s5 = scalar_lea.vmem (%p70_p4), [#allocation2], %s545_s28 }
  0x16   : > { %v183_v0 = vld [vmem:[%s826_s4] sm:$0xf] (%p70_p4)  ;;  %v185_v1 = vld [vmem:[%s826_s4 + $0x8] sm:$0xf] (%p70_p4)  ;;  %v187_v2 = vld [vmem:[%s826_s4 + $0x10] sm:$0xf] (%p70_p4) }
  0x17   : > { %184 = vst [vmem:[%s164_s5] sm:$0xf] (%p70_p4), %v183_v0  ;;  %v189_v3 = vld [vmem:[%s826_s4 + $0x18] sm:$0xf] (%p70_p4)  ;;  %v191_v4 = vld [vmem:[%s826_s4 + $0x20] sm:$0xf] (%p70_p4) }
  0x18   : > { %186 = vst [vmem:[%s164_s5 + $0x4] sm:$0xf] %v185_v1  ;;  %v193_v5 = vld [vmem:[%s826_s4 + $0x28] sm:$0xf]  ;;  %v195_v6 = vld [vmem:[%s826_s4 + $0x30] sm:$0xf] }
  0x19   : > { %188 = vst [vmem:[%s164_s5 + $0x8] sm:$0xf] %v187_v2  ;;  %v197_v7 = vld [vmem:[%s826_s4 + $0x38] sm:$0xf]  ;;  %v199_v8 = vld [vmem:[%s826_s4 + $0x40] sm:$0xf] }
  0x1a   : > { %190 = vst [vmem:[%s164_s5 + $0xc] sm:$0xf] %v189_v3  ;;  %v201_v9 = vld [vmem:[%s826_s4 + $0x48] sm:$0xf]  ;;  %v203_v10 = vld [vmem:[%s826_s4 + $0x50] sm:$0xf] }
  0x1b   : > { %192 = vst [vmem:[%s164_s5 + $0x10] sm:$0xf] %v191_v4  ;;  %v205_v11 = vld [vmem:[%s826_s4 + $0x58] sm:$0xf]  ;;  %v207_v12 = vld [vmem:[%s826_s4 + $0x60] sm:$0xf] }
  0x1c   : > { %194 = vst [vmem:[%s164_s5 + $0x14] sm:$0xf] %v193_v5  ;;  %v209_v13 = vld [vmem:[%s826_s4 + $0x68] sm:$0xf]  ;;  %v211_v14 = vld [vmem:[%s826_s4 + $0x70] sm:$0xf] }
  0x1d   : > { %196 = vst [vmem:[%s164_s5 + $0x18] sm:$0xf] %v195_v6  ;;  %v213_v15 = vld [vmem:[%s826_s4 + $0x78] sm:$0xf] }
  0x1e   : > { %198 = vst [vmem:[%s164_s5 + $0x1c] sm:$0xf] %v197_v7 }
  0x1f   : > { %200 = vst [vmem:[%s164_s5 + $0x20] sm:$0xf] %v199_v8 }
  0x20   : > { %202 = vst [vmem:[%s164_s5 + $0x24] sm:$0xf] %v201_v9 }
  0x21   : > { %204 = vst [vmem:[%s164_s5 + $0x28] sm:$0xf] %v203_v10 }
  0x22   : > { %206 = vst [vmem:[%s164_s5 + $0x2c] sm:$0xf] %v205_v11 }
  0x23   : > { %208 = vst [vmem:[%s164_s5 + $0x30] sm:$0xf] %v207_v12 }
  0x24   : > { %210 = vst [vmem:[%s164_s5 + $0x34] sm:$0xf] %v209_v13 }
  0x25   : > { %212 = vst [vmem:[%s164_s5 + $0x38] sm:$0xf] %v211_v14 }
  0x26   : > { %214 = vst [vmem:[%s164_s5 + $0x3c] sm:$0xf] %v213_v15 }
  0x27 PF: > { %p547_p11 = scmp.ge.s32.totalorder %s739_s17, 1  ;;  %p275_p12 = scmp.lt.s32.totalorder %s739_s17, 3 }
  0x29   : > { %p276_p13 = pnand %p547_p11, %p275_p12 }
  0x2a   : > { %s847_s6 = sand.u32 (!%p276_p13), 1, %s723_s13   ;;  %p319_p0 = scmp.lt.s32.totalorder (!%p276_p13), %s731_s15, 1 }
  0x2b   : > { %279 = sbr.rel (%p276_p13) target bundleno = 222 (0xde), region = 69  ;;  %s548_s7 = sshll.u32 (!%p276_p13), %s847_s6, 6 }
  0x2c   : > { %s284_s8 = scalar_lea.vmem (!%p276_p13), [#allocation2], %s548_s7  ;;  %s549_s4 = sshll.u32 (!%p276_p13), %s847_s6, 5 }
  0x2d   : > { %s312_s10 = scalar_lea.vmem (!%p276_p13), [#allocation3], %s549_s4  ;;  %s681_s29 = scalar_lea.hbm (!%p276_p13), %s917_s3, 64 }
  0x2e   : > { %s435_s23 = sshll.u32 (!%p276_p13), %s312_s10, 4  ;;  %s436_s23 = int_to_ptr.vmem [resolvable:$true] %s435_s23 }
  0x30   : > { %v593_v16 = vld [vmem:[%s284_s8 + $0x38] sm:$0xff]  ;;  %s852_s9 = scalar_select %p319_p0, %s731_s15, 1  ;;  %v592_v17 = vld [vmem:[%s284_s8 + $0x30] sm:$0xff]  ;;  %v591_v18 = vld [vmem:[%s284_s8 + $0x28] sm:$0xff] }
  0x31   : > { %397 = vmatpush.bf16.msra.mxu0 %v593_v16  ;;  %594 = vmatpush.bf16.msra.mxu1 %v593_v16  ;;  %v590_v19 = vld [vmem:[%s284_s8 + $0x20] sm:$0xff]  ;;  %v589_v20 = vld [vmem:[%s284_s8 + $0x18] sm:$0xff]  ;;  %v588_v21 = vld [vmem:[%s284_s8 + $0x10] sm:$0xff] }
  0x32   : > { %s321_s18 = scalar_lea.vmem %s916_s2, %s852_s9  ;;  %v587_v22 = vld [vmem:[%s284_s8 + $0x8] sm:$0xff]  ;;  %v323_v23 = vld [vmem:[%s914_s0] sm:$0xff]  ;;  %v325_v26 = vld [vmem:[%s914_s0 + $0x10] sm:$0xff] }
  0x33   : > { %v324_v24 = vld [vmem:[%s914_s0 + $0x8] sm:$0xff]  ;;  %v586_v25 = vld [vmem:[%s284_s8] sm:$0xff]  ;;  %v326_v27 = vld [vmem:[%s914_s0 + $0x18] sm:$0xff]  ;;  %s583_s8 = sshll.u32 %s731_s15, 3  ;;  %s421_s15 = scalar_lea.sflag [#allocation4], %s847_s6 }
  0x34   : > { %v327_v28 = vpack.c.bf16 %v324_v24, %v323_v23  ;;  %v328_v29 = vpack.c.bf16 %v326_v27, %v325_v26  ;;  %v660_v30 = vld [vmem:[%s321_s18] ss:$0 sm:$0xff]  ;;  %s434_s21 = scalar_lea.hbm %s917_s3, %s583_s8 }
  0x35   : > { %398 = vmatpush.bf16.msra.mxu0 %v592_v17  ;;  %595 = vmatpush.bf16.msra.mxu1 %v592_v17  ;;  %s437_s26 = sshll.u32 %s434_s21, 4  ;;  %s438_s26 = int_to_ptr.hbm [resolvable:$true] %s437_s26 }
  0x36   : > { %s675_s9 = sshra.s32 %s438_s26, 4  ;;  %s676_s9 = int_to_ptr.hbm [resolvable:$true] %s675_s9 }
  0x37   : > { %s677_s18 = scalar_lea.hbm %s676_s9, 32  ;;  %p682_p4 = scmp.lt.s32.totalorder %s676_s9, %s917_s3 }
  0x38   : > { %p678_p1 = scmp.ne.s32.totalorder %s676_s9, %s677_s18  ;;  %p683_p6 = scmp.lt.s32.totalorder %s681_s29, %s677_s18 }
  0x39   : > { %399 = vmatpush.bf16.msra.mxu0 %v591_v18  ;;  %596 = vmatpush.bf16.msra.mxu1 %v591_v18 }
  0x3a   : > { %p679_p2 = pnand %p678_p1, %p803_p5  ;;  %p684_p7 = por %p683_p6, %p682_p4 }
  0x3c   : > { %p680_p3 = pneg %p679_p2 }
  0x3d   : > { %400 = vmatpush.bf16.msra.mxu0 %v590_v19  ;;  %597 = vmatpush.bf16.msra.mxu1 %v590_v19 }
  0x3e   : > { %p685_p8 = pnand %p684_p7, %p680_p3 }
  0x41   : > { %401 = vmatpush.bf16.msra.mxu0 %v589_v20  ;;  %598 = vmatpush.bf16.msra.mxu1 %v589_v20 }
  0x45   : > { %402 = vmatpush.bf16.msra.mxu0 %v588_v21  ;;  %599 = vmatpush.bf16.msra.mxu1 %v588_v21 }
  0x49   : > { %403 = vmatpush.bf16.msra.mxu0 %v587_v22  ;;  %600 = vmatpush.bf16.msra.mxu1 %v587_v22 }
  0x4d   : > { %404 = vmatpush.bf16.msra.mxu0 %v586_v25  ;;  %601 = vmatpush.bf16.msra.mxu1 %v586_v25 }
  0x50   : > { %405 = vmatmul.bf16.vlgmr.msra.gmra.mxu0 %v327_v28  ;;  %410 = vmatmul.bf16.vlgmr.msra.gmra.mxu1 %v328_v29 }
  0xcd   : > { %v406_v31 = vpop.f32.mrf.mxu0  ;;  %v411_v32 = vpop.f32.mrf.mxu1 }
  0xce   : > { %v407_v33 = vadd.f32 %v660_v30, %v406_v31  ;;  %v412_v34 = vadd.f32 %v660_v30, %v411_v32 }
  0xd0   : > { %416 = vst [vmem:[%s312_s10] sm:$0xff] %v407_v33 }
  0xd1   : > { %418 = vst [vmem:[%s312_s10 + $0x10] sm:$0xff] %v412_v34 }
  0xd5   : > { %v408_v35 = vpop.f32.mrf.mxu0  ;;  %v413_v36 = vpop.f32.mrf.mxu1 }
  0xd6   : > { %v409_v37 = vadd.f32 %v660_v30, %v408_v35  ;;  %v414_v38 = vadd.f32 %v660_v30, %v413_v36 }
  0xd8   : > { %417 = vst [vmem:[%s312_s10 + $0x8] sm:$0xff] %v409_v37 }
  0xd9   : > { %419 = vst [vmem:[%s312_s10 + $0x18] sm:$0xff] %v414_v38 }
  0xda   : > { %688 = shalt.err (!%p685_p8)
}
  0xdb   : > { %s741_s6 = smov 128   ;;  %s742_s5 = smov 256  }
  0xdc   : > { %s743_s7 = smov 8  }
  0xdd   : > { %602 = dma.vmem_to_hbm [thread:$0]  (%p803_p5), %s436_s23, 512, %s438_s26, %s421_s15, %s741_s6, %s742_s5, %s743_s7  }
  0xde PF: > { %s452_s8 = sand.u32 1, %s719_s12   ;;  %p605_p11 = pnand %p544_p10, %p814_p9 }
  0xdf   : > { %s453_s10 = scalar_lea.sflag [#allocation4], %s452_s8 }
  0xe0   : > { %p606_p12 = pneg %p605_p11 }
  0xe2   : > { %714 = dma.done.wait (%p606_p12), %s453_s10, 512  }
  0xe3   : > { %716 = vsyncadd (%p606_p12), %s453_s10, 4294966784  ;;  %s16_s17 = sadd.s32 1, %s739_s17   ;;  %s920_s12 = smov %s723_s13 }
  0xe4   : > { %p13_p13 = scmp.ge.s32.totalorder %s16_s17, 4   ;;  %s921_s13 = smov %s727_s14 }
  0xe5   : > { %s922_s14 = smov %s812_s24  ;;  %s923_s15 = smov %s735_s16 }
  0xe6   : > { %s924_s16 = smov %s926_s20  ;;  %15 = sbr.rel (!%p13_p13) target bundleno = 4 (0x4), region = 119 }
  0xeb   :  { %459 = vsyncpa [#allocation4], 1 }
  0xec   :  { %461 = vsyncpa [#allocation4 + $0x1], 1 }

// kernel: gpt_forward.2
= control target key start
LH: loop header
LB: loop body
LE: loop exit
PB: predicated region body
PF: predicated region fallthrough
CT: control target
= control target key end

     0   :  { %s5686_s0 = inlined_call_operand.vmem [shape: f32[32,128], index: 0, kind: input, shape index: {}]   ;;  %s5687_s1 = inlined_call_operand.vmem [shape: f32[16,128], index: 1, kind: input, shape index: {}]   ;;  %s5688_s2 = inlined_call_operand.vmem [shape: f32[16,128], index: 2, kind: input, shape index: {}]   ;;  %s5689_s3 = inlined_call_operand.vmem [shape: f32[16,16], index: 3, kind: input, shape index: {}]   ;;  %s5690_s4 = inlined_call_operand.vmem [shape: f32[2,1,128], index: 4, kind: input, shape index: {}]   ;;  %s5691_s5 = inlined_call_operand.vmem [shape: f32[2,1,128], index: 5, kind: input, shape index: {}]   ;;  %s5692_s6 = inlined_call_operand.hbm [shape: bf16[2,128,384], index: 6, kind: input, shape index: {}]   ;;  %s5693_s7 = inlined_call_operand.vmem [shape: bf16[2,128,128], index: 7, kind: input, shape index: {}]   ;;  %s5694_s8 = inlined_call_operand.vmem [shape: f32[2,1,128], index: 8, kind: input, shape index: {}]   ;;  %s5695_s9 = inlined_call_operand.vmem [shape: f32[2,1,128], index: 9, kind: input, shape index: {}]   ;;  %s5696_s10 = inlined_call_operand.vmem [shape: f32[2,1,128], index: 10, kind: input, shape index: {}]   ;;  %s5697_s11 = inlined_call_operand.hbm [shape: bf16[2,128,512], index: 11, kind: input, shape index: {}]   ;;  %s5698_s12 = inlined_call_operand.vmem [shape: f32[2,1,512], index: 12, kind: input, shape index: {}]   ;;  %s5699_s13 = inlined_call_operand.hbm [shape: bf16[2,512,128], index: 13, kind: input, shape index: {}]   ;;  %s5700_s14 = inlined_call_operand.vmem [shape: f32[2,1,128], index: 14, kind: input, shape index: {}]   ;;  %s5701_s15 = inlined_call_operand.vmem [shape: f32[1,128], index: 15, kind: input, shape index: {}]   ;;  %s5702_s16 = inlined_call_operand.vmem [shape: f32[1,128], index: 16, kind: input, shape index: {}]   ;;  %s5703_s17 = inlined_call_operand.vmem [shape: f32[32,128], index: 17, kind: output, shape index: {}]  }
   0x1   :  { %5713 = sst [smem:[#allocation14_spill]] %s5686_s0 }
   0x2   :  { %5714 = sst [smem:[#allocation15_spill]] %s5687_s1 }
   0x3   :  { %5715 = sst [smem:[#allocation16_spill]] %s5688_s2 }
   0x4   :  { %5716 = sst [smem:[#allocation17_spill]] %s5689_s3 }
   0x5   :  { %5717 = sst [smem:[#allocation18_spill]] %s5692_s6 }
   0x6   :  { %5718 = sst [smem:[#allocation19_spill]] %s5697_s11 }
   0x7   :  { %5719 = sst [smem:[#allocation20_spill]] %s5698_s12 }
   0x8   :  { %5720 = sst [smem:[#allocation21_spill]] %s5699_s13 }
   0x9   :  { %5721 = sst [smem:[#allocation22_spill]] %s5700_s14 }
   0xa   :  { %5722 = sst [smem:[#allocation23_spill]] %s5701_s15 }
   0xb   :  { %5723 = sst [smem:[#allocation24_spill]] %s5702_s16 }
   0xc   :  { %5724 = sst [smem:[#allocation25_spill]] %s5703_s17 }
   0xd   :  { %22 = vsyncpa [#allocation4], 0 }
   0xe   :  { %24 = vsyncpa [#allocation4 + $0x1], 0 }
   0xf   :  { %25 = vsyncpa [#allocation6], 0 }
  0x10   :  { %27 = vsyncpa [#allocation6 + $0x1], 0  ;;  %s4574_s24 = smov 0   ;;  %s4576_s25 = smov 0  }
  0x11   :  { %s4578_s26 = smov 0   ;;  %s4580_s27 = smov 0  }
  0x12   :  { %s4582_s28 = smov 0   ;;  %s4584_s29 = smov 0  }
  0x13 LB: > { %5725 = sst [smem:[#allocation10_spill]] %s4457_s26  ;;  %s5707_s0 = sadd.s32 4294967295, %s4469_s29   ;;  %s4469_s29 = sphi %s4584_s29, %s33_s29   ;;  %s4465_s28 = sphi %s4582_s28, %s5758_s28   ;;  %s4461_s27 = sphi %s4580_s27, %s5757_s27   ;;  %s4457_s26 = sphi %s4578_s26, %s5756_s26   ;;  %s4453_s25 = sphi %s4576_s25, %s5760_s25   ;;  %s4449_s24 = sphi %s4574_s24, %s5759_s24  }
  0x14   : > { %5726 = sst [smem:[#allocation11_spill]] %s4465_s28  ;;  %s42_s30 = sadd.s32 1, %s4465_s28 }
  0x15   : > { %p43_p0 = scmp.ge.s32.totalorder %s42_s30, 2  ;;  %s193_s18 = sadd.s32 1, %s4457_s26 }
  0x16   : > { %p200_p1 = scmp.ne.s32.totalorder %s4457_s26, %s4453_s25  ;;  %p201_p2 = scmp.eq.s32.totalorder %s4469_s29, 0 }
  0x17   : > { %s5762_s30 = smov (%p43_p0, %s42_s30), 0  ;;  %p206_p4 = scmp.ne.s32.totalorder %s4453_s25, %s4449_s24 }
  0x18   : > { %5727 = sst [smem:[#allocation12_spill]] %s5762_s30  ;;  %p202_p3 = por %p201_p2, %p200_p1 }
  0x19   : > { %s190_s19 = ssub.s32 %s4465_s28, %s5762_s30  ;;  %p207_p5 = scmp.eq.s32.totalorder %s5707_s0, 0 }
  0x1a   : > { %p191_p6 = scmp.eq.s32.totalorder %s190_s19, 0  ;;  %p4101_p8 = scmp.lt.s32.totalorder %s4469_s29, 2 }
  0x1b   : > { %p4615_p7 = por %p207_p5, %p206_p4  ;;  %s4624_s21 = sand.u32 1, %s4457_s26  }
  0x1c   : > { %s4621_s20 = scalar_select %p191_p6, %s4457_s26, %s193_s18  }
  0x1d   : > { %p4626_p9 = pnand %p4101_p8, %p202_p3  ;;  %s590_s23 = sand.u32 1, %s4469_s29  }
  0x1e   : > { %5729 = sst [smem:[#allocation13_spill]] %s4621_s20  ;;  %s3531_s24 = sshll.u32 %s4624_s21, 8 }
  0x1f   : > { %s3981_s30 = sshll.u32 %s4465_s28, 8  ;;  %s5731_s11 = sld [smem:[#allocation19_spill]] }
  0x20   : > { %s594_s16 = scalar_lea.vmem [#allocation5], %s3531_s24  ;;  %s4636_s26 = scalar_lea.sflag [#allocation6], %s590_s23 }
  0x21   : > { %s602_s18 = sshll.u32 %s594_s16, 4  ;;  %s4471_s15 = smov 256   ;;  %s603_s18 = int_to_ptr.vmem [resolvable:$true] %s602_s18 }
  0x22   : > { %s4472_s3 = smov 16   ;;  %s5732_s13 = sld [smem:[#allocation21_spill]] }
  0x23   : > { %s623_s19 = scalar_lea.vmem [#allocation7], %s3531_s24  ;;  %p3537_p10 = scmp.ge.s32.totalorder %s4469_s29, 1 }
  0x24   : > { %p645_p11 = scmp.lt.s32.totalorder %s4469_s29, 3  ;;  %s5734_s6 = sld [smem:[#allocation18_spill]] }
  0x25   : > { %s599_s17 = scalar_lea.hbm %s5731_s11, %s3981_s30  ;;  %s631_s11 = sshll.u32 %s623_s19, 4  ;;  %s632_s11 = int_to_ptr.vmem [resolvable:$true] %s631_s11 }
  0x26   : > { %s600_s20 = sshll.u32 %s599_s17, 4  ;;  %p4646_p12 = pnand %p3537_p10, %p645_p11  ;;  %s601_s20 = int_to_ptr.hbm [resolvable:$true] %s600_s20 }
  0x27   : > { %4097 = dma.hbm_to_vmem [thread:$0]  (!%p4626_p9), %s601_s20, 4096, %s603_s18, %s4636_s26, %s4471_s15, %s4471_s15, %s4472_s3  }
  0x28   : > { %s628_s0 = scalar_lea.hbm %s5732_s13, %s3981_s30  ;;  %s4082_s3 = smul.u32 192, %s4624_s21 }
  0x29   : > { %s629_s16 = sshll.u32 %s628_s0, 4  ;;  %s4083_s15 = smul.u32 192, %s4465_s28  ;;  %s630_s16 = int_to_ptr.hbm [resolvable:$true] %s629_s16 }
  0x2a   : > { %s546_s30 = scalar_lea.vmem [#allocation3], %s4082_s3  ;;  %s543_s18 = scalar_lea.sflag [#allocation4], %s4624_s21 }
  0x2b   : > { %s551_s14 = scalar_lea.hbm %s5734_s6, %s4083_s15  ;;  %s554_s23 = sshll.u32 %s546_s30, 4  ;;  %s555_s23 = int_to_ptr.vmem [resolvable:$true] %s554_s23 }
  0x2c   : > { %s552_s24 = sshll.u32 %s551_s14, 4  ;;  %s4473_s0 = smov 192   ;;  %s553_s24 = int_to_ptr.hbm [resolvable:$true] %s552_s24 }
  0x2d   : > { %s4474_s19 = smov 12   ;;  %s4475_s13 = smov 64  }
  0x2e   : > { %4094 = dma.hbm_to_vmem [thread:$0]  (!%p4626_p9), %s553_s24, 3072, %s555_s23, %s543_s18, %s4473_s0, %s4473_s0, %s4474_s19  }
  0x2f   : > { %s4476_s12 = smov 4   ;;  %649 = sbr.rel (%p4646_p12) target bundleno = 3114 (0xc2a), region = 88 }
  0x30   : > { %4100 = dma.hbm_to_vmem [thread:$0]  (!%p4626_p9), %s630_s16, 4096, %s632_s11, %s4636_s26, %s4475_s13, %s4475_s13, %s4476_s12  }
  0x31   : > { %s651_s15 = sand.u32 (!%p4646_p12), 1, %s4453_s25  }
  0x32   : > { %s4084_s3 = smul.u32 (!%p4646_p12), 192, %s651_s15  ;;  %s652_s20 = scalar_lea.sflag (!%p4646_p12), [#allocation4], %s651_s15 }
  0x34   : > { %s4664_s2 = scalar_lea.vmem [#allocation3], %s4084_s3 }
  0x35   : > { %4440 = dma.done.wait (%p4615_p7), %s652_s20, 3072  }
  0x36   : > { %4442 = vsyncadd (%p4615_p7), %s652_s20, 4294964224  ;;  %s5735_s21 = sadd.s32 4294967295, %s4469_s29   ;;  %s3538_s11 = sshll.u32 %s651_s15, 8 }
  0x37   : > { %s661_s22 = sand.u32 1, %s5735_s21   ;;  %s4672_s13 = scalar_lea.vmem [#allocation5], %s3538_s11 }
  0x38   : > { %s662_s12 = scalar_lea.sflag [#allocation6], %s661_s22 }
  0x39   : > { %4444 = dma.done.wait (%p4615_p7), %s662_s12, 8192  }
  0x3a   : > { %4446 = vsyncadd (%p4615_p7), %s662_s12, 4294959104  ;;  %p775_p13 = scmp.lt.s32.totalorder %s4461_s27, 1  ;;  %s5736_s6 = sld [smem:[#allocation20_spill]] }
  0x3b   : > { %s5737_s19 = sld [smem:[#allocation22_spill]]  ;;  %p3543_p0 = scmp.ne.s32.totalorder %s4461_s27, 0 }
  0x3c   : > { %s4680_s26 = scalar_select %p775_p13, %s4461_s27, 1 }
  0x3d   : > { %811 = sbr.rel (%p3543_p0) target bundleno = 72 (0x48), region = 104  ;;  %s5738_s22 = sld [smem:[#allocation14_spill]] (!%p3543_p0) }
  0x3e   : > { %s3983_s24 = sshll.u32 %s4680_s26, 6  ;;  %s791_s12 = scalar_lea.vmem %s5695_s9, %s4680_s26 }
  0x3f   : > { %s4698_s20 = scalar_lea.vmem %s5693_s7, %s3983_s24  ;;  %s794_s14 = scalar_lea.vmem %s5696_s10, %s4680_s26 }
  0x40   : > { %s3542_s30 = sshll.u32 %s4680_s26, 2  ;;  %s4718_s24 = scalar_lea.vmem [#allocation7], %s3538_s11 }
  0x41   : > { %s4712_s28 = scalar_lea.vmem %s5736_s6, %s3542_s30  ;;  %s801_s15 = scalar_lea.vmem %s5737_s19, %s4680_s26 }
  0x43   : > { %v812_v0 = vld [vmem:[%s5738_s22] sm:$0xff]  ;;  %v813_v1 = vld [vmem:[%s5738_s22 + $0x8] sm:$0xff]  ;;  %v814_v2 = vld [vmem:[%s5738_s22 + $0x10] sm:$0xff] }
  0x44   : > { %816 = vst [vmem:[#allocation2 + $0x10] sm:$0xff] %v812_v0  ;;  %v815_v3 = vld [vmem:[%s5738_s22 + $0x18] sm:$0xff] }
  0x45   : > { %817 = vst [vmem:[#allocation2] sm:$0xff] %v813_v1 }
  0x46   : > { %818 = vst [vmem:[#allocation2 + $0x18] sm:$0xff] %v814_v2 }
  0x47   : > { %819 = vst [vmem:[#allocation2 + $0x8] sm:$0xff] %v815_v3 }
  0x48 PF: > { %v4477_v6 = vmov 128.0   ;;  %v3630_v21 = vld [vmem:[%s4664_s2 + $0xa8] sm:$0xf]  ;;  %v4006_v22 = vld [vmem:[%s4664_s2 + $0xb0] sm:$0xf0]  ;;  %s5739_s1 = scalar_lea.vmem %s5690_s4, %s4680_s26  ;;  %s5740_s3 = scalar_lea.vmem %s5691_s5, %s4680_s26  ;;  %vm1193_vm7 = vcmask 261120  }
  0x49   : > { %4229 = vrcp.f32 %v4477_v6  ;;  %v4005_v23 = vld [vmem:[%s4664_s2 + $0xac] sm:$0xf]  ;;  %v3631_v24 = vor.u32 %v4006_v22, %v3630_v21  ;;  %v3632_v25 = vld [vmem:[%s4664_s2 + $0xb4] sm:$0xf0]  ;;  %v3638_v26 = vld [vmem:[%s4664_s2 + $0xb0] sm:$0xf] }
  0x4a   : > { %v4007_v27 = vld [vmem:[%s4664_s2 + $0xb8] sm:$0xf0]  ;;  %v3635_v28 = vor.u32 %v4005_v23, %v3632_v25  ;;  %v3618_v30 = vld [vmem:[%s4664_s2 + $0x90] sm:$0xf]  ;;  %v4002_v32 = vld [vmem:[%s4664_s2 + $0x94] sm:$0xf] }
  0x4b   : > { %v820_v4 = vld [vmem:[#allocation2 + $0x10] sm:$0xff]  ;;  %v3639_v29 = vor.u32 %v4007_v27, %v3638_v26  ;;  %1095 = vmatpush.bf16.msra.mxu0 %v3631_v24  ;;  %v4003_v31 = vld [vmem:[%s4664_s2 + $0x98] sm:$0xf0]  ;;  %v3620_v34 = vld [vmem:[%s4664_s2 + $0x9c] sm:$0xf0]  ;;  %s4478_s21 = smov 64  }
  0x4c   : > { %832 = vadd.xlane.f32.xlu0 %v820_v4  ;;  %v821_v5 = vld [vmem:[#allocation2] sm:$0xff]  ;;  %1114 = vmatpush.bf16.msra.mxu1 %v3635_v28  ;;  %v3619_v33 = vor.u32 %v4003_v31, %v3618_v30  ;;  %v3626_v35 = vld [vmem:[%s4664_s2 + $0x98] sm:$0xf]  ;;  %v3623_v37 = vor.u32 %v4002_v32, %v3620_v34  ;;  %v3999_v41 = vld [vmem:[%s4664_s2 + $0x7c] sm:$0xf]  ;;  %s5741_s23 = sld [smem:[#allocation15_spill]] }
  0x4d   : > { %1133 = vmatpush.bf16.msra.mxu2 %v3639_v29  ;;  %v4004_v36 = vld [vmem:[%s4664_s2 + $0xa0] sm:$0xf0]  ;;  %v3606_v39 = vld [vmem:[%s4664_s2 + $0x78] sm:$0xf]  ;;  %v3608_v43 = vld [vmem:[%s4664_s2 + $0x84] sm:$0xf0] }
  0x4e   : > { %v3627_v38 = vor.u32 %v4004_v36, %v3626_v35  ;;  %v4000_v40 = vld [vmem:[%s4664_s2 + $0x80] sm:$0xf0]  ;;  %v3614_v44 = vld [vmem:[%s4664_s2 + $0x80] sm:$0xf]  ;;  %v4001_v45 = vld [vmem:[%s4664_s2 + $0x88] sm:$0xf0]  ;;  %v3611_v46 = vor.u32 %v3999_v41, %v3608_v43 }
  0x4f   : > { %v4230_v7 = vpop.eup %4229  ;;  %1096 = vmatpush.bf16.msra.mxu0 %v3619_v33  ;;  %v3607_v42 = vor.u32 %v4000_v40, %v3606_v39  ;;  %v3615_v47 = vor.u32 %v4001_v45, %v3614_v44  ;;  %v3594_v48 = vld [vmem:[%s4664_s2 + $0x60] sm:$0xf]  ;;  %v3997_v49 = vld [vmem:[%s4664_s2 + $0x68] sm:$0xf0]  ;;  %v3996_v50 = vld [vmem:[%s4664_s2 + $0x64] sm:$0xf] }
  0x50   : > { %v841_v8 = vmul.f32 128.0, %v4230_v7  ;;  %vm845_vm0 = vweird.f32 %v4230_v7  ;;  %1115 = vmatpush.bf16.msra.mxu1 %v3623_v37  ;;  %v3595_v51 = vor.u32 %v3997_v49, %v3594_v48  ;;  %v3596_v52 = vld [vmem:[%s4664_s2 + $0x6c] sm:$0xf0]  ;;  %v3602_v53 = vld [vmem:[%s4664_s2 + $0x68] sm:$0xf]  ;;  %s5742_s19 = sld [smem:[#allocation16_spill]] }
  0x51   : > { %1134 = vmatpush.bf16.msra.mxu2 %v3627_v38  ;;  %v3998_v54 = vld [vmem:[%s4664_s2 + $0x70] sm:$0xf0]  ;;  %v3599_v55 = vor.u32 %v3996_v50, %v3596_v52  ;;  %v3582_v57 = vld [vmem:[%s4664_s2 + $0x48] sm:$0xf]  ;;  %v3993_v59 = vld [vmem:[%s4664_s2 + $0x4c] sm:$0xf] }
  0x52   : > { %v842_v9 = vsub.f32 1.0, %v841_v8  ;;  %v3603_v56 = vor.u32 %v3998_v54, %v3602_v53  ;;  %v3994_v58 = vld [vmem:[%s4664_s2 + $0x50] sm:$0xf0]  ;;  %v3584_v61 = vld [vmem:[%s4664_s2 + $0x54] sm:$0xf0]  ;;  %vm1180_vm8 = vcmask 130048  }
  0x53   : > { %1097 = vmatpush.bf16.msra.mxu0 %v3607_v42  ;;  %v3583_v60 = vor.u32 %v3994_v58, %v3582_v57  ;;  %v3590_v62 = vld [vmem:[%s4664_s2 + $0x50] sm:$0xf]  ;;  %v3995_v63 = vld [vmem:[%s4664_s2 + $0x58] sm:$0xf0]  ;;  %v3587_v0 = vor.u32 %v3993_v59, %v3584_v61  ;;  %v3572_v6 = vld [vmem:[%s4664_s2 + $0x3c] sm:$0xf0] }
  0x54   : > { %834 = vadd.xlane.f32.xlu0 %v821_v5  ;;  %v843_v10 = vmul.f32 %v4230_v7, %v842_v9  ;;  %1116 = vmatpush.bf16.msra.mxu1 %v3611_v46  ;;  %v3591_v1 = vor.u32 %v3995_v63, %v3590_v62  ;;  %v3570_v2 = vld [vmem:[%s4664_s2 + $0x30] sm:$0xf]  ;;  %v3991_v3 = vld [vmem:[%s4664_s2 + $0x38] sm:$0xf0]  ;;  %v3992_v8 = vld [vmem:[%s4664_s2 + $0x40] sm:$0xf0] }
  0x55   : > { %1135 = vmatpush.bf16.msra.mxu2 %v3615_v47  ;;  %v3546_v23 = vld [vmem:[%s4664_s2] sm:$0xf]  ;;  %v3985_v24 = vld [vmem:[%s4664_s2 + $0x8] sm:$0xf0]  ;;  %v3984_v25 = vld [vmem:[%s4664_s2 + $0x4] sm:$0xf] }
  0x56   : > { %v844_v11 = vadd.f32 %v4230_v7, %v843_v10  ;;  %v3547_v27 = vor.u32 %v3985_v24, %v3546_v23  ;;  %v3548_v28 = vld [vmem:[%s4664_s2 + $0xc] sm:$0xf0]  ;;  %v3554_v29 = vld [vmem:[%s4664_s2 + $0x8] sm:$0xf]  ;;  %v3986_v30 = vld [vmem:[%s4664_s2 + $0x10] sm:$0xf0] }
  0x57   : > { %1098 = vmatpush.bf16.msra.mxu0 %v3595_v51  ;;  %v3551_v32 = vor.u32 %v3984_v25, %v3548_v28  ;;  %v3555_v33 = vor.u32 %v3986_v30, %v3554_v29  ;;  %v4801_v51 = vld [vmem:[%s5739_s1] ss:$0 sm:$0xff]  ;;  %v823_v63 = vld [vmem:[#allocation2 + $0x8] sm:$0xff]  ;;  %s5743_s17 = sld [smem:[#allocation17_spill]]  ;;  %s4480_s6 = smov 112  }
  0x58   : > { %v4733_v12 = vsel %vm845_vm0, %v4230_v7, %v844_v11  ;;  %1117 = vmatpush.bf16.msra.mxu1 %v3599_v55  ;;  %v3578_v7 = vld [vmem:[%s4664_s2 + $0x38] sm:$0xf]  ;;  %s4481_s30 = smov 32   ;;  %s4482_s11 = smov 96  }
  0x59   : > { %1136 = vmatpush.bf16.msra.mxu2 %v3603_v56  ;;  %v3579_v10 = vor.u32 %v3992_v8, %v3578_v7  ;;  %v3558_v11 = vld [vmem:[%s4664_s2 + $0x18] sm:$0xf]  ;;  %v4810_v56 = vld [vmem:[%s5740_s3] ss:$0 sm:$0xff]  ;;  %v4838_v7 = vld [vmem:[%s5741_s23 + $0x8] sm:$0xff]  ;;  %s4483_s1 = smov 48  }
  0x5a   : > { %v4843_v8 = vld [vmem:[%s5742_s19 + $0x8] sm:$0xff]  ;;  %p3976_p1 = scmp.ne.s32.totalorder %s4461_s27, 1 }
  0x5b   : > { %1099 = vmatpush.bf16.msra.mxu0 %v3583_v60  ;;  %s5754_s0 = sld [smem:[#allocation25_spill]] (!%p3976_p1) }
  0x5c   : > { %1118 = vmatpush.bf16.msra.mxu1 %v3587_v0  ;;  %v822_v0 = vld [vmem:[#allocation2 + $0x18] sm:$0xff] }
  0x5d   : > { %1137 = vmatpush.bf16.msra.mxu2 %v3591_v1  ;;  %v4822_v1 = vld [vmem:[%s5741_s23] sm:$0xff] }
  0x61   : > { %1138 = vmatpush.bf16.msra.mxu2 %v3579_v10 }
  0xbf   : > { %v833_v13 = vpop.xlane.xlu0 %832 }
  0xc0   : > { %v847_v14 = vmul.f32 %v4733_v12, %v833_v13  ;;  %v3988_v13 = vld [vmem:[%s4664_s2 + $0x20] sm:$0xf0] }
  0xc2   : > { %v4736_v15 = vsub.f32 %v820_v4, %v847_v14  ;;  %v3990_v4 = vld [vmem:[%s4664_s2 + $0x34] sm:$0xf]  ;;  %v3987_v14 = vld [vmem:[%s4664_s2 + $0x1c] sm:$0xf] }
  0xc3   : > { %v3575_v9 = vor.u32 %v3990_v4, %v3572_v6 }
  0xc4   : > { %v855_v16 = vmul.f32 %v4736_v15, %v4736_v15 }
  0xc5   : > { %1119 = vmatpush.bf16.msra.mxu1 %v3575_v9 }
  0xc6   : > { %859 = vadd.xlane.f32.xlu1 %v855_v16  ;;  %v3559_v16 = vor.u32 %v3988_v13, %v3558_v11 }
  0xc7   : > { %v835_v17 = vpop.xlane.xlu0 %834 }
  0xc8   : > { %v848_v18 = vmul.f32 %v4733_v12, %v835_v17  ;;  %v3560_v17 = vld [vmem:[%s4664_s2 + $0x24] sm:$0xf0] }
  0xc9   : > { %v3563_v21 = vor.u32 %v3987_v14, %v3560_v17 }
  0xca   : > { %v4741_v19 = vsub.f32 %v821_v5, %v848_v18  ;;  %v3571_v5 = vor.u32 %v3991_v3, %v3570_v2  ;;  %v3566_v18 = vld [vmem:[%s4664_s2 + $0x20] sm:$0xf] }
  0xcb   : > { %1120 = vmatpush.bf16.msra.mxu1 %v3563_v21  ;;  %v4827_v2 = vld [vmem:[%s5742_s19] sm:$0xff] }
  0xcc   : > { %v856_v20 = vmul.f32 %v4741_v19, %v4741_v19  ;;  %1100 = vmatpush.bf16.msra.mxu0 %v3571_v5 }
  0xce   : > { %861 = vadd.xlane.f32.xlu1 %v856_v20  ;;  %v3989_v20 = vld [vmem:[%s4664_s2 + $0x28] sm:$0xf0]  ;;  %s4479_s2 = smov 80  }
  0xcf   : > { %v3567_v22 = vor.u32 %v3989_v20, %v3566_v18  ;;  %1121 = vmatpush.bf16.msra.mxu1 %v3551_v32 }
  0xd0   : > { %1101 = vmatpush.bf16.msra.mxu0 %v3559_v16 }
  0xd1   : > { %1139 = vmatpush.bf16.msra.mxu2 %v3567_v22 }
  0xd4   : > { %1102 = vmatpush.bf16.msra.mxu0 %v3547_v27 }
  0xd5   : > { %1140 = vmatpush.bf16.msra.mxu2 %v3555_v33 }
 0x139   : > { %v860_v26 = vpop.xlane.xlu1 %859 }
 0x13a   : > { %v867_v31 = vmul.f32 %v860_v26, %v4733_v12 }
 0x13c   : > { %v871_v34 = vadd.f32 1e-05, %v867_v31 }
 0x13e   : > { %4231 = vrsqrt.f32 %v871_v34  ;;  %vm881_vm2 = vweird.f32 %v871_v34 }
 0x141   : > { %v862_v35 = vpop.xlane.xlu1 %861 }
 0x142   : > { %v868_v36 = vmul.f32 %v862_v35, %v4733_v12 }
 0x144   : > { %v4232_v37 = vpop.eup %4231  ;;  %v872_v38 = vadd.f32 1e-05, %v868_v36 }
 0x145   : > { %v876_v39 = vmul.f32 %v4232_v37, %v871_v34  ;;  %vm882_vm1 = vweird.f32 %v4232_v37 }
 0x146   : > { %4233 = vrsqrt.f32 %v872_v38  ;;  %vm883_vm3 = vmor %vm881_vm2, %vm882_vm1  ;;  %vm891_vm5 = vweird.f32 %v872_v38 }
 0x147   : > { %v877_v40 = vmul.f32 %v4232_v37, %v876_v39 }
 0x149   : > { %v878_v41 = vmul.f32 0.5, %v877_v40 }
 0x14b   : > { %v879_v42 = vsub.f32 1.5, %v878_v41 }
 0x14c   : > { %v4234_v43 = vpop.eup %4233 }
 0x14d   : > { %v880_v44 = vmul.f32 %v4232_v37, %v879_v42  ;;  %v886_v45 = vmul.f32 %v4234_v43, %v872_v38  ;;  %vm892_vm4 = vweird.f32 %v4234_v43 }
 0x14e   : > { %vm893_vm6 = vmor %vm891_vm5, %vm892_vm4 }
 0x14f   : > { %v887_v46 = vmul.f32 %v4234_v43, %v886_v45  ;;  %v884_v47 = vsel %vm883_vm3, %v4232_v37, %v880_v44 }
 0x150   : > { %v915_v50 = vmul.f32 %v884_v47, %v4736_v15 }
 0x151   : > { %v888_v48 = vmul.f32 0.5, %v887_v46 }
 0x152   : > { %v922_v55 = vmul.f32 %v4801_v51, %v915_v50 }
 0x153   : > { %v889_v49 = vsub.f32 1.5, %v888_v48 }
 0x154   : > { %v929_v57 = vadd.f32 %v4810_v56, %v922_v55 }
 0x155   : > { %v890_v52 = vmul.f32 %v4234_v43, %v889_v49 }
 0x157   : > { %v894_v53 = vsel %vm893_vm6, %v4234_v43, %v890_v52 }
 0x158   : > { %v916_v54 = vmul.f32 %v894_v53, %v4741_v19 }
 0x15a   : > { %v923_v15 = vmul.f32 %v4801_v51, %v916_v54 }
 0x15c   : > { %v930_v58 = vadd.f32 %v4810_v56, %v923_v15 }
 0x15e   : > { %v933_v59 = vpack.c.bf16 %v930_v58, %v929_v57 }
 0x160   : > { %1103 = vmatmul.bf16.vlgmr.msra.gmra.mxu0 %v933_v59  ;;  %1122 = vmatmul.bf16.vlgmr.msra.gmra.mxu1 %v933_v59 }
 0x161   : > { %1141 = vmatmul.bf16.vlgmr.msra.gmra.mxu2 %v933_v59 }
 0x1dd   : > { %v1104_v60 = vpop.f32.mrf.mxu0  ;;  %v1123_v19 = vpop.f32.mrf.mxu1 }
 0x1de   : > { %1164 = vrot.lane.b32.xlu2 %v1123_v19, %s4478_s21  ;;  %1154 = vrot.lane.b32.xlu0 %v1104_v60, %s4478_s21  ;;  %v1162_v4 = vmul.f32 %v1123_v19, %v4822_v1  ;;  %v1152_v16 = vmul.f32 %v1104_v60, %v4822_v1 }
 0x1e4   : > { %v4867_v33 = vpop.f32.mrf.mxu2 }
 0x1e5   : > { %v1106_v61 = vpop.f32.mrf.mxu0  ;;  %v1125_v62 = vpop.f32.mrf.mxu1 }
 0x1e6   : > { %1166 = vrot.lane.b32.xlu2 %v1125_v62, %s4478_s21  ;;  %1156 = vrot.lane.b32.xlu1 %v1106_v61, %s4478_s21  ;;  %v1163_v10 = vmul.f32 %v1125_v62, %v4838_v7  ;;  %v1153_v21 = vmul.f32 %v1106_v61, %v4838_v7 }
 0x1ec   : > { %v4878_v37 = vpop.f32.mrf.mxu2 }
 0x208   : > { %838 = vadd.xlane.f32.xlu0 %v823_v63 }
 0x20f   : > { %836 = vadd.xlane.f32.xlu2 %v822_v0 }
 0x238   : > { %v1165_v3 = vpop.permute.xlu2 %1164 }
 0x239   : > { %v1168_v5 = vmul.f32 %v1165_v3, %v4827_v2 }
 0x23b   : > { %v4831_v6 = vadd.f32 %v1168_v5, %v1162_v4 }
 0x23d   : > { %1185 = vrot.lane.b32.xlu1 %v4831_v6, %s4479_s2 }
 0x240   : > { %v1167_v9 = vpop.permute.xlu2 %1166 }
 0x241   : > { %v1169_v11 = vmul.f32 %v1167_v9, %v4843_v8 }
 0x243   : > { %v4847_v13 = vadd.f32 %v1169_v11, %v1163_v10  ;;  %v4904_v10 = vld [vmem:[%s5743_s17] sm:$0xff] }
 0x245   : > { %1187 = vrot.lane.b32.xlu1 %v4847_v13, %s4479_s2 }
 0x250   : > { %v1155_v14 = vpop.permute.xlu0 %1154 }
 0x251   : > { %v1158_v17 = vmul.f32 %v1155_v14, %v4827_v2 }
 0x253   : > { %v4853_v18 = vadd.f32 %v1158_v17, %v1152_v16 }
 0x255   : > { %1174 = vrot.lane.b32.xlu1 %v4853_v18, %s4479_s2 }
 0x258   : > { %v1157_v20 = vpop.permute.xlu1 %1156 }
 0x259   : > { %v1159_v22 = vmul.f32 %v1157_v20, %v4843_v8 }
 0x25b   : > { %v4859_v23 = vadd.f32 %v1159_v22, %v1153_v21 }
 0x25d   : > { %1176 = vrot.lane.b32.xlu2 %v4859_v23, %s4479_s2 }
 0x27b   : > { %v839_v24 = vpop.xlane.xlu0 %838 }
 0x27c   : > { %v850_v25 = vmul.f32 %v4733_v12, %v839_v24 }
 0x27e   : > { %v854_v26 = vsub.f32 %v823_v63, %v850_v25 }
 0x280   : > { %v858_v27 = vmul.f32 %v854_v26, %v854_v26 }
 0x282   : > { %v837_v28 = vpop.xlane.xlu2 %836  ;;  %865 = vadd.xlane.f32.xlu0 %v858_v27 }
 0x283   : > { %v849_v29 = vmul.f32 %v4733_v12, %v837_v28 }
 0x285   : > { %v853_v30 = vsub.f32 %v822_v0, %v849_v29 }
 0x287   : > { %v857_v31 = vmul.f32 %v853_v30, %v853_v30 }
 0x289   : > { %863 = vadd.xlane.f32.xlu1 %v857_v31 }
 0x2af   : > { %v4865_v32 = vpop.permute.xlu1 %1185 }
 0x2b0   : > { %v1191_v36 = vsel %vm1180_vm8, %v4831_v6, %v4865_v32 }
 0x2b7   : > { %v4869_v34 = vpop.permute.xlu1 %1187  ;;  %v4889_v40 = vpop.permute.xlu2 %1176 }
 0x2b8   : > { %v1192_v35 = vsel %vm1180_vm8, %v4847_v13, %v4869_v34  ;;  %v1182_v41 = vsel %vm1180_vm8, %v4859_v23, %v4889_v40 }
 0x2b9   : > { %3640 = vmatpush.xpose.msk.msra.mxu3 %vm1193_vm7, %v1192_v35 }
 0x2bd   : > { %3641 = vmatpush.xpose.msk.msra.mxu3 %vm1193_vm7, %v1191_v36 }
 0x2c1   : > { %1297 = vmatpush.msrb.mxu3 %v4878_v37 }
 0x2c3   : > { %1298 = vmatpush.msrb.mxu3 %v4867_v33 }
 0x2c7   : > { %v4883_v38 = vpop.permute.xlu1 %1174 }
 0x2c8   : > { %v1181_v39 = vsel %vm1180_vm8, %v4853_v18, %v4883_v38 }
 0x2c9   : > { %3642 = vmatmul.msk.f32.vlgmr.msra.gmra.mxu3 %vm1193_vm7, %v1181_v39 }
 0x2d1   : > { %3643 = vmatmul.msk.f32.gmra.mxu3 %vm1193_vm7, %v1182_v41 }
 0x2f5   : > { %v866_v42 = vpop.xlane.xlu0 %865 }
 0x2f6   : > { %v870_v43 = vmul.f32 %v866_v42, %v4733_v12 }
 0x2f8   : > { %v874_v44 = vadd.f32 1e-05, %v870_v43 }
 0x2fa   : > { %4235 = vrsqrt.f32 %v874_v44  ;;  %vm911_vm9 = vweird.f32 %v874_v44 }
 0x2fc   : > { %v864_v45 = vpop.xlane.xlu1 %863 }
 0x2fd   : > { %v869_v46 = vmul.f32 %v864_v45, %v4733_v12 }
 0x2ff   : > { %v873_v47 = vadd.f32 1e-05, %v869_v46 }
 0x300   : > { %v4236_v48 = vpop.eup %4235 }
 0x301   : > { %v906_v49 = vmul.f32 %v4236_v48, %v874_v44  ;;  %4237 = vrsqrt.f32 %v873_v47  ;;  %vm912_vm10 = vweird.f32 %v4236_v48  ;;  %vm901_vm13 = vweird.f32 %v873_v47 }
 0x302   : > { %vm913_vm11 = vmor %vm911_vm9, %vm912_vm10 }
 0x303   : > { %v907_v50 = vmul.f32 %v4236_v48, %v906_v49 }
 0x305   : > { %v908_v52 = vmul.f32 0.5, %v907_v50 }
 0x307   : > { %v4238_v53 = vpop.eup %4237  ;;  %v909_v54 = vsub.f32 1.5, %v908_v52 }
 0x308   : > { %v896_v55 = vmul.f32 %v4238_v53, %v873_v47  ;;  %vm902_vm12 = vweird.f32 %v4238_v53 }
 0x309   : > { %v910_v15 = vmul.f32 %v4236_v48, %v909_v54  ;;  %vm903_vm14 = vmor %vm901_vm13, %vm902_vm12 }
 0x30a   : > { %v897_v57 = vmul.f32 %v4238_v53, %v896_v55 }
 0x30b   : > { %v914_v58 = vsel %vm913_vm11, %v4236_v48, %v910_v15  ;;  %v5017_v15 = vld [vmem:[%s5743_s17 + $0x8] sm:$0xff] }
 0x30c   : > { %v898_v59 = vmul.f32 0.5, %v897_v57  ;;  %v918_v19 = vmul.f32 %v914_v58, %v854_v26 }
 0x30e   : > { %v899_v60 = vsub.f32 1.5, %v898_v59  ;;  %v925_v0 = vmul.f32 %v4801_v51, %v918_v19 }
 0x310   : > { %v900_v61 = vmul.f32 %v4238_v53, %v899_v60  ;;  %v932_v5 = vadd.f32 %v4810_v56, %v925_v0 }
 0x312   : > { %v904_v62 = vsel %vm903_vm14, %v4238_v53, %v900_v61 }
 0x313   : > { %v917_v63 = vmul.f32 %v904_v62, %v853_v30 }
 0x315   : > { %v924_v3 = vmul.f32 %v4801_v51, %v917_v63 }
 0x317   : > { %v931_v4 = vadd.f32 %v4810_v56, %v924_v3 }
 0x319   : > { %v934_v9 = vpack.c.bf16 %v932_v5, %v931_v4 }
 0x31b   : > { %1108 = vmatmul.bf16.gmra.mxu0 %v934_v9  ;;  %1127 = vmatmul.bf16.gmra.mxu1 %v934_v9 }
 0x31c   : > { %1146 = vmatmul.bf16.gmra.mxu2 %v934_v9 }
 0x34c   : > { %v1223_v11 = vpop.f32.mrf.mxu3 }
 0x34d   : > { %v4907_v14 = vadd.f32 %v1223_v11, %v4904_v10 }
 0x34f   : > { %v1229_v51 = vsel %vm1180_vm8, %v4907_v14, -inf }
 0x350   : > { %1230 = vmax.xlane.f32.xlu2 %v1229_v51 }
 0x354   : > { %v1226_v57 = vpop.f32.mrf.mxu3 }
 0x398   : > { %v1109_v16 = vpop.f32.mrf.mxu0  ;;  %v1128_v17 = vpop.f32.mrf.mxu1 }
 0x399   : > { %1778 = vrot.lane.b32.xlu0 %v1128_v17, %s4478_s21  ;;  %v1776_v31 = vmul.f32 %v1128_v17, %v4822_v1  ;;  %v1766_v44 = vmul.f32 %v1109_v16, %v4822_v1 }
 0x3a0   : > { %v1111_v56 = vpop.f32.mrf.mxu0  ;;  %v1130_v20 = vpop.f32.mrf.mxu1 }
 0x3a1   : > { %1780 = vrot.lane.b32.xlu1 %v1130_v20, %s4478_s21  ;;  %1768 = vrot.lane.b32.xlu0 %v1109_v16, %s4478_s21  ;;  %v1777_v27 = vmul.f32 %v1130_v20, %v4838_v7  ;;  %v1767_v50 = vmul.f32 %v1111_v56, %v4838_v7 }
 0x3a2   : > { %1770 = vrot.lane.b32.xlu2 %v1111_v56, %s4478_s21 }
 0x3a9   : > { %1322 = vrot.lane.b32.xlu1 %v4847_v13, %s4480_s6  ;;  %1328 = vrot.lane.b32.xlu0 %v4847_v13, %s4478_s21 }
 0x3aa   : > { %1306 = vrot.lane.b32.xlu2 %v4853_v18, %s4480_s6 }
 0x3b1   : > { %1320 = vrot.lane.b32.xlu1 %v4831_v6, %s4480_s6  ;;  %1326 = vrot.lane.b32.xlu0 %v4831_v6, %s4478_s21 }
 0x3b2   : > { %1608 = vrot.lane.b32.xlu2 %v4831_v6, %s4481_s30 }
 0x3b9   : > { %1312 = vrot.lane.b32.xlu1 %v4853_v18, %s4478_s21  ;;  %1610 = vrot.lane.b32.xlu0 %v4847_v13, %s4481_s30 }
 0x3ba   : > { %1600 = vrot.lane.b32.xlu2 %v4853_v18, %s4481_s30 }
 0x3c1   : > { %1314 = vrot.lane.b32.xlu0 %v4859_v23, %s4478_s21  ;;  %1308 = vrot.lane.b32.xlu1 %v4859_v23, %s4480_s6 }
 0x3c2   : > { %1470 = vrot.lane.b32.xlu2 %v4847_v13, %s4482_s11 }
 0x3c3   : > { %v4947_v21 = vpop.xlane.xlu2 %1230 }
 0x3c4   : > { %v1235_v63 = vsub.f32 %v4907_v14, %v4947_v21 }
 0x3c6   : > { %v1237_v0 = vmul.f32 1.442695, %v1235_v63 }
 0x3c8   : > { %4239 = vpow2.f32 %v1237_v0 }
 0x3c9   : > { %1602 = vrot.lane.b32.xlu1 %v4859_v23, %s4481_s30 }
 0x3ca   : > { %1468 = vrot.lane.b32.xlu2 %v4831_v6, %s4482_s11 }
 0x3ce   : > { %v5041_v4 = vpop.eup %4239 }
 0x3cf   : > { %v1241_v5 = vsel %vm1180_vm8, %v5041_v4, 0.0 }
 0x3d1   : > { %1476 = vrot.lane.b32.xlu1 %v4847_v13, %s4483_s1 }
 0x3d9   : > { %1474 = vrot.lane.b32.xlu1 %v4831_v6, %s4483_s1 }
 0x3fc   : > { %v1771_v24 = vpop.permute.xlu2 %1770 }
 0x3fd   : > { %v1773_v48 = vmul.f32 %v1771_v24, %v4843_v8  ;;  %v5067_v24 = vpop.f32.mrf.mxu2 }
 0x3ff   : > { %v4989_v53 = vadd.f32 %v1773_v48, %v1767_v50 }
 0x404   : > { %v1307_v35 = vpop.permute.xlu2 %1306 }
 0x40b   : > { %v1779_v22 = vpop.permute.xlu0 %1778 }
 0x40c   : > { %v1782_v6 = vmul.f32 %v1779_v22, %v4827_v2  ;;  %v1609_v46 = vpop.permute.xlu2 %1608 }
 0x40e   : > { %v4963_v39 = vadd.f32 %v1782_v6, %v1776_v31 }
 0x413   : > { %v1781_v25 = vpop.permute.xlu1 %1780  ;;  %v1769_v26 = vpop.permute.xlu0 %1768 }
 0x414   : > { %v1783_v28 = vmul.f32 %v1781_v25, %v4843_v8  ;;  %v1772_v41 = vmul.f32 %v1769_v26, %v4827_v2  ;;  %v1601_v54 = vpop.permute.xlu2 %1600  ;;  %v1614_v8 = vsel %vm1180_vm8, %v4865_v32, %v1609_v46 }
 0x415   : > { %v1606_v7 = vsel %vm1180_vm8, %v4883_v38, %v1601_v54 }
 0x416   : > { %v4951_v29 = vadd.f32 %v1783_v28, %v1777_v27  ;;  %v4975_v47 = vadd.f32 %v1772_v41, %v1766_v44  ;;  %v5075_v27 = vpop.f32.mrf.mxu2 }
 0x418   : > { %1800 = vrot.lane.b32.xlu0 %v4951_v29, %s4479_s2  ;;  %1940 = vrot.lane.b32.xlu1 %v4951_v29, %s4478_s21 }
 0x419   : > { %1934 = vrot.lane.b32.xlu2 %v4951_v29, %s4480_s6 }
 0x41b   : > { %v1323_v13 = vpop.permute.xlu1 %1322  ;;  %v1329_v30 = vpop.permute.xlu0 %1328 }
 0x41c   : > { %v1333_v36 = vsel %vm1180_vm8, %v1323_v13, %v1329_v30  ;;  %v1471_v38 = vpop.permute.xlu2 %1470 }
 0x41d   : > { %3646 = vmatpush.xpose.msk.msra.mxu3 %vm1193_vm7, %v1333_v36 }
 0x420   : > { %1798 = vrot.lane.b32.xlu0 %v4963_v39, %s4479_s2  ;;  %1932 = vrot.lane.b32.xlu1 %v4963_v39, %s4480_s6 }
 0x421   : > { %1460 = vrot.lane.b32.xlu2 %v4853_v18, %s4483_s1 }
 0x423   : > { %v1321_v42 = vpop.permute.xlu1 %1320  ;;  %v1327_v43 = vpop.permute.xlu0 %1326 }
 0x424   : > { %v1332_v45 = vsel %vm1180_vm8, %v1321_v42, %v1327_v43  ;;  %v1469_v19 = vpop.permute.xlu2 %1468 }
 0x425   : > { %3647 = vmatpush.xpose.msk.msra.mxu3 %vm1193_vm7, %v1332_v45 }
 0x428   : > { %1924 = vrot.lane.b32.xlu1 %v4975_v47, %s4478_s21 }
 0x429   : > { %1918 = vrot.lane.b32.xlu2 %v4975_v47, %s4480_s6 }
 0x42b   : > { %v1313_v2 = vpop.permute.xlu1 %1312  ;;  %v1611_v49 = vpop.permute.xlu0 %1610 }
 0x42c   : > { %v4984_v1 = vsel %vm1180_vm8, %v1307_v35, %v1313_v2  ;;  %v1615_v52 = vsel %vm1180_vm8, %v4869_v34, %v1611_v49 }
 0x42d   : > { %3658 = vmatpush.xpose.msk.msrb.mxu2 %vm1193_vm7, %v1615_v52 }
 0x430   : > { %1920 = vrot.lane.b32.xlu1 %v4989_v53, %s4480_s6 }
 0x431   : > { %1462 = vrot.lane.b32.xlu2 %v4859_v23, %s4483_s1  ;;  %3659 = vmatpush.xpose.msk.msrb.mxu2 %vm1193_vm7, %v1614_v8 }
 0x433   : > { %v5000_v34 = vpop.permute.xlu1 %1308  ;;  %v5039_v3 = vpop.permute.xlu0 %1314 }
 0x434   : > { %3660 = vmatmul.msk.f32.vlgmr.msrb.gmra.mxu2 %vm1193_vm7, %v1606_v7 }
 0x438   : > { %1788 = vrot.lane.b32.xlu1 %v4975_v47, %s4479_s2 }
 0x439   : > { %2222 = vrot.lane.b32.xlu2 %v4951_v29, %s4481_s30 }
 0x43b   : > { %v1603_v55 = vpop.permute.xlu1 %1602 }
 0x43c   : > { %v1607_v32 = vsel %vm1180_vm8, %v4889_v40, %v1603_v55  ;;  %v1227_v40 = vadd.f32 %v1226_v57, %v5017_v15 }
 0x43d   : > { %3661 = vmatmul.msk.f32.gmra.mxu2 %vm1193_vm7, %v1607_v32 }
 0x43e   : > { %v1232_v60 = vsel %vm1180_vm8, %v1227_v40, -inf }
 0x440   : > { %2082 = vrot.lane.b32.xlu1 %v4951_v29, %s4482_s11 }
 0x441   : > { %2212 = vrot.lane.b32.xlu2 %v4975_v47, %s4481_s30 }
 0x443   : > { %v1477_v58 = vpop.permute.xlu1 %1476 }
 0x444   : > { %v1481_v59 = vsel %vm1180_vm8, %v1471_v38, %v1477_v58 }
 0x445   : > { %3652 = vmatpush.xpose.msk.msrb.mxu1 %vm1193_vm7, %v1481_v59 }
 0x448   : > { %2086 = vrot.lane.b32.xlu1 %v4963_v39, %s4483_s1 }
 0x449   : > { %2080 = vrot.lane.b32.xlu2 %v4963_v39, %s4482_s11 }
 0x44a   : > { %1233 = vmax.xlane.f32.xlu0 %v1232_v60 }
 0x44b   : > { %v1475_v61 = vpop.permute.xlu1 %1474 }
 0x44c   : > { %v1480_v62 = vsel %vm1180_vm8, %v1469_v19, %v1475_v61 }
 0x44d   : > { %3653 = vmatpush.xpose.msk.msrb.mxu1 %vm1193_vm7, %v1480_v62 }
 0x450   : > { %2072 = vrot.lane.b32.xlu1 %v4975_v47, %s4483_s1 }
 0x451   : > { %2066 = vrot.lane.b32.xlu2 %v4975_v47, %s4482_s11 }
 0x459   : > { %2074 = vrot.lane.b32.xlu2 %v4989_v53, %s4483_s1 }
 0x45e   : > { %1790 = vrot.lane.b32.xlu0 %v4989_v53, %s4479_s2  ;;  %s5750_s2 = scalar_lea.vmem %s5694_s8, %s4680_s26 }
 0x473   : > { %v1935_v17 = vpop.permute.xlu2 %1934 }
 0x47b   : > { %v1461_v38 = vpop.permute.xlu2 %1460 }
 0x483   : > { %v1919_v58 = vpop.permute.xlu2 %1918 }
 0x488   : > { %1242 = vadd.xlane.f32.xlu0 %v1241_v5 }
 0x48a   : > { %v5045_v9 = vpop.permute.xlu0 %1800  ;;  %v1941_v11 = vpop.permute.xlu1 %1940 }
 0x48b   : > { %v1805_v51 = vsel %vm1180_vm8, %v4951_v29, %v5045_v9  ;;  %v1945_v20 = vsel %vm1180_vm8, %v1935_v17, %v1941_v11  ;;  %v1463_v0 = vpop.permute.xlu2 %1462 }
 0x48c   : > { %3664 = vmatpush.xpose.msk.msrb.mxu0 %vm1193_vm7, %v1805_v51  ;;  %4080 = vmatpush.xpose.msk.msra.mxu2 %vm1193_vm7, %v1805_v51 }
 0x492   : > { %v5052_v14 = vpop.permute.xlu0 %1798  ;;  %v5054_v16 = vpop.permute.xlu1 %1932 }
 0x493   : > { %v1804_v56 = vsel %vm1180_vm8, %v4963_v39, %v5052_v14 }
 0x494   : > { %3665 = vmatpush.xpose.msk.msrb.mxu0 %vm1193_vm7, %v1804_v56  ;;  %4081 = vmatpush.xpose.msk.msra.mxu2 %vm1193_vm7, %v1804_v56  ;;  %v2223_v56 = vpop.permute.xlu2 %2222 }
 0x498   : > { %3670 = vmatpush.xpose.msk.msrb.mxu2 %vm1193_vm7, %v1945_v20 }
 0x49a   : > { %v5063_v21 = vpop.permute.xlu1 %1924 }
 0x4a2   : > { %v5065_v22 = vpop.permute.xlu1 %1920 }
 0x4aa   : > { %v5069_v25 = vpop.permute.xlu1 %1788 }
 0x4ab   : > { %v1794_v26 = vsel %vm1180_vm8, %v4975_v47, %v5069_v25 }
 0x4ac   : > { %3666 = vmatmul.msk.f32.vlgmr.msrb.gmra.mxu0 %vm1193_vm7, %v1794_v26 }
 0x4b7   : > { %v1645_v28 = vpop.f32.mrf.mxu2 }
 0x4b8   : > { %v5078_v6 = vadd.f32 %v1645_v28, %v4904_v10  ;;  %v2227_v28 = vsel %vm1180_vm8, %v5045_v9, %v2223_v56 }
 0x4ba   : > { %v1651_v13 = vsel %vm1180_vm8, %v5078_v6, -inf }
 0x4bb   : > { %1652 = vmax.xlane.f32.xlu2 %v1651_v13  ;;  %v1930_v13 = vsel %vm1180_vm8, %v1919_v58, %v5063_v21 }
 0x4bd   : > { %v1234_v30 = vpop.xlane.xlu0 %1233 }
 0x4be   : > { %v1236_v31 = vsub.f32 %v1227_v40, %v1234_v30 }
 0x4c0   : > { %v1239_v35 = vmul.f32 1.442695, %v1236_v31  ;;  %v1648_v36 = vpop.f32.mrf.mxu2  ;;  %v2083_v31 = vpop.permute.xlu1 %2082 }
 0x4c1   : > { %v5083_v41 = vadd.f32 %v1648_v36, %v5017_v15  ;;  %v2213_v36 = vpop.permute.xlu2 %2212 }
 0x4c2   : > { %4241 = vpow2.f32 %v1239_v35 }
 0x4c3   : > { %v1654_v42 = vsel %vm1180_vm8, %v5083_v41, -inf }
 0x4c4   : > { %1655 = vmax.xlane.f32.xlu2 %v1654_v42 }
 0x4c8   : > { %v4242_v43 = vpop.eup %4241 }
 0x4c9   : > { %v1244_v44 = vsel %vm1180_vm8, %v4242_v43, 0.0 }
 0x4ca   : > { %1245 = vadd.xlane.f32.xlu0 %v1244_v44 }
 0x4d0   : > { %v5088_v45 = vpop.permute.xlu0 %1790 }
 0x4d1   : > { %v1795_v46 = vsel %vm1180_vm8, %v4989_v53, %v5088_v45 }
 0x4d2   : > { %3667 = vmatmul.msk.f32.vlgmr.msra.gmra.mxu2 %vm1193_vm7, %v1795_v46 }
 0x4de   : > { %1454 = vrot.lane.b32.xlu0 %v4853_v18, %s4482_s11 }
 0x4e6   : > { %1938 = vrot.lane.b32.xlu0 %v4963_v39, %s4478_s21 }
 0x4ee   : > { %1456 = vrot.lane.b32.xlu0 %v4859_v23, %s4482_s11 }
 0x4f6   : > { %1926 = vrot.lane.b32.xlu0 %v4989_v53, %s4478_s21 }
 0x4fb   : > { %v1243_v47 = vpop.xlane.xlu0 %1242 }
 0x4fc   : > { %4243 = vrcp.f32 %v1243_v47  ;;  %v1258_v50 = vand.u32 2147483648, %v1243_v47  ;;  %v1256_v52 = vand.u32 2147483647, %v1243_v47  ;;  %vm1252_vm0 = vweird.f32 %v1243_v47 }
 0x4fe   : > { %2220 = vrot.lane.b32.xlu0 %v4963_v39, %s4481_s30  ;;  %v1259_v23 = vor.u32 1.1754944e-38, %v1258_v50  ;;  %vm1257_vm2 = vcmp.eq.f32.partialorder %v1256_v52, 8.507059e+37 }
 0x502   : > { %v4244_v48 = vpop.eup %4243 }
 0x503   : > { %v1248_v2 = vmul.f32 %v4244_v48, %v1243_v47  ;;  %vm1253_vm15 = vweird.f32 %v4244_v48 }
 0x504   : > { %vm1254_vm1 = vmor %vm1252_vm0, %vm1253_vm15 }
 0x505   : > { %v1249_v49 = vsub.f32 1.0, %v1248_v2 }
 0x506   : > { %2088 = vrot.lane.b32.xlu0 %v4951_v29, %s4483_s1 }
 0x507   : > { %v1250_v18 = vmul.f32 %v4244_v48, %v1249_v49 }
 0x509   : > { %v1251_v54 = vadd.f32 %v4244_v48, %v1250_v18 }
 0x50b   : > { %v1255_v8 = vsel %vm1254_vm1, %v4244_v48, %v1251_v54 }
 0x50c   : > { %v1260_v7 = vsel %vm1257_vm2, %v1259_v23, %v1255_v8 }
 0x50d   : > { %v1275_v55 = vmul.f32 %v5041_v4, %v1260_v7 }
 0x50e   : > { %2214 = vrot.lane.b32.xlu0 %v4989_v53, %s4481_s30 }
 0x50f   : > { %3644 = vmatmul.msk.f32.vlgmr.msrb.gmra.mxu3 %vm1180_vm8, %v1275_v55 }
 0x516   : > { %2068 = vrot.lane.b32.xlu0 %v4989_v53, %s4482_s11 }
 0x529   : > { %v1835_v29 = vpop.f32.mrf.mxu0 }
 0x52a   : > { %v5113_v39 = vadd.f32 %v1835_v29, %v4904_v10 }
 0x52c   : > { %v1841_v32 = vsel %vm1180_vm8, %v5113_v39, -inf }
 0x52d   : > { %1842 = vmax.xlane.f32.xlu2 %v1841_v32 }
 0x53d   : > { %v1246_v57 = vpop.xlane.xlu0 %1245 }
 0x53e   : > { %4245 = vrcp.f32 %v1246_v57  ;;  %v1272_v19 = vand.u32 2147483648, %v1246_v57  ;;  %v1270_v62 = vand.u32 2147483647, %v1246_v57  ;;  %vm1266_vm4 = vweird.f32 %v1246_v57 }
 0x540   : > { %v1273_v63 = vor.u32 1.1754944e-38, %v1272_v19  ;;  %vm1271_vm6 = vcmp.eq.f32.partialorder %v1270_v62, 8.507059e+37 }
 0x544   : > { %v4246_v59 = vpop.eup %4245 }
 0x545   : > { %v1262_v40 = vmul.f32 %v4246_v59, %v1246_v57  ;;  %vm1267_vm3 = vweird.f32 %v4246_v59 }
 0x546   : > { %vm1268_vm5 = vmor %vm1266_vm4, %vm1267_vm3 }
 0x547   : > { %v1263_v60 = vsub.f32 1.0, %v1262_v40 }
 0x549   : > { %v1264_v61 = vmul.f32 %v4246_v59, %v1263_v60 }
 0x54b   : > { %v1265_v53 = vadd.f32 %v4246_v59, %v1264_v61 }
 0x54d   : > { %v1269_v4 = vsel %vm1268_vm5, %v4246_v59, %v1265_v53 }
 0x54e   : > { %v1274_v5 = vsel %vm1271_vm6, %v1273_v63, %v1269_v4 }
 0x54f   : > { %v1276_v11 = vmul.f32 %v4242_v43, %v1274_v5  ;;  %v2218_v43 = vsel %vm1180_vm8, %v5069_v25, %v2213_v36 }
 0x550   : > { %v1455_v51 = vpop.permute.xlu0 %1454 }
 0x551   : > { %v1466_v17 = vsel %vm1180_vm8, %v1455_v51, %v1461_v38  ;;  %3645 = vmatmul.msk.f32.gmra.mxu3 %vm1180_vm8, %v1276_v11 }
 0x552   : > { %3654 = vmatmul.msk.f32.vlgmr.msrb.gmra.mxu1 %vm1193_vm7, %v1466_v17 }
 0x555   : > { %v1838_v7 = vpop.f32.mrf.mxu2 }
 0x556   : > { %v5177_v59 = vadd.f32 %v1838_v7, %v5017_v15 }
 0x558   : > { %v1939_v20 = vpop.permute.xlu0 %1938  ;;  %v1844_v60 = vsel %vm1180_vm8, %v5177_v59, -inf }
 0x559   : > { %v1944_v26 = vsel %vm1180_vm8, %v5054_v16, %v1939_v20  ;;  %3648 = vmatmul.msk.f32.vlgmr.msra.gmra.mxu3 %vm1193_vm7, %v4984_v1  ;;  %v1319_v16 = vsel %vm1180_vm8, %v5000_v34, %v5039_v3  ;;  %v2087_v34 = vpop.permute.xlu1 %2086  ;;  %v2081_v3 = vpop.permute.xlu2 %2080 }
 0x55a   : > { %3671 = vmatpush.xpose.msk.msrb.mxu2 %vm1193_vm7, %v1944_v26 }
 0x55d   : > { %3672 = vmatmul.msk.f32.vlgmr.msrb.gmra.mxu2 %vm1193_vm7, %v1930_v13 }
 0x55e   : > { %3682 = vmatpush.xpose.msk.msra.mxu2 %vm1193_vm7, %v2227_v28 }
 0x560   : > { %v1457_v30 = vpop.permute.xlu0 %1456 }
 0x561   : > { %3649 = vmatmul.msk.f32.gmra.mxu3 %vm1193_vm7, %v1319_v16  ;;  %v1467_v1 = vsel %vm1180_vm8, %v1457_v30, %v1463_v0  ;;  %v2073_v47 = vpop.permute.xlu1 %2072  ;;  %v2067_v48 = vpop.permute.xlu2 %2066 }
 0x562   : > { %3655 = vmatmul.msk.f32.gmra.mxu1 %vm1193_vm7, %v1467_v1 }
 0x568   : > { %v1927_v9 = vpop.permute.xlu0 %1926 }
 0x569   : > { %v1931_v35 = vsel %vm1180_vm8, %v5065_v22, %v1927_v9  ;;  %v2092_v22 = vsel %vm1180_vm8, %v2081_v3, %v2087_v34  ;;  %v2075_v49 = vpop.permute.xlu2 %2074 }
 0x56a   : > { %3673 = vmatmul.msk.f32.gmra.mxu2 %vm1193_vm7, %v1931_v35 }
 0x570   : > { %v2221_v21 = vpop.permute.xlu0 %2220 }
 0x571   : > { %v2226_v42 = vsel %vm1180_vm8, %v5052_v14, %v2221_v21  ;;  %v2078_v14 = vsel %vm1180_vm8, %v2067_v48, %v2073_v47  ;;  %v1653_v11 = vpop.xlane.xlu2 %1652  ;;  %v4163_v21 = vpack.i.bf16 %v4867_v33, %v4878_v37 }
 0x572   : > { %3683 = vmatpush.xpose.msk.msra.mxu2 %vm1193_vm7, %v2226_v42  ;;  %v1657_v56 = vsub.f32 %v5078_v6, %v1653_v11 }
 0x574   : > { %v1659_v28 = vmul.f32 1.442695, %v1657_v56 }
 0x575   : > { %3684 = vmatmul.msk.f32.vlgmr.msra.gmra.mxu2 %vm1193_vm7, %v2218_v43 }
 0x576   : > { %4247 = vpow2.f32 %v1659_v28 }
 0x578   : > { %v2089_v44 = vpop.permute.xlu0 %2088 }
 0x579   : > { %v2093_v46 = vsel %vm1180_vm8, %v2083_v31, %v2089_v44  ;;  %v1656_v13 = vpop.xlane.xlu2 %1655 }
 0x57a   : > { %3676 = vmatpush.xpose.msk.msra.mxu0 %vm1193_vm7, %v2093_v46  ;;  %v1658_v1 = vsub.f32 %v5083_v41, %v1656_v13 }
 0x57c   : > { %v1661_v36 = vmul.f32 1.442695, %v1658_v1  ;;  %v5215_v42 = vpop.eup %4247 }
 0x57e   : > { %3677 = vmatpush.xpose.msk.msra.mxu0 %vm1193_vm7, %v2092_v22  ;;  %4249 = vpow2.f32 %v1661_v36 }
 0x580   : > { %v2215_v2 = vpop.permute.xlu0 %2214 }
 0x581   : > { %3678 = vmatmul.msk.f32.vlgmr.msra.gmra.mxu0 %vm1193_vm7, %v2078_v14  ;;  %v2219_v25 = vsel %vm1180_vm8, %v5088_v45, %v2215_v2 }
 0x582   : > { %3685 = vmatmul.msk.f32.gmra.mxu2 %vm1193_vm7, %v2219_v25 }
 0x584   : > { %v5222_v3 = vpop.eup %4249 }
 0x585   : > { %v1666_v43 = vsel %vm1180_vm8, %v5222_v3, 0.0 }
 0x588   : > { %v2069_v50 = vpop.permute.xlu0 %2068 }
 0x589   : > { %v2079_v18 = vsel %vm1180_vm8, %v2069_v50, %v2075_v49 }
 0x58a   : > { %3679 = vmatmul.msk.f32.gmra.mxu0 %vm1193_vm7, %v2079_v18 }
 0x592   : > { %v5162_v8 = vpop.f32.mrf.mxu3 }
 0x5a0   : > { %v1843_v33 = vpop.xlane.xlu2 %1842 }
 0x5a1   : > { %v1847_v37 = vsub.f32 %v5113_v39, %v1843_v33 }
 0x5a3   : > { %v1849_v44 = vmul.f32 1.442695, %v1847_v37 }
 0x5a5   : > { %4251 = vpow2.f32 %v1849_v44 }
 0x5cf   : > { %v1511_v52 = vpop.f32.mrf.mxu1 }
 0x5d0   : > { %v5158_v54 = vadd.f32 %v1511_v52, %v4904_v10 }
 0x5d2   : > { %v1517_v23 = vsel %vm1180_vm8, %v5158_v54, -inf }
 0x5d3   : > { %1518 = vmax.xlane.f32.xlu1 %v1517_v23 }
 0x5d4   : > { %v5164_v45 = vpop.f32.mrf.mxu3 }
 0x5dc   : > { %v1363_v40 = vpop.f32.mrf.mxu3 }
 0x5dd   : > { %v1364_v41 = vadd.f32 %v1363_v40, %v4904_v10 }
 0x5df   : > { %v1514_v55 = vpop.f32.mrf.mxu1  ;;  %v1369_v34 = vsel %vm1180_vm8, %v1364_v41, -inf }
 0x5e0   : > { %v5167_v29 = vadd.f32 %v1514_v55, %v5017_v15  ;;  %v1975_v32 = vpop.f32.mrf.mxu2 }
 0x5e1   : > { %v5170_v38 = vadd.f32 %v1975_v32, %v4904_v10 }
 0x5e2   : > { %v1520_v57 = vsel %vm1180_vm8, %v5167_v29, -inf }
 0x5e3   : > { %1521 = vmax.xlane.f32.xlu0 %v1520_v57  ;;  %v1981_v58 = vsel %vm1180_vm8, %v5170_v38, -inf }
 0x5e4   : > { %1982 = vmax.xlane.f32.xlu1 %v1981_v58  ;;  %v1366_v53 = vpop.f32.mrf.mxu3 }
 0x5e5   : > { %v5187_v63 = vadd.f32 %v1366_v53, %v5017_v15 }
 0x5e7   : > { %v1372_v4 = vsel %vm1180_vm8, %v5187_v63, -inf }
 0x5ec   : > { %1845 = vmax.xlane.f32.xlu1 %v1844_v60 }
 0x5ed   : > { %v1978_v19 = vpop.f32.mrf.mxu2 }
 0x5ee   : > { %v5182_v61 = vadd.f32 %v1978_v19, %v5017_v15 }
 0x5f0   : > { %v1984_v62 = vsel %vm1180_vm8, %v5182_v61, -inf }
 0x5f1   : > { %1985 = vmax.xlane.f32.xlu0 %v1984_v62 }
 0x5f8   : > { %v2257_v0 = vpop.f32.mrf.mxu2 }
 0x5f9   : > { %v5192_v5 = vadd.f32 %v2257_v0, %v4904_v10  ;;  %1373 = vmax.xlane.f32.xlu0 %v1372_v4 }
 0x5fb   : > { %v2263_v51 = vsel %vm1180_vm8, %v5192_v5, -inf }
 0x5fc   : > { %2264 = vmax.xlane.f32.xlu2 %v2263_v51 }
 0x5fe   : > { %v2123_v17 = vpop.f32.mrf.mxu0 }
 0x5ff   : > { %v5198_v20 = vadd.f32 %v2123_v17, %v4904_v10  ;;  %v5227_v10 = vpop.eup %4251 }
 0x600   : > { %v1853_v46 = vsel %vm1180_vm8, %v5227_v10, 0.0 }
 0x601   : > { %v2129_v26 = vsel %vm1180_vm8, %v5198_v20, -inf }
 0x602   : > { %2130 = vmax.xlane.f32.xlu1 %v2129_v26 }
 0x605   : > { %v2260_v30 = vpop.f32.mrf.mxu2 }
 0x606   : > { %v5203_v16 = vadd.f32 %v2260_v30, %v5017_v15 }
 0x607   : > { %v2126_v9 = vpop.f32.mrf.mxu0 }
 0x608   : > { %v5207_v31 = vadd.f32 %v2126_v9, %v5017_v15  ;;  %v2266_v6 = vsel %vm1180_vm8, %v5203_v16, -inf  ;;  %v1663_v15 = vsel %vm1180_vm8, %v5215_v42, 0.0 }
 0x609   : > { %2267 = vmax.xlane.f32.xlu2 %v2266_v6 }
 0x60a   : > { %v2132_v35 = vsel %vm1180_vm8, %v5207_v31, -inf }
 0x60b   : > { %2133 = vmax.xlane.f32.xlu1 %v2132_v35 }
 0x60d   : > { %4164 = vrot.lane.b32.xlu0 %v4163_v21, %s4482_s11 }
 0x611   : > { %1664 = vadd.xlane.f32.xlu2 %v1663_v15 }
 0x613   : > { %1370 = vmax.xlane.f32.xlu1 %v1369_v34 }
 0x619   : > { %1667 = vadd.xlane.f32.xlu2 %v1666_v43 }
 0x637   : > { %1854 = vadd.xlane.f32.xlu0 %v1853_v46  ;;  %v4178_v46 = vpack.i.bf16 %v5067_v24, %v5075_v27 }
 0x646   : > { %v1519_v22 = vpop.xlane.xlu1 %1518 }
 0x647   : > { %v1523_v47 = vsub.f32 %v5158_v54, %v1519_v22 }
 0x649   : > { %v1525_v48 = vmul.f32 1.442695, %v1523_v47 }
 0x64b   : > { %4253 = vpow2.f32 %v1525_v48 }
 0x651   : > { %v5232_v14 = vpop.eup %4253 }
 0x652   : > { %v1529_v2 = vsel %vm1180_vm8, %v5232_v14, 0.0 }
 0x653   : > { %1530 = vadd.xlane.f32.xlu1 %v1529_v2 }
 0x656   : > { %v1522_v39 = vpop.xlane.xlu0 %1521 }
 0x657   : > { %v1524_v25 = vsub.f32 %v5167_v29, %v1522_v39  ;;  %v1983_v49 = vpop.xlane.xlu1 %1982 }
 0x658   : > { %v1987_v50 = vsub.f32 %v5170_v38, %v1983_v49 }
 0x659   : > { %v1527_v18 = vmul.f32 1.442695, %v1524_v25 }
 0x65a   : > { %v1989_v52 = vmul.f32 1.442695, %v1987_v50 }
 0x65b   : > { %4255 = vpow2.f32 %v1527_v18 }
 0x65c   : > { %4257 = vpow2.f32 %v1989_v52 }
 0x65f   : > { %v1846_v29 = vpop.xlane.xlu1 %1845 }
 0x660   : > { %v1848_v30 = vsub.f32 %v5177_v59, %v1846_v29 }
 0x661   : > { %v5238_v23 = vpop.eup %4255 }
 0x662   : > { %v5240_v54 = vpop.eup %4257  ;;  %v1532_v7 = vsel %vm1180_vm8, %v5238_v23, 0.0  ;;  %v1851_v6 = vmul.f32 1.442695, %v1848_v30 }
 0x663   : > { %1533 = vadd.xlane.f32.xlu1 %v1532_v7  ;;  %v1993_v55 = vsel %vm1180_vm8, %v5240_v54, 0.0 }
 0x664   : > { %1994 = vadd.xlane.f32.xlu2 %v1993_v55  ;;  %v1986_v32 = vpop.xlane.xlu0 %1985 }
 0x665   : > { %v1988_v1 = vsub.f32 %v5182_v61, %v1986_v32 }
 0x667   : > { %v1991_v35 = vmul.f32 1.442695, %v1988_v1 }
 0x66c   : > { %v1374_v60 = vpop.xlane.xlu0 %1373 }
 0x66d   : > { %v1376_v17 = vsub.f32 %v5187_v63, %v1374_v60 }
 0x66f   : > { %v2265_v57 = vpop.xlane.xlu2 %2264  ;;  %v1379_v26 = vmul.f32 1.442695, %v1376_v17 }
 0x670   : > { %v2269_v38 = vsub.f32 %v5192_v5, %v2265_v57 }
 0x672   : > { %v2271_v58 = vmul.f32 1.442695, %v2269_v38 }
 0x674   : > { %4259 = vpow2.f32 %v2271_v58 }
 0x675   : > { %v2131_v40 = vpop.xlane.xlu1 %2130 }
 0x67a   : > { %v5247_v19 = vpop.eup %4259 }
 0x67b   : > { %v2275_v62 = vsel %vm1180_vm8, %v5247_v19, 0.0 }
 0x67c   : > { %4169 = vrot.lane.b32.xlu1 %v4163_v21, %s4481_s30  ;;  %4174 = vrot.lane.b32.xlu2 %v4163_v21, %s4478_s21  ;;  %v2268_v36 = vpop.xlane.xlu2 %2267 }
 0x67d   : > { %2276 = vadd.xlane.f32.xlu0 %v2275_v62  ;;  %v2270_v21 = vsub.f32 %v5203_v16, %v2268_v36 }
 0x67e   : > { %v2134_v53 = vpop.xlane.xlu1 %2133 }
 0x67f   : > { %v4165_v0 = vpop.permute.xlu0 %4164  ;;  %v2273_v15 = vmul.f32 1.442695, %v2270_v21  ;;  %v2136_v48 = vsub.f32 %v5207_v31, %v2134_v53 }
 0x680   : > { %v4166_v4 = vunpack.i.l.bf16 %v4165_v0  ;;  %v4167_v11 = vunpack.i.h.bf16 %v4165_v0 }
 0x681   : > { %v2139_v2 = vmul.f32 1.442695, %v2136_v48 }
 0x682   : > { %1445 = vmatpush.msrb.mxu3 %v4166_v4 }
 0x684   : > { %1446 = vmatpush.msrb.mxu3 %v4167_v11  ;;  %v5285_v22 = vpop.xlane.xlu2 %1664 }
 0x686   : > { %v1371_v5 = vpop.xlane.xlu1 %1370 }
 0x687   : > { %v1375_v51 = vsub.f32 %v1364_v41, %v1371_v5  ;;  %v2135_v41 = vsub.f32 %v5198_v20, %v2131_v40 }
 0x689   : > { %v1377_v56 = vmul.f32 1.442695, %v1375_v51  ;;  %v2137_v59 = vmul.f32 1.442695, %v2135_v41 }
 0x68b   : > { %4261 = vpow2.f32 %v1377_v56 }
 0x68c   : > { %4263 = vpow2.f32 %v1379_v26  ;;  %v5290_v49 = vpop.xlane.xlu2 %1667 }
 0x68d   : > { %4265 = vpow2.f32 %v1851_v6 }
 0x68e   : > { %4267 = vpow2.f32 %v1991_v35 }
 0x68f   : > { %4269 = vpow2.f32 %v2273_v15 }
 0x690   : > { %4271 = vpow2.f32 %v2137_v59 }
 0x691   : > { %v5254_v28 = vpop.eup %4261 }
 0x692   : > { %v1381_v13 = vsel %vm1180_vm8, %v5254_v28, 0.0  ;;  %v5260_v9 = vpop.eup %4263 }
 0x693   : > { %1382 = vadd.xlane.f32.xlu0 %v1381_v13  ;;  %v1384_v63 = vsel %vm1180_vm8, %v5260_v9, 0.0  ;;  %v5266_v34 = vpop.eup %4265 }
 0x694   : > { %v5268_v61 = vpop.eup %4267  ;;  %v1856_v43 = vsel %vm1180_vm8, %v5266_v34, 0.0 }
 0x695   : > { %v1996_v33 = vsel %vm1180_vm8, %v5268_v61, 0.0  ;;  %v5274_v16 = vpop.eup %4269 }
 0x696   : > { %v5276_v37 = vpop.eup %4271  ;;  %v2278_v20 = vsel %vm1180_vm8, %v5274_v16, 0.0 }
 0x697   : > { %v2141_v44 = vsel %vm1180_vm8, %v5276_v37, 0.0 }
 0x69b   : > { %1385 = vadd.xlane.f32.xlu0 %v1384_v63 }
 0x6a5   : > { %1857 = vadd.xlane.f32.xlu2 %v1856_v43 }
 0x6a6   : > { %1997 = vadd.xlane.f32.xlu1 %v1996_v33 }
 0x6aa   : > { %v1855_v50 = vpop.xlane.xlu0 %1854 }
 0x6ab   : > { %v1870_v15 = vand.u32 2147483648, %v1855_v50  ;;  %vm1864_vm2 = vweird.f32 %v1855_v50 }
 0x6ad   : > { %2279 = vadd.xlane.f32.xlu2 %v2278_v20  ;;  %v1871_v33 = vor.u32 1.1754944e-38, %v1870_v15 }
 0x6ae   : > { %2142 = vadd.xlane.f32.xlu1 %v2141_v44 }
 0x6af   : > { %4179 = vrot.lane.b32.xlu0 %v4178_v46, %s4482_s11 }
 0x6c5   : > { %4189 = vrot.lane.b32.xlu2 %v4178_v46, %s4478_s21 }
 0x6c6   : > { %v1531_v47 = vpop.xlane.xlu1 %1530 }
 0x6c7   : > { %4273 = vrcp.f32 %v1531_v47  ;;  %4184 = vrot.lane.b32.xlu1 %v4178_v46, %s4481_s30  ;;  %v1546_v38 = vand.u32 2147483648, %v1531_v47  ;;  %vm1540_vm10 = vweird.f32 %v1531_v47  ;;  %v1544_v58 = vand.u32 2147483647, %v1531_v47 }
 0x6c8   : > { %4275 = vpow2.f32 %v2139_v2 }
 0x6c9   : > { %4277 = vrcp.f32 %v1855_v50  ;;  %v1547_v53 = vor.u32 1.1754944e-38, %v1546_v38  ;;  %vm1545_vm12 = vcmp.eq.f32.partialorder %v1544_v58, 8.507059e+37 }
 0x6cd   : > { %v4274_v39 = vpop.eup %4273 }
 0x6ce   : > { %v1536_v25 = vmul.f32 %v4274_v39, %v1531_v47  ;;  %v5292_v52 = vpop.eup %4275  ;;  %vm1541_vm9 = vweird.f32 %v4274_v39 }
 0x6cf   : > { %v2144_v31 = vsel %vm1180_vm8, %v5292_v52, 0.0  ;;  %v4278_v57 = vpop.eup %4277  ;;  %vm1542_vm11 = vmor %vm1540_vm10, %vm1541_vm9 }
 0x6d0   : > { %v1537_v18 = vsub.f32 1.0, %v1536_v25  ;;  %v1860_v60 = vmul.f32 %v4278_v57, %v1855_v50  ;;  %vm1865_vm1 = vweird.f32 %v4278_v57 }
 0x6d1   : > { %vm1866_vm3 = vmor %vm1864_vm2, %vm1865_vm1 }
 0x6d2   : > { %v1538_v7 = vmul.f32 %v4274_v39, %v1537_v18  ;;  %v1861_v17 = vsub.f32 1.0, %v1860_v60 }
 0x6d4   : > { %v1539_v32 = vadd.f32 %v4274_v39, %v1538_v7  ;;  %v1862_v35 = vmul.f32 %v4278_v57, %v1861_v17 }
 0x6d6   : > { %v1534_v55 = vpop.xlane.xlu1 %1533  ;;  %v1543_v62 = vsel %vm1542_vm11, %v4274_v39, %v1539_v32  ;;  %v1863_v41 = vadd.f32 %v4278_v57, %v1862_v35 }
 0x6d7   : > { %4279 = vrcp.f32 %v1534_v55  ;;  %v5294_v29 = vpop.xlane.xlu2 %1994  ;;  %v1548_v11 = vsel %vm1545_vm12, %v1547_v53, %v1543_v62  ;;  %v1560_v26 = vand.u32 2147483648, %v1534_v55  ;;  %v1558_v1 = vand.u32 2147483647, %v1534_v55 }
 0x6d8   : > { %v1563_v30 = vmul.f32 %v5232_v14, %v1548_v11  ;;  %vm1554_vm14 = vweird.f32 %v1534_v55  ;;  %v1868_v14 = vand.u32 2147483647, %v1855_v50  ;;  %v1867_v43 = vsel %vm1866_vm3, %v4278_v57, %v1863_v41 }
 0x6d9   : > { %2145 = vadd.xlane.f32.xlu0 %v2144_v31  ;;  %v1561_v36 = vor.u32 1.1754944e-38, %v1560_v26  ;;  %vm1559_vm0 = vcmp.eq.f32.partialorder %v1558_v1, 8.507059e+37 }
 0x6da   : > { %vm1869_vm4 = vcmp.eq.f32.partialorder %v1868_v14, 8.507059e+37 }
 0x6db   : > { %v1872_v44 = vsel %vm1869_vm4, %v1871_v33, %v1867_v43 }
 0x6dd   : > { %v4280_v40 = vpop.eup %4279 }
 0x6de   : > { %v1550_v0 = vmul.f32 %v4280_v40, %v1534_v55  ;;  %vm1555_vm13 = vweird.f32 %v4280_v40 }
 0x6df   : > { %v4175_v4 = vpop.permute.xlu2 %4174  ;;  %vm1556_vm15 = vmor %vm1554_vm14, %vm1555_vm13 }
 0x6e0   : > { %v1551_v5 = vsub.f32 1.0, %v1550_v0  ;;  %v4176_v51 = vunpack.i.l.bf16 %v4175_v4  ;;  %v4177_v13 = vunpack.i.h.bf16 %v4175_v4 }
 0x6e2   : > { %v1552_v56 = vmul.f32 %v4280_v40, %v1551_v5  ;;  %1591 = vmatpush.msra.mxu1 %v4176_v51 }
 0x6e4   : > { %1592 = vmatpush.msra.mxu1 %v4177_v13  ;;  %v1553_v6 = vadd.f32 %v4280_v40, %v1552_v56 }
 0x6e5   : > { %3656 = vmatmul.msk.f32.vlgmr.msra.gmra.mxu1 %vm1180_vm8, %v1563_v30 }
 0x6e6   : > { %1909 = vmatpush.msrb.mxu1 %v5075_v27  ;;  %v1557_v63 = vsel %vm1556_vm15, %v4280_v40, %v1553_v6 }
 0x6e7   : > { %v1562_v21 = vsel %vm1559_vm0, %v1561_v36, %v1557_v63  ;;  %v1678_v63 = vand.u32 2147483647, %v5285_v22  ;;  %vm1674_vm0 = vweird.f32 %v5285_v22 }
 0x6e8   : > { %1910 = vmatpush.msrb.mxu1 %v5067_v24  ;;  %v1564_v59 = vmul.f32 %v5238_v23, %v1562_v21  ;;  %v1887_v24 = vmul.f32 %v5227_v10, %v1872_v44  ;;  %v1680_v21 = vand.u32 2147483648, %v5285_v22 }
 0x6e9   : > { %vm1679_vm2 = vcmp.eq.f32.partialorder %v1678_v63, 8.507059e+37 }
 0x6ed   : > { %3657 = vmatmul.msk.f32.gmra.mxu1 %vm1180_vm8, %v1564_v59 }
 0x6ee   : > { %v4170_v20 = vpop.permute.xlu1 %4169 }
 0x6ef   : > { %v4171_v27 = vunpack.i.l.bf16 %v4170_v20  ;;  %v4172_v46 = vunpack.i.h.bf16 %v4170_v20 }
 0x6f0   : > { %v5306_v47 = vpop.xlane.xlu0 %2276 }
 0x6f1   : > { %1725 = vmatpush.msra.mxu3 %v4171_v27 }
 0x6f3   : > { %1726 = vmatpush.msra.mxu3 %v4172_v46 }
 0x6f5   : > { %3668 = vmatmul.msk.f32.vlgmr.msrb.gmra.mxu1 %vm1180_vm8, %v1887_v24 }
 0x706   : > { %v1383_v48 = vpop.xlane.xlu0 %1382 }
 0x707   : > { %4281 = vrcp.f32 %v1383_v48  ;;  %v1398_v18 = vand.u32 2147483648, %v1383_v48  ;;  %v1396_v55 = vand.u32 2147483647, %v1383_v48  ;;  %vm1392_vm6 = vweird.f32 %v1383_v48 }
 0x708   : > { %4283 = vrcp.f32 %v5285_v22 }
 0x709   : > { %v1399_v57 = vor.u32 1.1754944e-38, %v1398_v18  ;;  %vm1397_vm10 = vcmp.eq.f32.partialorder %v1396_v55, 8.507059e+37  ;;  %v1694_v55 = vand.u32 2147483648, %v5290_v49 }
 0x70d   : > { %v4282_v23 = vpop.eup %4281 }
 0x70e   : > { %v1388_v2 = vmul.f32 %v4282_v23, %v1383_v48  ;;  %v1386_v39 = vpop.xlane.xlu0 %1385  ;;  %v5309_v25 = vpop.eup %4283  ;;  %vm1393_vm5 = vweird.f32 %v4282_v23 }
 0x70f   : > { %4285 = vrcp.f32 %v1386_v39  ;;  %v1670_v10 = vmul.f32 %v5309_v25, %v5285_v22  ;;  %vm1394_vm9 = vmor %vm1392_vm6, %vm1393_vm5  ;;  %v1412_v5 = vand.u32 2147483648, %v1386_v39  ;;  %v1410_v26 = vand.u32 2147483647, %v1386_v39 }
 0x710   : > { %4287 = vrcp.f32 %v5290_v49  ;;  %v1389_v50 = vsub.f32 1.0, %v1388_v2  ;;  %vm1406_vm12 = vweird.f32 %v1386_v39  ;;  %vm1675_vm14 = vweird.f32 %v5309_v25 }
 0x711   : > { %v1671_v58 = vsub.f32 1.0, %v1670_v10  ;;  %4289 = vrcp.f32 %v5294_v29  ;;  %v1413_v1 = vor.u32 1.1754944e-38, %v1412_v5  ;;  %vm1411_vm15 = vcmp.eq.f32.partialorder %v1410_v26, 8.507059e+37  ;;  %vm5338_vm1 = vmor %vm1674_vm0, %vm1675_vm14 }
 0x712   : > { %v1390_v7 = vmul.f32 %v4282_v23, %v1389_v50  ;;  %vm1688_vm6 = vweird.f32 %v5290_v49  ;;  %vm2004_vm0 = vweird.f32 %v5294_v29 }
 0x713   : > { %v1672_v17 = vmul.f32 %v5309_v25, %v1671_v58 }
 0x714   : > { %v1391_v31 = vadd.f32 %v4282_v23, %v1390_v7 }
 0x715   : > { %v4286_v32 = vpop.eup %4285  ;;  %v1673_v6 = vadd.f32 %v5309_v25, %v1672_v17  ;;  %v1695_v17 = vor.u32 1.1754944e-38, %v1694_v55 }
 0x716   : > { %v5314_v38 = vpop.eup %4287  ;;  %v1395_v40 = vsel %vm1394_vm9, %v4282_v23, %v1391_v31  ;;  %v1402_v60 = vmul.f32 %v4286_v32, %v1386_v39  ;;  %vm1407_vm11 = vweird.f32 %v4286_v32 }
 0x717   : > { %v1400_v62 = vsel %vm1397_vm10, %v1399_v57, %v1395_v40  ;;  %v1684_v11 = vmul.f32 %v5314_v38, %v5290_v49  ;;  %vm1408_vm13 = vmor %vm1406_vm12, %vm1407_vm11  ;;  %v1677_v22 = vsel %vm5338_vm1, %v5309_v25, %v1673_v6  ;;  %vm1689_vm4 = vweird.f32 %v5314_v38 }
 0x718   : > { %v1403_v53 = vsub.f32 1.0, %v1402_v60  ;;  %v5317_v0 = vpop.xlane.xlu2 %1857  ;;  %v1415_v4 = vmul.f32 %v5254_v28, %v1400_v62  ;;  %v5327_v28 = vpop.eup %4289  ;;  %v1692_v62 = vand.u32 2147483647, %v5290_v49  ;;  %vm5374_vm11 = vmor %vm1688_vm6, %vm1689_vm4 }
 0x719   : > { %4291 = vrcp.f32 %v5317_v0  ;;  %v5323_v51 = vpop.xlane.xlu1 %1997  ;;  %v1685_v30 = vsub.f32 1.0, %v1684_v11  ;;  %v2000_v44 = vmul.f32 %v5327_v28, %v5294_v29  ;;  %v1884_v48 = vand.u32 2147483648, %v5317_v0 }
 0x71a   : > { %v1404_v56 = vmul.f32 %v4286_v32, %v1403_v53  ;;  %3650 = vmatmul.msk.f32.vlgmr.msrb.gmra.mxu3 %vm1180_vm8, %v1415_v4  ;;  %4293 = vrcp.f32 %v5323_v51  ;;  %v1882_v39 = vand.u32 2147483647, %v5317_v0  ;;  %vm1878_vm5 = vweird.f32 %v5317_v0 }
 0x71b   : > { %v1686_v33 = vmul.f32 %v5314_v38, %v1685_v30  ;;  %v2001_v50 = vsub.f32 1.0, %v2000_v44  ;;  %v1885_v57 = vor.u32 1.1754944e-38, %v1884_v48  ;;  %vm1693_vm12 = vcmp.eq.f32.partialorder %v1692_v62, 8.507059e+37 }
 0x71c   : > { %v1405_v13 = vadd.f32 %v4286_v32, %v1404_v56  ;;  %vm1883_vm10 = vcmp.eq.f32.partialorder %v1882_v39, 8.507059e+37  ;;  %vm2005_vm14 = vweird.f32 %v5327_v28  ;;  %vm2018_vm6 = vweird.f32 %v5323_v51 }
 0x71d   : > { %v1687_v25 = vadd.f32 %v5314_v38, %v1686_v33  ;;  %v2002_v11 = vmul.f32 %v5327_v28, %v2001_v50 }
 0x71e   : > { %v1409_v35 = vsel %vm1408_vm13, %v4286_v32, %v1405_v13 }
 0x71f   : > { %v4292_v36 = vpop.eup %4291  ;;  %v1414_v41 = vsel %vm1411_vm15, %v1413_v1, %v1409_v35  ;;  %v1691_v5 = vsel %vm5374_vm11, %v5314_v38, %v1687_v25 }
 0x720   : > { %v1874_v15 = vmul.f32 %v4292_v36, %v5317_v0  ;;  %v5335_v14 = vpop.xlane.xlu2 %2279  ;;  %v1416_v59 = vmul.f32 %v5260_v9, %v1414_v41  ;;  %v1681_v9 = vor.u32 1.1754944e-38, %v1680_v21  ;;  %vm1879_vm3 = vweird.f32 %v4292_v36  ;;  %v5358_v7 = vpop.eup %4293 }
 0x721   : > { %v5344_v20 = vpop.xlane.xlu1 %2142  ;;  %v4180_v27 = vpop.permute.xlu0 %4179  ;;  %vm5362_vm9 = vmor %vm1878_vm5, %vm1879_vm3  ;;  %v1696_v35 = vsel %vm1693_vm12, %v1695_v17, %v1691_v5  ;;  %v2008_v41 = vand.u32 2147483647, %v5294_v29  ;;  %vm2019_vm5 = vweird.f32 %v5358_v7  ;;  %vm2286_vm12 = vweird.f32 %v5306_v47 }
 0x722   : > { %v1875_v46 = vsub.f32 1.0, %v1874_v15  ;;  %4295 = vrcp.f32 %v5344_v20  ;;  %3651 = vmatmul.msk.f32.gmra.mxu3 %vm1180_vm8, %v1416_v59  ;;  %v4181_v23 = vunpack.i.l.bf16 %v4180_v27  ;;  %v1682_v2 = vsel %vm1679_vm2, %v1681_v9, %v1677_v22  ;;  %vm2006_vm2 = vmor %vm2004_vm0, %vm2005_vm14 }
 0x723   : > { %v4182_v18 = vunpack.i.h.bf16 %v4180_v27  ;;  %v1697_v40 = vmul.f32 %v5215_v42, %v1682_v2  ;;  %4297 = vrcp.f32 %v5306_v47  ;;  %v2014_v42 = vmul.f32 %v5358_v7, %v5323_v51 }
 0x724   : > { %v1876_v24 = vmul.f32 %v4292_v36, %v1875_v46  ;;  %2057 = vmatpush.msrb.mxu3 %v4181_v23  ;;  %v2158_v13 = vand.u32 2147483648, %v5344_v20  ;;  %v2156_v6 = vand.u32 2147483647, %v5344_v20  ;;  %vm2152_vm15 = vweird.f32 %v5344_v20 }
 0x725   : > { %v2015_v38 = vsub.f32 1.0, %v2014_v42  ;;  %v1698_v59 = vmul.f32 %v5222_v3, %v1696_v35  ;;  %4299 = vrcp.f32 %v5335_v14  ;;  %vm2009_vm4 = vcmp.eq.f32.partialorder %v2008_v41, 8.507059e+37 }
 0x726   : > { %v1877_v10 = vadd.f32 %v4292_v36, %v1876_v24  ;;  %2058 = vmatpush.msrb.mxu3 %v4182_v18  ;;  %v2159_v15 = vor.u32 1.1754944e-38, %v2158_v13  ;;  %vm2157_vm3 = vcmp.eq.f32.partialorder %v2156_v6, 8.507059e+37  ;;  %v2024_v24 = vand.u32 2147483648, %v5323_v51 }
 0x727   : > { %v2016_v22 = vmul.f32 %v5358_v7, %v2015_v38  ;;  %v2022_v23 = vand.u32 2147483647, %v5323_v51  ;;  %v2292_v51 = vand.u32 2147483648, %v5306_v47  ;;  %vm2300_vm0 = vweird.f32 %v5335_v14 }
 0x728   : > { %v4296_v32 = vpop.eup %4295  ;;  %v4190_v58 = vpop.permute.xlu2 %4189  ;;  %v1881_v60 = vsel %vm5362_vm9, %v4292_v36, %v1877_v10  ;;  %v2003_v36 = vadd.f32 %v5327_v28, %v2002_v11  ;;  %vm2020_vm9 = vmor %vm2018_vm6, %vm2019_vm5  ;;  %v2025_v18 = vor.u32 1.1754944e-38, %v2024_v24 }
 0x729   : > { %v2148_v53 = vmul.f32 %v4296_v32, %v5344_v20  ;;  %v4191_v0 = vunpack.i.l.bf16 %v4190_v58  ;;  %v1886_v49 = vsel %vm1883_vm10, %v1885_v57, %v1881_v60  ;;  %v4192_v30 = vunpack.i.h.bf16 %v4190_v58  ;;  %v4298_v63 = vpop.eup %4297 }
 0x72a   : > { %3662 = vmatmul.msk.f32.vlgmr.msra.gmra.mxu3 %vm1180_vm8, %v1697_v40  ;;  %v1888_v26 = vmul.f32 %v5266_v34, %v1886_v49  ;;  %vm2153_vm13 = vweird.f32 %v4296_v32  ;;  %v2010_v34 = vand.u32 2147483648, %v5294_v29  ;;  %v2007_v33 = vsel %vm2006_vm2, %v5327_v28, %v2003_v36 }
 0x72b   : > { %v2149_v56 = vsub.f32 1.0, %v2148_v53  ;;  %2203 = vmatpush.msra.mxu1 %v4191_v0  ;;  %vm2154_vm1 = vmor %vm2152_vm15, %vm2153_vm13  ;;  %v2282_v27 = vmul.f32 %v4298_v63, %v5306_v47  ;;  %v2017_v9 = vadd.f32 %v5358_v7, %v2016_v22  ;;  %v4300_v28 = vpop.eup %4299  ;;  %vm2023_vm10 = vcmp.eq.f32.partialorder %v2022_v23, 8.507059e+37  ;;  %v4012_v23 = vld [vmem:[%s4698_s20 + $0x20] sm:$0xff] }
 0x72c   : > { %3669 = vmatmul.msk.f32.gmra.mxu1 %vm1180_vm8, %v1888_v26  ;;  %v2011_v44 = vor.u32 1.1754944e-38, %v2010_v34  ;;  %v2296_v39 = vmul.f32 %v4300_v28, %v5335_v14  ;;  %vm2287_vm11 = vweird.f32 %v4298_v63  ;;  %v2293_v40 = vor.u32 1.1754944e-38, %v2292_v51 }
 0x72d   : > { %v2150_v1 = vmul.f32 %v4296_v32, %v2149_v56  ;;  %2204 = vmatpush.msra.mxu1 %v4192_v30  ;;  %v2283_v3 = vsub.f32 1.0, %v2282_v27  ;;  %v2021_v50 = vsel %vm2020_vm9, %v5358_v7, %v2017_v9  ;;  %vm2288_vm13 = vmor %vm2286_vm12, %vm2287_vm11  ;;  %vm2301_vm15 = vweird.f32 %v4300_v28 }
 0x72e   : > { %v2012_v46 = vsel %vm2009_vm4, %v2011_v44, %v2007_v33  ;;  %v2026_v55 = vsel %vm2023_vm10, %v2025_v18, %v2021_v50  ;;  %v2306_v53 = vand.u32 2147483648, %v5335_v14  ;;  %v4014_v33 = vld [vmem:[%s4698_s20 + $0x30] sm:$0xff]  ;;  %v4013_v44 = vld [vmem:[%s4698_s20 + $0x28] sm:$0xff]  ;;  %vm1763_vm9 = vcmask 785408  }
 0x72f   : > { %v2151_v21 = vadd.f32 %v4296_v32, %v2150_v1  ;;  %v2027_v48 = vmul.f32 %v5240_v54, %v2012_v46  ;;  %v2297_v54 = vsub.f32 1.0, %v2296_v39  ;;  %v2028_v57 = vmul.f32 %v5268_v61, %v2026_v55  ;;  %v4009_v39 = vld [vmem:[%s4698_s20 + $0x8] sm:$0xff] }
 0x730   : > { %v2307_v4 = vor.u32 1.1754944e-38, %v2306_v53 }
 0x731   : > { %v2155_v43 = vsel %vm2154_vm1, %v4296_v32, %v2151_v21  ;;  %v2290_v32 = vand.u32 2147483647, %v5306_v47  ;;  %v2298_v7 = vmul.f32 %v4300_v28, %v2297_v54  ;;  %v2304_v47 = vand.u32 2147483647, %v5335_v14  ;;  %vm2302_vm1 = vmor %vm2300_vm0, %vm2301_vm15 }
 0x732   : > { %v2160_v20 = vsel %vm2157_vm3, %v2159_v15, %v2155_v43  ;;  %3663 = vmatmul.msk.f32.gmra.mxu3 %vm1180_vm8, %v1698_v59  ;;  %v4015_v43 = vld [vmem:[%s4698_s20 + $0x38] sm:$0xff] }
 0x733   : > { %v2175_v29 = vmul.f32 %v5276_v37, %v2160_v20  ;;  %v2284_v37 = vmul.f32 %v4298_v63, %v2283_v3  ;;  %vm2291_vm14 = vcmp.eq.f32.partialorder %v2290_v32, 8.507059e+37  ;;  %v2299_v62 = vadd.f32 %v4300_v28, %v2298_v7  ;;  %2446 = vmatpush.bf16.msrb.mxu0 %v4015_v43 }
 0x734   : > { %vm2305_vm2 = vcmp.eq.f32.partialorder %v2304_v47, 8.507059e+37 }
 0x735   : > { %3680 = vmatmul.msk.f32.vlgmr.msra.gmra.mxu1 %vm1180_vm8, %v2175_v29  ;;  %v2285_v31 = vadd.f32 %v4298_v63, %v2284_v37  ;;  %v2303_v61 = vsel %vm2302_vm1, %v4300_v28, %v2299_v62  ;;  %v4010_v37 = vld [vmem:[%s4698_s20 + $0x10] sm:$0xff] }
 0x736   : > { %v2308_v42 = vsel %vm2305_vm2, %v2307_v4, %v2303_v61 }
 0x737   : > { %v2289_v58 = vsel %vm2288_vm13, %v4298_v63, %v2285_v31  ;;  %v2310_v49 = vmul.f32 %v5274_v16, %v2308_v42  ;;  %2447 = vmatpush.bf16.msrb.mxu0 %v4014_v33 }
 0x738   : > { %v2294_v60 = vsel %vm2291_vm14, %v2293_v40, %v2289_v58 }
 0x739   : > { %v4185_v2 = vpop.permute.xlu1 %4184  ;;  %v2309_v0 = vmul.f32 %v5247_v19, %v2294_v60 }
 0x73a   : > { %v4186_v25 = vunpack.i.l.bf16 %v4185_v2  ;;  %3674 = vmatmul.msk.f32.vlgmr.msrb.gmra.mxu3 %vm1180_vm8, %v2027_v48  ;;  %v4187_v10 = vunpack.i.h.bf16 %v4185_v2  ;;  %v4011_v2 = vld [vmem:[%s4698_s20 + $0x18] sm:$0xff] }
 0x73b   : > { %2448 = vmatpush.bf16.msrb.mxu0 %v4013_v44 }
 0x73c   : > { %2337 = vmatpush.msra.mxu3 %v4186_v25  ;;  %v4008_v25 = vld [vmem:[%s4698_s20] sm:$0xff] }
 0x73e   : > { %2338 = vmatpush.msra.mxu3 %v4187_v10 }
 0x73f   : > { %2449 = vmatpush.bf16.msrb.mxu0 %v4012_v23 }
 0x742   : > { %3675 = vmatmul.msk.f32.gmra.mxu3 %vm1180_vm8, %v2028_v57 }
 0x743   : > { %2450 = vmatpush.bf16.msrb.mxu0 %v4011_v2 }
 0x747   : > { %2451 = vmatpush.bf16.msrb.mxu0 %v4010_v37 }
 0x74a   : > { %3686 = vmatmul.msk.f32.vlgmr.msra.gmra.mxu3 %vm1180_vm8, %v2309_v0 }
 0x74b   : > { %2452 = vmatpush.bf16.msrb.mxu0 %v4009_v39 }
 0x74c   : > { %v2146_v11 = vpop.xlane.xlu0 %2145 }
 0x74d   : > { %4301 = vrcp.f32 %v2146_v11  ;;  %v2172_v26 = vand.u32 2147483648, %v2146_v11  ;;  %v2170_v14 = vand.u32 2147483647, %v2146_v11  ;;  %vm2166_vm4 = vweird.f32 %v2146_v11 }
 0x74f   : > { %v2173_v30 = vor.u32 1.1754944e-38, %v2172_v26  ;;  %vm2171_vm6 = vcmp.eq.f32.partialorder %v2170_v14, 8.507059e+37  ;;  %2453 = vmatpush.bf16.msrb.mxu0 %v4008_v25 }
 0x752   : > { %3687 = vmatmul.msk.f32.gmra.mxu3 %vm1180_vm8, %v2310_v49 }
 0x753   : > { %v4302_v5 = vpop.eup %4301 }
 0x754   : > { %v2162_v17 = vmul.f32 %v4302_v5, %v2146_v11  ;;  %vm2167_vm3 = vweird.f32 %v4302_v5 }
 0x755   : > { %vm2168_vm5 = vmor %vm2166_vm4, %vm2167_vm3 }
 0x756   : > { %v2163_v56 = vsub.f32 1.0, %v2162_v17 }
 0x758   : > { %v2164_v19 = vmul.f32 %v4302_v5, %v2163_v56 }
 0x75a   : > { %v2165_v13 = vadd.f32 %v4302_v5, %v2164_v19 }
 0x75c   : > { %v2169_v1 = vsel %vm2168_vm5, %v4302_v5, %v2165_v13 }
 0x75d   : > { %v2174_v6 = vsel %vm2171_vm6, %v2173_v30, %v2169_v1  ;;  %v4225_v1 = vld [vmem:[%s5750_s2] ss:$0 sm:$0xff] }
 0x75e   : > { %v2176_v35 = vmul.f32 %v5292_v52, %v2174_v6 }
 0x760   : > { %3681 = vmatmul.msk.f32.gmra.mxu1 %vm1180_vm8, %v2176_v35  ;;  %vm1760_vm8 = vcmask 523264  }
 0x762   : > { %v1594_v16 = vpop.f32.mrf.mxu1 }
 0x76a   : > { %v1597_v36 = vpop.f32.mrf.mxu1 }
 0x76b   : > { %v4193_v38 = vpack.i.bf16 %v1597_v36, %v1594_v16  ;;  %v4311_v16 = vld [vmem:[#allocation2 + $0x10] sm:$0xff] }
 0x76d   : > { %4194 = vrot.lane.b32.xlu2 %v4193_v38, %s4478_s21 }
 0x772   : > { %v1912_v27 = vpop.f32.mrf.mxu1 }
 0x79d   : > { %v1448_v63 = vpop.f32.mrf.mxu3 }
 0x7a5   : > { %v1451_v34 = vpop.f32.mrf.mxu3 }
 0x7a6   : > { %v4198_v21 = vpack.i.bf16 %v1451_v34, %v1448_v63  ;;  %v4312_v34 = vld [vmem:[#allocation2] sm:$0xff] }
 0x7a8   : > { %4199 = vrot.lane.b32.xlu1 %v4198_v21, %s4481_s30 }
 0x7a9   : > { %v1915_v29 = vpop.f32.mrf.mxu1 }
 0x7ad   : > { %v1728_v41 = vpop.f32.mrf.mxu3 }
 0x7b2   : > { %v2206_v3 = vpop.f32.mrf.mxu1 }
 0x7b5   : > { %v1731_v15 = vpop.f32.mrf.mxu3 }
 0x7b6   : > { %v4203_v59 = vpack.i.bf16 %v1731_v15, %v1728_v41 }
 0x7b8   : > { %4204 = vrot.lane.b32.xlu1 %v4203_v59, %s4482_s11  ;;  %v4313_v59 = vld [vmem:[#allocation2 + $0x18] sm:$0xff] }
 0x7bd   : > { %v2060_v52 = vpop.f32.mrf.mxu3 }
 0x7c5   : > { %v2063_v22 = vpop.f32.mrf.mxu3 }
 0x7c6   : > { %v4208_v20 = vpack.i.bf16 %v2063_v22, %v2060_v52 }
 0x7c7   : > { %v4195_v55 = vpop.permute.xlu2 %4194 }
 0x7c8   : > { %4209 = vrot.lane.b32.xlu2 %v4208_v20, %s4481_s30  ;;  %v4197_v51 = vunpack.i.h.bf16 %v4195_v55  ;;  %v4196_v32 = vunpack.i.l.bf16 %v4195_v55  ;;  %v4046_v55 = vld [vmem:[%s4672_s13 + $0xec] sm:$0xf0] }
 0x7cd   : > { %v2340_v46 = vpop.f32.mrf.mxu3 }
 0x7d5   : > { %v2343_v9 = vpop.f32.mrf.mxu3 }
 0x7d6   : > { %v4218_v28 = vpack.i.bf16 %v2343_v9, %v2340_v46 }
 0x7d8   : > { %4219 = vrot.lane.b32.xlu1 %v4218_v28, %s4482_s11  ;;  %s5753_s11 = sld [smem:[#allocation24_spill]] (!%p3976_p1) }
 0x7dd   : > { %v2209_v24 = vpop.f32.mrf.mxu1 }
 0x7de   : > { %v4213_v48 = vpack.i.bf16 %v2209_v24, %v2206_v3 }
 0x7e0   : > { %4214 = vrot.lane.b32.xlu0 %v4213_v48, %s4478_s21 }
 0x81a   : > { %v4200_v50 = vpop.permute.xlu1 %4199 }
 0x81b   : > { %v4202_v18 = vunpack.i.h.bf16 %v4200_v50  ;;  %v4201_v10 = vunpack.i.l.bf16 %v4200_v50 }
 0x81d   : > { %v1759_v31 = vsel %vm1193_vm7, %v5164_v45, %v4202_v18  ;;  %v1758_v54 = vsel %vm1193_vm7, %v5162_v8, %v4201_v10  ;;  %v3834_v10 = vld [vmem:[%s4672_s13 + $0xe0] sm:$0xf] }
 0x81e   : > { %v1761_v40 = vsel %vm1760_vm8, %v1758_v54, %v4196_v32  ;;  %v1762_v60 = vsel %vm1760_vm8, %v1759_v31, %v4197_v51  ;;  %v4044_v31 = vld [vmem:[%s4672_s13 + $0xe4] sm:$0xf]  ;;  %v3835_v54 = vor.u32 %v4046_v55, %v3834_v10  ;;  %v3836_v51 = vld [vmem:[%s4672_s13 + $0xf0] sm:$0xf0]  ;;  %v3842_v32 = vld [vmem:[%s4672_s13 + $0xe8] sm:$0xf] }
 0x820   : > { %2769 = vmatpush.bf16.msrb.mxu1 %v3835_v54  ;;  %v3780_v54 = vld [vmem:[%s4672_s13 + $0x78] sm:$0xf0] }
 0x822   : > { %v4210_v45 = vpop.permute.xlu2 %4209 }
 0x823   : > { %v4212_v47 = vunpack.i.h.bf16 %v4210_v45  ;;  %v4211_v8 = vunpack.i.l.bf16 %v4210_v45  ;;  %v4040_v45 = vld [vmem:[%s4672_s13 + $0xc4] sm:$0xf] }
 0x825   : > { %v2370_v49 = vsel %vm1193_vm7, %v1912_v27, %v4211_v8  ;;  %v2371_v5 = vsel %vm1193_vm7, %v1915_v29, %v4212_v47  ;;  %v4314_v27 = vld [vmem:[#allocation2 + $0x8] sm:$0xff]  ;;  %v3820_v8 = vld [vmem:[%s4672_s13 + $0xd0] sm:$0xf0] }
 0x82a   : > { %v4205_v57 = vpop.permute.xlu1 %4204 }
 0x82b   : > { %v4207_v58 = vunpack.i.h.bf16 %v4205_v57  ;;  %v4206_v7 = vunpack.i.l.bf16 %v4205_v57  ;;  %v4047_v57 = vld [vmem:[%s4672_s13 + $0xf4] sm:$0xf0] }
 0x82d   : > { %v1764_v62 = vsel %vm1763_vm9, %v1761_v40, %v4206_v7  ;;  %v1765_v53 = vsel %vm1763_vm9, %v1762_v60, %v4207_v58  ;;  %v3839_v58 = vor.u32 %v4044_v31, %v3836_v51  ;;  %v3843_v7 = vor.u32 %v4047_v57, %v3842_v32  ;;  %v4045_v40 = vld [vmem:[%s4672_s13 + $0xec] sm:$0xf]  ;;  %v3844_v60 = vld [vmem:[%s4672_s13 + $0xf8] sm:$0xf0]  ;;  %v3754_v32 = vld [vmem:[%s4672_s13 + $0x40] sm:$0xf] }
 0x82e   : > { %v2376_v0 = vpack.c.bf16 %v1765_v53, %v1764_v62  ;;  %v3847_v62 = vor.u32 %v4045_v40, %v3844_v60  ;;  %v3818_v53 = vld [vmem:[%s4672_s13 + $0xc0] sm:$0xf]  ;;  %v4029_v31 = vld [vmem:[%s4672_s13 + $0x6c] sm:$0xf]  ;;  %v4026_v57 = vld [vmem:[%s4672_s13 + $0x4c] sm:$0xf0] }
 0x82f   : > { %2788 = vmatpush.bf16.msrb.mxu2 %v3839_v58  ;;  %2807 = vmatpush.bf16.msrb.mxu3 %v3843_v7  ;;  %v3783_v51 = vor.u32 %v4029_v31, %v3780_v54  ;;  %v4024_v58 = vld [vmem:[%s4672_s13 + $0x44] sm:$0xf]  ;;  %v3755_v7 = vor.u32 %v4026_v57, %v3754_v32  ;;  %v3756_v40 = vld [vmem:[%s4672_s13 + $0x50] sm:$0xf0]  ;;  %v3762_v60 = vld [vmem:[%s4672_s13 + $0x48] sm:$0xf] }
 0x830   : > { %2454 = vmatmul.bf16.vlgmr.msrb.gmra.mxu0 %v2376_v0  ;;  %v4042_v0 = vld [vmem:[%s4672_s13 + $0xcc] sm:$0xf0]  ;;  %v5567_v32 = vld [vmem:[%s791_s12] ss:$0 sm:$0xff] }
 0x831   : > { %2826 = vmatpush.bf16.msra.mxu0 %v3847_v62  ;;  %v3819_v47 = vor.u32 %v4042_v0, %v3818_v53  ;;  %v4027_v62 = vld [vmem:[%s4672_s13 + $0x54] sm:$0xf0]  ;;  %v3759_v53 = vor.u32 %v4024_v58, %v3756_v40 }
 0x832   : > { %v3763_v0 = vor.u32 %v4027_v62, %v3762_v60 }
 0x833   : > { %2770 = vmatpush.bf16.msrb.mxu1 %v3819_v47  ;;  %v3764_v47 = vld [vmem:[%s4672_s13 + $0x58] sm:$0xf0] }
 0x84a   : > { %v4220_v61 = vpop.permute.xlu1 %4219 }
 0x84b   : > { %v4222_v17 = vunpack.i.h.bf16 %v4220_v61  ;;  %v4221_v56 = vunpack.i.l.bf16 %v4220_v61  ;;  %v3826_v61 = vld [vmem:[%s4672_s13 + $0xc8] sm:$0xf] }
 0x852   : > { %v4215_v4 = vpop.permute.xlu0 %4214 }
 0x853   : > { %v4217_v11 = vunpack.i.h.bf16 %v4215_v4  ;;  %v4216_v42 = vunpack.i.l.bf16 %v4215_v4  ;;  %v4043_v4 = vld [vmem:[%s4672_s13 + $0xd4] sm:$0xf0] }
 0x855   : > { %v2372_v26 = vsel %vm1760_vm8, %v2370_v49, %v4216_v42  ;;  %v2373_v19 = vsel %vm1760_vm8, %v2371_v5, %v4217_v11  ;;  %v3823_v11 = vor.u32 %v4040_v45, %v3820_v8  ;;  %v3827_v42 = vor.u32 %v4043_v4, %v3826_v61  ;;  %v4041_v49 = vld [vmem:[%s4672_s13 + $0xcc] sm:$0xf]  ;;  %v3828_v5 = vld [vmem:[%s4672_s13 + $0xd8] sm:$0xf0]  ;;  %v3738_v8 = vld [vmem:[%s4672_s13 + $0x20] sm:$0xf] }
 0x856   : > { %v2374_v14 = vsel %vm1763_vm9, %v2372_v26, %v4221_v56  ;;  %v2375_v13 = vsel %vm1763_vm9, %v2373_v19, %v4222_v17  ;;  %v3831_v17 = vor.u32 %v4041_v49, %v3828_v5  ;;  %v3802_v56 = vld [vmem:[%s4672_s13 + $0xa0] sm:$0xf]  ;;  %v4038_v26 = vld [vmem:[%s4672_s13 + $0xac] sm:$0xf0]  ;;  %v4036_v19 = vld [vmem:[%s4672_s13 + $0xa4] sm:$0xf] }
 0x857   : > { %v2377_v30 = vpack.c.bf16 %v2375_v13, %v2374_v14  ;;  %2789 = vmatpush.bf16.msrb.mxu2 %v3823_v11  ;;  %2808 = vmatpush.bf16.msrb.mxu3 %v3827_v42  ;;  %v3803_v14 = vor.u32 %v4038_v26, %v3802_v56  ;;  %v3804_v13 = vld [vmem:[%s4672_s13 + $0xb0] sm:$0xf0]  ;;  %v4025_v45 = vld [vmem:[%s4672_s13 + $0x4c] sm:$0xf]  ;;  %v4022_v11 = vld [vmem:[%s4672_s13 + $0x2c] sm:$0xf0] }
 0x858   : > { %2827 = vmatpush.bf16.msra.mxu0 %v3831_v17  ;;  %v3767_v4 = vor.u32 %v4025_v45, %v3764_v47  ;;  %v4020_v42 = vld [vmem:[%s4672_s13 + $0x24] sm:$0xf]  ;;  %v3740_v49 = vld [vmem:[%s4672_s13 + $0x30] sm:$0xf0]  ;;  %v3739_v17 = vor.u32 %v4022_v11, %v3738_v8  ;;  %v3746_v26 = vld [vmem:[%s4672_s13 + $0x28] sm:$0xf] }
 0x859   : > { %2459 = vmatmul.bf16.gmra.mxu0 %v2377_v30  ;;  %v3810_v30 = vld [vmem:[%s4672_s13 + $0xa8] sm:$0xf]  ;;  %2771 = vmatpush.bf16.msrb.mxu1 %v3803_v14  ;;  %v3743_v56 = vor.u32 %v4020_v42, %v3740_v49  ;;  %v4021_v14 = vld [vmem:[%s4672_s13 + $0x2c] sm:$0xf]  ;;  %v4063_v42 = vld [vmem:[%s4718_s24 + $0x78] sm:$0xff] }
 0x85a   : > { %v4071_v49 = vld [vmem:[%s4718_s24 + $0xb8] sm:$0xff] }
 0x8ad   : > { %v2455_v6 = vpop.f32.mrf.mxu0 }
 0x8ae   : > { %v2456_v35 = vadd.f32 %v4225_v1, %v2455_v6  ;;  %v3807_v6 = vor.u32 %v4036_v19, %v3804_v13  ;;  %v4023_v19 = vld [vmem:[%s4672_s13 + $0x34] sm:$0xf0] }
 0x8af   : > { %v3747_v13 = vor.u32 %v4023_v19, %v3746_v26  ;;  %v4062_v19 = vld [vmem:[%s4718_s24 + $0x70] sm:$0xff] }
 0x8b0   : > { %v5459_v36 = vadd.f32 %v4311_v16, %v2456_v35  ;;  %v4037_v16 = vld [vmem:[%s4672_s13 + $0xac] sm:$0xf]  ;;  %2790 = vmatpush.bf16.msrb.mxu2 %v3807_v6  ;;  %v4018_v6 = vld [vmem:[%s4672_s13 + $0xc] sm:$0xf0] }
 0x8b2   : > { %2471 = vadd.xlane.f32.xlu2 %v5459_v36 }
 0x8b5   : > { %v2457_v38 = vpop.f32.mrf.mxu0 }
 0x8b6   : > { %v2458_v63 = vadd.f32 %v4225_v1, %v2457_v38  ;;  %v3812_v38 = vld [vmem:[%s4672_s13 + $0xb8] sm:$0xf0] }
 0x8b8   : > { %v5462_v21 = vadd.f32 %v4312_v34, %v2458_v63  ;;  %v3815_v63 = vor.u32 %v4037_v16, %v3812_v38  ;;  %v3786_v34 = vld [vmem:[%s4672_s13 + $0x80] sm:$0xf]  ;;  %v4016_v38 = vld [vmem:[%s4672_s13 + $0x4] sm:$0xf] }
 0x8ba   : > { %2473 = vadd.xlane.f32.xlu1 %v5462_v21  ;;  %2828 = vmatpush.bf16.msra.mxu0 %v3815_v63  ;;  %v3724_v63 = vld [vmem:[%s4672_s13 + $0x10] sm:$0xf0] }
 0x8d6   : > { %v2460_v41 = vpop.f32.mrf.mxu0 }
 0x8d7   : > { %v2461_v15 = vadd.f32 %v4225_v1, %v2460_v41  ;;  %v4034_v41 = vld [vmem:[%s4672_s13 + $0x8c] sm:$0xf0] }
 0x8d9   : > { %v5465_v52 = vadd.f32 %v4313_v59, %v2461_v15  ;;  %v4032_v15 = vld [vmem:[%s4672_s13 + $0x84] sm:$0xf]  ;;  %v3787_v59 = vor.u32 %v4034_v41, %v3786_v34  ;;  %v3730_v41 = vld [vmem:[%s4672_s13 + $0x8] sm:$0xf] }
 0x8db   : > { %2475 = vadd.xlane.f32.xlu0 %v5465_v52  ;;  %2772 = vmatpush.bf16.msrb.mxu1 %v3787_v59  ;;  %v4017_v59 = vld [vmem:[%s4672_s13 + $0xc] sm:$0xf] }
 0x8de   : > { %v2462_v43 = vpop.f32.mrf.mxu0 }
 0x8df   : > { %v2463_v33 = vadd.f32 %v4225_v1, %v2462_v43  ;;  %v4039_v1 = vld [vmem:[%s4672_s13 + $0xb4] sm:$0xf0]  ;;  %v3788_v43 = vld [vmem:[%s4672_s13 + $0x90] sm:$0xf0] }
 0x8e0   : > { %v3811_v35 = vor.u32 %v4039_v1, %v3810_v30  ;;  %v3748_v30 = vld [vmem:[%s4672_s13 + $0x38] sm:$0xf0]  ;;  %v3722_v1 = vld [vmem:[%s4672_s13] sm:$0xf] }
 0x8e1   : > { %v5468_v22 = vadd.f32 %v4314_v27, %v2463_v33  ;;  %v3794_v33 = vld [vmem:[%s4672_s13 + $0x88] sm:$0xf]  ;;  %v4035_v27 = vld [vmem:[%s4672_s13 + $0x94] sm:$0xf0]  ;;  %v3751_v16 = vor.u32 %v4021_v14, %v3748_v30  ;;  %v3723_v34 = vor.u32 %v4018_v6, %v3722_v1  ;;  %v4070_v14 = vld [vmem:[%s4718_s24 + $0xb0] sm:$0xff] }
 0x8e2   : > { %2809 = vmatpush.bf16.msrb.mxu3 %v3811_v35  ;;  %v4053_v1 = vld [vmem:[%s4718_s24 + $0x28] sm:$0xff] }
 0x8e3   : > { %2477 = vadd.xlane.f32.xlu2 %v5468_v22  ;;  %v4077_v6 = vld [vmem:[%s4718_s24 + $0xe8] sm:$0xff] }
 0x925   : > { %v2472_v20 = vpop.xlane.xlu2 %2471 }
 0x926   : > { %v2479_v44 = vmul.f32 %v2472_v20, %v4733_v12  ;;  %v3791_v20 = vor.u32 %v4032_v15, %v3788_v43  ;;  %v4019_v15 = vld [vmem:[%s4672_s13 + $0x14] sm:$0xf0]  ;;  %v3727_v43 = vor.u32 %v4016_v38, %v3724_v63 }
 0x928   : > { %v5473_v29 = vsub.f32 %v5459_v36, %v2479_v44  ;;  %v3795_v44 = vor.u32 %v4035_v27, %v3794_v33  ;;  %2791 = vmatpush.bf16.msrb.mxu2 %v3791_v20  ;;  %v3731_v33 = vor.u32 %v4019_v15, %v3730_v41  ;;  %v3732_v27 = vld [vmem:[%s4672_s13 + $0x18] sm:$0xf0]  ;;  %v4076_v41 = vld [vmem:[%s4718_s24 + $0xe0] sm:$0xff] }
 0x929   : > { %v3735_v20 = vor.u32 %v4017_v59, %v3732_v27 }
 0x92a   : > { %v2487_v46 = vmul.f32 %v5473_v29, %v5473_v29  ;;  %2810 = vmatpush.bf16.msrb.mxu3 %v3795_v44 }
 0x92c   : > { %2491 = vadd.xlane.f32.xlu1 %v2487_v46  ;;  %v4033_v46 = vld [vmem:[%s4672_s13 + $0x8c] sm:$0xf] }
 0x92d   : > { %v2474_v3 = vpop.xlane.xlu1 %2473 }
 0x92e   : > { %v2480_v9 = vmul.f32 %v2474_v3, %v4733_v12  ;;  %v3796_v3 = vld [vmem:[%s4672_s13 + $0x98] sm:$0xf0] }
 0x930   : > { %v5479_v28 = vsub.f32 %v5462_v21, %v2480_v9  ;;  %v3799_v9 = vor.u32 %v4033_v46, %v3796_v3 }
 0x932   : > { %v2488_v24 = vmul.f32 %v5479_v28, %v5479_v28  ;;  %2829 = vmatpush.bf16.msra.mxu0 %v3799_v9 }
 0x934   : > { %2493 = vadd.xlane.f32.xlu2 %v2488_v24  ;;  %v3770_v24 = vld [vmem:[%s4672_s13 + $0x60] sm:$0xf] }
 0x936   : > { %2830 = vmatpush.bf16.msra.mxu0 %v3783_v51 }
 0x93a   : > { %2831 = vmatpush.bf16.msra.mxu0 %v3767_v4  ;;  %v4079_v4 = vld [vmem:[%s4718_s24 + $0xf8] sm:$0xff] }
 0x93e   : > { %2832 = vmatpush.bf16.msra.mxu0 %v3751_v16  ;;  %v4069_v16 = vld [vmem:[%s4718_s24 + $0xa8] sm:$0xff] }
 0x942   : > { %2833 = vmatpush.bf16.msra.mxu0 %v3735_v20 }
 0x946   : > { %3186 = vmatpush.bf16.msrb.mxu0 %v4079_v4 }
 0x94e   : > { %v2476_v48 = vpop.xlane.xlu0 %2475 }
 0x94f   : > { %v2481_v23 = vmul.f32 %v2476_v48, %v4733_v12  ;;  %v4030_v48 = vld [vmem:[%s4672_s13 + $0x6c] sm:$0xf0] }
 0x951   : > { %v5485_v2 = vsub.f32 %v5465_v52, %v2481_v23  ;;  %v4028_v23 = vld [vmem:[%s4672_s13 + $0x64] sm:$0xf] }
 0x953   : > { %v2489_v37 = vmul.f32 %v5485_v2, %v5485_v2 }
 0x955   : > { %2495 = vadd.xlane.f32.xlu1 %v2489_v37  ;;  %v3771_v37 = vor.u32 %v4030_v48, %v3770_v24 }
 0x956   : > { %v2478_v39 = vpop.xlane.xlu2 %2477 }
 0x957   : > { %v2482_v25 = vmul.f32 %v2478_v39, %v4733_v12  ;;  %v3772_v39 = vld [vmem:[%s4672_s13 + $0x70] sm:$0xf0]  ;;  %2773 = vmatpush.bf16.msrb.mxu1 %v3771_v37 }
 0x958   : > { %v3775_v10 = vor.u32 %v4028_v23, %v3772_v39 }
 0x959   : > { %v5491_v50 = vsub.f32 %v5468_v22, %v2482_v25  ;;  %v3778_v25 = vld [vmem:[%s4672_s13 + $0x68] sm:$0xf] }
 0x95a   : > { %2792 = vmatpush.bf16.msrb.mxu2 %v3775_v10 }
 0x95b   : > { %v2490_v18 = vmul.f32 %v5491_v50, %v5491_v50  ;;  %2774 = vmatpush.bf16.msrb.mxu1 %v3755_v7 }
 0x95d   : > { %2497 = vadd.xlane.f32.xlu2 %v2490_v18  ;;  %v4031_v18 = vld [vmem:[%s4672_s13 + $0x74] sm:$0xf0] }
 0x95e   : > { %v3779_v55 = vor.u32 %v4031_v18, %v3778_v25  ;;  %2793 = vmatpush.bf16.msrb.mxu2 %v3759_v53 }
 0x95f   : > { %2775 = vmatpush.bf16.msrb.mxu1 %v3739_v17  ;;  %v4078_v17 = vld [vmem:[%s4718_s24 + $0xf0] sm:$0xff] }
 0x960   : > { %2811 = vmatpush.bf16.msrb.mxu3 %v3779_v55  ;;  %3187 = vmatpush.bf16.msrb.mxu0 %v4078_v17 }
 0x962   : > { %2794 = vmatpush.bf16.msrb.mxu2 %v3743_v56 }
 0x963   : > { %2776 = vmatpush.bf16.msrb.mxu1 %v3723_v34  ;;  %v4052_v34 = vld [vmem:[%s4718_s24 + $0x20] sm:$0xff] }
 0x964   : > { %2812 = vmatpush.bf16.msrb.mxu3 %v3763_v0  ;;  %3188 = vmatpush.bf16.msrb.mxu0 %v4077_v6 }
 0x966   : > { %2795 = vmatpush.bf16.msrb.mxu2 %v3727_v43 }
 0x968   : > { %2813 = vmatpush.bf16.msrb.mxu3 %v3747_v13  ;;  %3189 = vmatpush.bf16.msrb.mxu0 %v4076_v41 }
 0x96a   : > { %3148 = vmatpush.bf16.msra.mxu2 %v4063_v42 }
 0x96c   : > { %2814 = vmatpush.bf16.msrb.mxu3 %v3731_v33 }
 0x96e   : > { %3149 = vmatpush.bf16.msra.mxu2 %v4062_v19 }
 0x970   : > { %3167 = vmatpush.bf16.msra.mxu3 %v4071_v49 }
 0x974   : > { %3168 = vmatpush.bf16.msra.mxu3 %v4070_v14 }
 0x978   : > { %3169 = vmatpush.bf16.msra.mxu3 %v4069_v16 }
 0x99f   : > { %v2492_v61 = vpop.xlane.xlu1 %2491 }
 0x9a0   : > { %v2499_v5 = vmul.f32 %v2492_v61, %v4733_v12  ;;  %v4055_v61 = vld [vmem:[%s4718_s24 + $0x38] sm:$0xff] }
 0x9a1   : > { %3129 = vmatpush.bf16.msra.mxu1 %v4055_v61 }
 0x9a2   : > { %v2503_v35 = vadd.f32 1e-05, %v2499_v5  ;;  %v4054_v5 = vld [vmem:[%s4718_s24 + $0x30] sm:$0xff] }
 0x9a4   : > { %4303 = vrsqrt.f32 %v2503_v35  ;;  %vm2513_vm10 = vweird.f32 %v2503_v35 }
 0x9a5   : > { %3130 = vmatpush.bf16.msra.mxu1 %v4054_v5 }
 0x9a7   : > { %v2494_v44 = vpop.xlane.xlu2 %2493 }
 0x9a8   : > { %v2500_v46 = vmul.f32 %v2494_v44, %v4733_v12 }
 0x9a9   : > { %3131 = vmatpush.bf16.msra.mxu1 %v4053_v1 }
 0x9aa   : > { %v4304_v3 = vpop.eup %4303  ;;  %v2504_v9 = vadd.f32 1e-05, %v2500_v46 }
 0x9ab   : > { %v2508_v24 = vmul.f32 %v4304_v3, %v2503_v35  ;;  %vm2514_vm7 = vweird.f32 %v4304_v3  ;;  %v4061_v35 = vld [vmem:[%s4718_s24 + $0x68] sm:$0xff] }
 0x9ac   : > { %4305 = vrsqrt.f32 %v2504_v9  ;;  %vm2515_vm11 = vmor %vm2513_vm10, %vm2514_vm7  ;;  %vm2523_vm13 = vweird.f32 %v2504_v9  ;;  %3150 = vmatpush.bf16.msra.mxu2 %v4061_v35 }
 0x9ad   : > { %v2509_v48 = vmul.f32 %v4304_v3, %v2508_v24  ;;  %3132 = vmatpush.bf16.msra.mxu1 %v4052_v34 }
 0x9af   : > { %v2510_v23 = vmul.f32 0.5, %v2509_v48 }
 0x9b1   : > { %v2511_v37 = vsub.f32 1.5, %v2510_v23 }
 0x9b2   : > { %v4306_v39 = vpop.eup %4305 }
 0x9b3   : > { %v2512_v25 = vmul.f32 %v4304_v3, %v2511_v37  ;;  %v2518_v18 = vmul.f32 %v4306_v39, %v2504_v9  ;;  %vm2524_vm12 = vweird.f32 %v4306_v39 }
 0x9b4   : > { %vm2525_vm14 = vmor %vm2523_vm13, %vm2524_vm12 }
 0x9b5   : > { %v2519_v10 = vmul.f32 %v4306_v39, %v2518_v18  ;;  %v2516_v55 = vsel %vm2515_vm11, %v4304_v3, %v2512_v25  ;;  %v4051_v25 = vld [vmem:[%s4718_s24 + $0x18] sm:$0xff]  ;;  %v4060_v18 = vld [vmem:[%s4718_s24 + $0x60] sm:$0xff] }
 0x9b6   : > { %v2547_v51 = vmul.f32 %v2516_v55, %v5473_v29  ;;  %v5576_v29 = vld [vmem:[%s794_s14] ss:$0 sm:$0xff]  ;;  %3133 = vmatpush.bf16.msra.mxu1 %v4051_v25  ;;  %v4050_v55 = vld [vmem:[%s4718_s24 + $0x10] sm:$0xff]  ;;  %3151 = vmatpush.bf16.msra.mxu2 %v4060_v18 }
 0x9b7   : > { %v2520_v31 = vmul.f32 0.5, %v2519_v10  ;;  %v4068_v10 = vld [vmem:[%s4718_s24 + $0xa0] sm:$0xff] }
 0x9b8   : > { %v2554_v40 = vmul.f32 %v5567_v32, %v2547_v51  ;;  %3170 = vmatpush.bf16.msra.mxu3 %v4068_v10  ;;  %v4067_v51 = vld [vmem:[%s4718_s24 + $0x98] sm:$0xff] }
 0x9b9   : > { %v2521_v54 = vsub.f32 1.5, %v2520_v31  ;;  %v4074_v31 = vld [vmem:[%s4718_s24 + $0xd0] sm:$0xff] }
 0x9ba   : > { %v2561_v62 = vadd.f32 %v5576_v29, %v2554_v40  ;;  %3134 = vmatpush.bf16.msra.mxu1 %v4050_v55  ;;  %v4048_v40 = vld [vmem:[%s4718_s24] sm:$0xff] }
 0x9bb   : > { %v2522_v57 = vmul.f32 %v4306_v39, %v2521_v54  ;;  %v4059_v54 = vld [vmem:[%s4718_s24 + $0x58] sm:$0xff] }
 0x9bc   : > { %3152 = vmatpush.bf16.msra.mxu2 %v4059_v54  ;;  %3171 = vmatpush.bf16.msra.mxu3 %v4067_v51 }
 0x9bd   : > { %v2526_v58 = vsel %vm2525_vm14, %v4306_v39, %v2522_v57  ;;  %v4073_v57 = vld [vmem:[%s4718_s24 + $0xc8] sm:$0xff] }
 0x9be   : > { %v2548_v7 = vmul.f32 %v2526_v58, %v5479_v28  ;;  %v4058_v58 = vld [vmem:[%s4718_s24 + $0x50] sm:$0xff] }
 0x9c0   : > { %v2555_v60 = vmul.f32 %v5567_v32, %v2548_v7  ;;  %v4066_v7 = vld [vmem:[%s4718_s24 + $0x90] sm:$0xff]  ;;  %3153 = vmatpush.bf16.msra.mxu2 %v4058_v58 }
 0x9c1   : > { %3172 = vmatpush.bf16.msra.mxu3 %v4066_v7 }
 0x9c2   : > { %v2562_v53 = vadd.f32 %v5576_v29, %v2555_v60  ;;  %v4057_v60 = vld [vmem:[%s4718_s24 + $0x48] sm:$0xff] }
 0x9c4   : > { %v2565_v0 = vpack.c.bf16 %v2562_v53, %v2561_v62  ;;  %v4065_v62 = vld [vmem:[%s4718_s24 + $0x88] sm:$0xff]  ;;  %3154 = vmatpush.bf16.msra.mxu2 %v4057_v60  ;;  %v4056_v53 = vld [vmem:[%s4718_s24 + $0x40] sm:$0xff] }
 0x9c5   : > { %3173 = vmatpush.bf16.msra.mxu3 %v4065_v62 }
 0x9c6   : > { %2777 = vmatmul.bf16.vlgmr.msrb.gmra.mxu1 %v2565_v0  ;;  %2796 = vmatmul.bf16.vlgmr.msrb.gmra.mxu2 %v2565_v0 }
 0x9c7   : > { %2815 = vmatmul.bf16.vlgmr.msrb.gmra.mxu3 %v2565_v0  ;;  %2834 = vmatmul.bf16.vlgmr.msra.gmra.mxu0 %v2565_v0  ;;  %v4064_v0 = vld [vmem:[%s4718_s24 + $0x80] sm:$0xff] }
 0x9c8   : > { %v2496_v28 = vpop.xlane.xlu1 %2495  ;;  %3155 = vmatpush.bf16.msra.mxu2 %v4056_v53 }
 0x9c9   : > { %v2501_v45 = vmul.f32 %v2496_v28, %v4733_v12  ;;  %3174 = vmatpush.bf16.msra.mxu3 %v4064_v0  ;;  %v2599_v28 = vld [vmem:[%s4712_s28] sm:$0xf] }
 0x9ca   : > { %v2604_v61 = vperm.slane %v2599_v28, 3  ;;  %v2602_v17 = vperm.slane %v2599_v28, 1  ;;  %v2603_v19 = vperm.slane %v2599_v28, 2 }
 0x9cb   : > { %v2505_v47 = vadd.f32 1e-05, %v2501_v45 }
 0x9cd   : > { %4307 = vrsqrt.f32 %v2505_v47  ;;  %vm2533_vm0 = vweird.f32 %v2505_v47 }
 0x9d0   : > { %v2498_v8 = vpop.xlane.xlu2 %2497 }
 0x9d1   : > { %v2502_v11 = vmul.f32 %v2498_v8, %v4733_v12  ;;  %v2601_v8 = vperm.slane %v2599_v28, 0 }
 0x9d3   : > { %v4308_v56 = vpop.eup %4307  ;;  %v2506_v26 = vadd.f32 1e-05, %v2502_v11 }
 0x9d4   : > { %v2528_v13 = vmul.f32 %v4308_v56, %v2505_v47  ;;  %vm2534_vm15 = vweird.f32 %v4308_v56 }
 0x9d5   : > { %4309 = vrsqrt.f32 %v2506_v26  ;;  %vm2535_vm1 = vmor %vm2533_vm0, %vm2534_vm15  ;;  %vm2543_vm3 = vweird.f32 %v2506_v26 }
 0x9d6   : > { %v2529_v30 = vmul.f32 %v4308_v56, %v2528_v13 }
 0x9d8   : > { %v2530_v38 = vmul.f32 0.5, %v2529_v30 }
 0x9da   : > { %v2531_v63 = vsub.f32 1.5, %v2530_v38 }
 0x9db   : > { %v4310_v15 = vpop.eup %4309 }
 0x9dc   : > { %v2532_v59 = vmul.f32 %v4308_v56, %v2531_v63  ;;  %v2538_v43 = vmul.f32 %v4310_v15, %v2506_v26  ;;  %vm2544_vm2 = vweird.f32 %v4310_v15 }
 0x9dd   : > { %vm2545_vm4 = vmor %vm2543_vm3, %vm2544_vm2 }
 0x9de   : > { %v2539_v33 = vmul.f32 %v4310_v15, %v2538_v43  ;;  %v2536_v27 = vsel %vm2535_vm1, %v4308_v56, %v2532_v59 }
 0x9df   : > { %v2549_v46 = vmul.f32 %v2536_v27, %v5485_v2 }
 0x9e0   : > { %v2540_v20 = vmul.f32 0.5, %v2539_v33 }
 0x9e1   : > { %v2556_v48 = vmul.f32 %v5567_v32, %v2549_v46 }
 0x9e2   : > { %v2541_v44 = vsub.f32 1.5, %v2540_v20 }
 0x9e3   : > { %v2563_v37 = vadd.f32 %v5576_v29, %v2556_v48 }
 0x9e4   : > { %v2542_v3 = vmul.f32 %v4310_v15, %v2541_v44 }
 0x9e6   : > { %v2546_v9 = vsel %vm2545_vm4, %v4310_v15, %v2542_v3 }
 0x9e7   : > { %v2550_v24 = vmul.f32 %v2546_v9, %v5491_v50  ;;  %v4075_v50 = vld [vmem:[%s4718_s24 + $0xd8] sm:$0xff] }
 0x9e8   : > { %3190 = vmatpush.bf16.msrb.mxu0 %v4075_v50 }
 0x9e9   : > { %v2557_v23 = vmul.f32 %v5567_v32, %v2550_v24  ;;  %v4049_v32 = vld [vmem:[%s4718_s24 + $0x8] sm:$0xff] }
 0x9ea   : > { %3135 = vmatpush.bf16.msra.mxu1 %v4049_v32 }
 0x9eb   : > { %v2564_v39 = vadd.f32 %v5576_v29, %v2557_v23  ;;  %v4072_v29 = vld [vmem:[%s4718_s24 + $0xc0] sm:$0xff] }
 0x9ec   : > { %3191 = vmatpush.bf16.msrb.mxu0 %v4074_v31 }
 0x9ed   : > { %v2566_v2 = vpack.c.bf16 %v2564_v39, %v2563_v37 }
 0x9ee   : > { %3136 = vmatpush.bf16.msra.mxu1 %v4048_v40 }
 0x9ef   : > { %2782 = vmatmul.bf16.gmra.mxu1 %v2566_v2  ;;  %2801 = vmatmul.bf16.gmra.mxu2 %v2566_v2 }
 0x9f0   : > { %2820 = vmatmul.bf16.gmra.mxu3 %v2566_v2  ;;  %2839 = vmatmul.bf16.gmra.mxu0 %v2566_v2 }
 0x9f1   : > { %3192 = vmatpush.bf16.msrb.mxu0 %v4073_v57 }
 0x9f5   : > { %3193 = vmatpush.bf16.msrb.mxu0 %v4072_v29 }
 0xa43   : > { %v2778_v45 = vpop.f32.mrf.mxu1 }
 0xa44   : > { %v2835_v47 = vpop.f32.mrf.mxu0  ;;  %v2779_v11 = vadd.f32 %v2778_v45, %v2601_v8 }
 0xa45   : > { %v2836_v49 = vadd.f32 %v2835_v47, %v2604_v61 }
 0xa46   : > { %v2845_v13 = vmax.f32 %v2779_v11, 0.0 }
 0xa47   : > { %v2848_v1 = vmax.f32 %v2836_v49, 0.0 }
 0xa49   : > { %v2797_v4 = vpop.f32.mrf.mxu2 }
 0xa4a   : > { %v2816_v42 = vpop.f32.mrf.mxu3  ;;  %v2798_v35 = vadd.f32 %v2797_v4, %v2602_v17 }
 0xa4b   : > { %v2780_v5 = vpop.f32.mrf.mxu1  ;;  %v2817_v38 = vadd.f32 %v2816_v42, %v2603_v19 }
 0xa4c   : > { %v2781_v56 = vadd.f32 %v2780_v5, %v2601_v8  ;;  %v2837_v26 = vpop.f32.mrf.mxu0  ;;  %v2846_v43 = vmax.f32 %v2798_v35, 0.0 }
 0xa4d   : > { %v2838_v14 = vadd.f32 %v2837_v26, %v2604_v61  ;;  %v2847_v27 = vmax.f32 %v2817_v38, 0.0 }
 0xa4e   : > { %v2849_v30 = vmax.f32 %v2781_v56, 0.0 }
 0xa4f   : > { %v2852_v6 = vmax.f32 %v2838_v14, 0.0 }
 0xa50   : > { %v2861_v16 = vpack.c.bf16 %v2849_v30, %v2845_v13 }
 0xa51   : > { %v2864_v63 = vpack.c.bf16 %v2852_v6, %v2848_v1  ;;  %v2799_v34 = vpop.f32.mrf.mxu2 }
 0xa52   : > { %v2800_v41 = vadd.f32 %v2799_v34, %v2602_v17  ;;  %v2818_v15 = vpop.f32.mrf.mxu3  ;;  %3137 = vmatmul.bf16.vlgmr.msra.gmra.mxu1 %v2861_v16 }
 0xa53   : > { %v2819_v59 = vadd.f32 %v2818_v15, %v2603_v19  ;;  %3194 = vmatmul.bf16.vlgmr.msrb.gmra.mxu0 %v2864_v63 }
 0xa54   : > { %v2850_v33 = vmax.f32 %v2800_v41, 0.0 }
 0xa55   : > { %v2851_v20 = vmax.f32 %v2819_v59, 0.0 }
 0xa56   : > { %v2862_v44 = vpack.c.bf16 %v2850_v33, %v2846_v43 }
 0xa57   : > { %v2863_v46 = vpack.c.bf16 %v2851_v20, %v2847_v27 }
 0xa58   : > { %3156 = vmatmul.bf16.vlgmr.msra.gmra.mxu2 %v2862_v44 }
 0xa59   : > { %3175 = vmatmul.bf16.vlgmr.msra.gmra.mxu3 %v2863_v46 }
 0xa6c   : > { %v2783_v3 = vpop.f32.mrf.mxu1 }
 0xa6d   : > { %v2840_v9 = vpop.f32.mrf.mxu0  ;;  %v2784_v48 = vadd.f32 %v2783_v3, %v2601_v8 }
 0xa6e   : > { %v2841_v37 = vadd.f32 %v2840_v9, %v2604_v61 }
 0xa6f   : > { %v2853_v18 = vmax.f32 %v2784_v48, 0.0 }
 0xa70   : > { %v2856_v55 = vmax.f32 %v2841_v37, 0.0 }
 0xa72   : > { %v2802_v24 = vpop.f32.mrf.mxu2 }
 0xa73   : > { %v2821_v23 = vpop.f32.mrf.mxu3  ;;  %v2803_v54 = vadd.f32 %v2802_v24, %v2602_v17 }
 0xa74   : > { %v2785_v39 = vpop.f32.mrf.mxu1  ;;  %v2822_v32 = vadd.f32 %v2821_v23, %v2603_v19 }
 0xa75   : > { %v2786_v2 = vadd.f32 %v2785_v39, %v2601_v8  ;;  %v2842_v25 = vpop.f32.mrf.mxu0  ;;  %v2854_v60 = vmax.f32 %v2803_v54, 0.0  ;;  %v4228_v8 = vld [vmem:[%s801_s15] ss:$0 sm:$0xff]  ;;  %s5752_s15 = sld [smem:[#allocation23_spill]] (!%p3976_p1) }
 0xa76   : > { %v2843_v50 = vadd.f32 %v2842_v25, %v2604_v61  ;;  %v2855_v53 = vmax.f32 %v2822_v32, 0.0 }
 0xa77   : > { %v2857_v10 = vmax.f32 %v2786_v2, 0.0 }
 0xa78   : > { %v2860_v31 = vmax.f32 %v2843_v50, 0.0 }
 0xa79   : > { %v2865_v51 = vpack.c.bf16 %v2857_v10, %v2853_v18 }
 0xa7a   : > { %v2804_v57 = vpop.f32.mrf.mxu2  ;;  %v2868_v58 = vpack.c.bf16 %v2860_v31, %v2856_v55 }
 0xa7b   : > { %v2805_v7 = vadd.f32 %v2804_v57, %v2602_v17  ;;  %v2823_v40 = vpop.f32.mrf.mxu3  ;;  %3142 = vmatmul.bf16.gmra.mxu1 %v2865_v51 }
 0xa7c   : > { %v2824_v29 = vadd.f32 %v2823_v40, %v2603_v19  ;;  %3199 = vmatmul.bf16.gmra.mxu0 %v2868_v58 }
 0xa7d   : > { %v2858_v62 = vmax.f32 %v2805_v7, 0.0 }
 0xa7e   : > { %v2859_v0 = vmax.f32 %v2824_v29, 0.0 }
 0xa7f   : > { %v2866_v28 = vpack.c.bf16 %v2858_v62, %v2854_v60 }
 0xa80   : > { %v2867_v45 = vpack.c.bf16 %v2859_v0, %v2855_v53 }
 0xa81   : > { %3161 = vmatmul.bf16.gmra.mxu2 %v2866_v28 }
 0xa82   : > { %3180 = vmatmul.bf16.gmra.mxu3 %v2867_v45 }
 0xacf   : > { %v3138_v47 = vpop.f32.mrf.mxu1 }
 0xad0   : > { %v3139_v61 = vadd.f32 %v4228_v8, %v3138_v47  ;;  %v3195_v49 = vpop.f32.mrf.mxu0 }
 0xad7   : > { %v3140_v17 = vpop.f32.mrf.mxu1 }
 0xad8   : > { %v3141_v26 = vadd.f32 %v4228_v8, %v3140_v17  ;;  %v3197_v6 = vpop.f32.mrf.mxu0 }
 0xadb   : > { %v3157_v4 = vpop.f32.mrf.mxu2 }
 0xadc   : > { %v3158_v11 = vadd.f32 %v3157_v4, %v3139_v61  ;;  %v3176_v42 = vpop.f32.mrf.mxu3 }
 0xade   : > { %v3177_v5 = vadd.f32 %v3176_v42, %v3158_v11 }
 0xae0   : > { %v3196_v56 = vadd.f32 %v3195_v49, %v3177_v5 }
 0xae2   : > { %v3205_v19 = vadd.f32 %v3196_v56, %v5459_v36 }
 0xae3   : > { %v3159_v14 = vpop.f32.mrf.mxu2 }
 0xae4   : > { %3209 = vst [vmem:[#allocation2 + $0x10] sm:$0xff] %v3205_v19  ;;  %v3160_v13 = vadd.f32 %v3159_v14, %v3141_v26  ;;  %v3178_v30 = vpop.f32.mrf.mxu3 }
 0xae6   : > { %v3179_v1 = vadd.f32 %v3178_v30, %v3160_v13 }
 0xae8   : > { %v3198_v35 = vadd.f32 %v3197_v6, %v3179_v1 }
 0xaea   : > { %v3206_v16 = vadd.f32 %v3198_v35, %v5462_v21 }
 0xaec   : > { %3210 = vst [vmem:[#allocation2] sm:$0xff] %v3206_v16 }
 0xaf8   : > { %v3143_v38 = vpop.f32.mrf.mxu1 }
 0xaf9   : > { %v3144_v63 = vadd.f32 %v4228_v8, %v3143_v38  ;;  %v3200_v59 = vpop.f32.mrf.mxu0 }
 0xb00   : > { %v3145_v33 = vpop.f32.mrf.mxu1 }
 0xb01   : > { %v3146_v36 = vadd.f32 %v4228_v8, %v3145_v33  ;;  %v3202_v24 = vpop.f32.mrf.mxu0 }
 0xb04   : > { %v3162_v34 = vpop.f32.mrf.mxu2 }
 0xb05   : > { %v3163_v41 = vadd.f32 %v3162_v34, %v3144_v63  ;;  %v3181_v15 = vpop.f32.mrf.mxu3 }
 0xb07   : > { %v3182_v43 = vadd.f32 %v3181_v15, %v3163_v41 }
 0xb09   : > { %v3201_v27 = vadd.f32 %v3200_v59, %v3182_v43 }
 0xb0b   : > { %v3207_v20 = vadd.f32 %v3201_v27, %v5465_v52 }
 0xb0c   : > { %v3164_v44 = vpop.f32.mrf.mxu2 }
 0xb0d   : > { %3211 = vst [vmem:[#allocation2 + $0x18] sm:$0xff] %v3207_v20  ;;  %v3165_v46 = vadd.f32 %v3164_v44, %v3146_v36  ;;  %v3183_v3 = vpop.f32.mrf.mxu3 }
 0xb0f   : > { %v3184_v9 = vadd.f32 %v3183_v3, %v3165_v46 }
 0xb11   : > { %v3203_v21 = vadd.f32 %v3202_v24, %v3184_v9  ;;  %3216 = sbr.rel (%p3976_p1) target bundleno = 3114 (0xc2a), region = 108 }
 0xb13   : > { %v3208_v48 = vadd.f32 %v3203_v21, %v5468_v22 }
 0xb15   : > { %3212 = vst [vmem:[#allocation2 + $0x8] sm:$0xff] %v3208_v48 }
 0xb16   : > { %3223 = vadd.xlane.f32.xlu1 %v3207_v20  ;;  %3219 = vadd.xlane.f32.xlu0 %v3205_v19  ;;  %v4315_v1 = vld [vmem:[%s5752_s15] ss:$0 sm:$0xff] }
 0xb17   : > { %v4316_v34 = vld [vmem:[%s5753_s11] ss:$0 sm:$0xff] }
 0xb1e   : > { %3225 = vadd.xlane.f32.xlu1 %v3208_v48  ;;  %3221 = vadd.xlane.f32.xlu0 %v3206_v16 }
 0xb89   : > { %v3224_v23 = vpop.xlane.xlu1 %3223  ;;  %v3220_v37 = vpop.xlane.xlu0 %3219 }
 0xb8a   : > { %v3229_v52 = vmul.f32 %v3224_v23, %v4733_v12  ;;  %v3227_v39 = vmul.f32 %v3220_v37, %v4733_v12 }
 0xb8c   : > { %v3233_v2 = vsub.f32 %v3207_v20, %v3229_v52  ;;  %v3231_v25 = vsub.f32 %v3205_v19, %v3227_v39 }
 0xb8e   : > { %v3237_v50 = vmul.f32 %v3233_v2, %v3233_v2  ;;  %v3235_v18 = vmul.f32 %v3231_v25, %v3231_v25 }
 0xb90   : > { %3243 = vadd.xlane.f32.xlu0 %v3237_v50  ;;  %3239 = vadd.xlane.f32.xlu2 %v3235_v18 }
 0xb91   : > { %v3226_v22 = vpop.xlane.xlu1 %3225  ;;  %v3222_v10 = vpop.xlane.xlu0 %3221 }
 0xb92   : > { %v3230_v55 = vmul.f32 %v3226_v22, %v4733_v12  ;;  %v3228_v31 = vmul.f32 %v3222_v10, %v4733_v12 }
 0xb94   : > { %v5636_v54 = vsub.f32 %v3208_v48, %v3230_v55  ;;  %v5638_v51 = vsub.f32 %v3206_v16, %v3228_v31 }
 0xb96   : > { %v3238_v32 = vmul.f32 %v5636_v54, %v5636_v54  ;;  %v3236_v57 = vmul.f32 %v5638_v51, %v5638_v51 }
 0xb98   : > { %3245 = vadd.xlane.f32.xlu1 %v3238_v32  ;;  %3241 = vadd.xlane.f32.xlu2 %v3236_v57 }
 0xc03   : > { %v3240_v58 = vpop.xlane.xlu2 %3239  ;;  %v3244_v7 = vpop.xlane.xlu0 %3243 }
 0xc04   : > { %v3247_v40 = vmul.f32 %v3240_v58, %v4733_v12  ;;  %v3249_v29 = vmul.f32 %v3244_v7, %v4733_v12 }
 0xc06   : > { %v3251_v60 = vadd.f32 1e-05, %v3247_v40  ;;  %v3253_v62 = vadd.f32 1e-05, %v3249_v29 }
 0xc08   : > { %4317 = vrsqrt.f32 %v3251_v60  ;;  %vm3261_vm8 = vweird.f32 %v3251_v60  ;;  %vm3281_vm7 = vweird.f32 %v3253_v62 }
 0xc09   : > { %4319 = vrsqrt.f32 %v3253_v62 }
 0xc0b   : > { %v3246_v53 = vpop.xlane.xlu1 %3245  ;;  %v3242_v0 = vpop.xlane.xlu2 %3241 }
 0xc0c   : > { %v3250_v28 = vmul.f32 %v3246_v53, %v4733_v12  ;;  %v3248_v45 = vmul.f32 %v3242_v0, %v4733_v12 }
 0xc0e   : > { %v4318_v47 = vpop.eup %4317  ;;  %v3254_v8 = vadd.f32 1e-05, %v3250_v28  ;;  %v3252_v61 = vadd.f32 1e-05, %v3248_v45 }
 0xc0f   : > { %v4320_v4 = vpop.eup %4319  ;;  %v3256_v11 = vmul.f32 %v4318_v47, %v3251_v60  ;;  %vm3262_vm5 = vweird.f32 %v4318_v47 }
 0xc10   : > { %v3276_v42 = vmul.f32 %v4320_v4, %v3253_v62  ;;  %4321 = vrsqrt.f32 %v3254_v8  ;;  %vm3282_vm6 = vweird.f32 %v4320_v4  ;;  %vm3263_vm9 = vmor %vm3261_vm8, %vm3262_vm5  ;;  %vm3291_vm13 = vweird.f32 %v3254_v8 }
 0xc11   : > { %v3257_v49 = vmul.f32 %v4318_v47, %v3256_v11  ;;  %4323 = vrsqrt.f32 %v3252_v61  ;;  %vm3283_vm10 = vmor %vm3281_vm7, %vm3282_vm6  ;;  %vm3271_vm15 = vweird.f32 %v3252_v61 }
 0xc12   : > { %v3277_v5 = vmul.f32 %v4320_v4, %v3276_v42 }
 0xc13   : > { %v3258_v17 = vmul.f32 0.5, %v3257_v49 }
 0xc14   : > { %v3278_v56 = vmul.f32 0.5, %v3277_v5 }
 0xc15   : > { %v3259_v26 = vsub.f32 1.5, %v3258_v17 }
 0xc16   : > { %v4322_v19 = vpop.eup %4321  ;;  %v3279_v14 = vsub.f32 1.5, %v3278_v56 }
 0xc17   : > { %v4324_v13 = vpop.eup %4323  ;;  %v3260_v30 = vmul.f32 %v4318_v47, %v3259_v26  ;;  %v3286_v12 = vmul.f32 %v4322_v19, %v3254_v8  ;;  %vm3292_vm11 = vweird.f32 %v4322_v19 }
 0xc18   : > { %v3280_v6 = vmul.f32 %v4320_v4, %v3279_v14  ;;  %v3266_v35 = vmul.f32 %v4324_v13, %v3252_v61  ;;  %vm3272_vm12 = vweird.f32 %v4324_v13  ;;  %vm3293_vm14 = vmor %vm3291_vm13, %vm3292_vm11 }
 0xc19   : > { %v3264_v16 = vsel %vm3263_vm9, %v4318_v47, %v3260_v30  ;;  %v3287_v38 = vmul.f32 %v4322_v19, %v3286_v12  ;;  %vm3273_vm0 = vmor %vm3271_vm15, %vm3272_vm12 }
 0xc1a   : > { %v3295_v63 = vmul.f32 %v3264_v16, %v3231_v25  ;;  %v3284_v41 = vsel %vm3283_vm10, %v4320_v4, %v3280_v6  ;;  %v3267_v15 = vmul.f32 %v4324_v13, %v3266_v35 }
 0xc1b   : > { %v3297_v59 = vmul.f32 %v3284_v41, %v3233_v2  ;;  %v3288_v43 = vmul.f32 0.5, %v3287_v38 }
 0xc1c   : > { %v3302_v33 = vmul.f32 %v4315_v1, %v3295_v63  ;;  %v3268_v27 = vmul.f32 0.5, %v3267_v15 }
 0xc1d   : > { %v3304_v36 = vmul.f32 %v4315_v1, %v3297_v59  ;;  %v3289_v20 = vsub.f32 1.5, %v3288_v43 }
 0xc1e   : > { %v3309_v44 = vadd.f32 %v4316_v34, %v3302_v33  ;;  %v3269_v46 = vsub.f32 1.5, %v3268_v27 }
 0xc1f   : > { %v3311_v3 = vadd.f32 %v4316_v34, %v3304_v36  ;;  %v3290_v9 = vmul.f32 %v4322_v19, %v3289_v20 }
 0xc20   : > { %3313 = vst [vmem:[%s5754_s0] sm:$0xff] %v3309_v44  ;;  %v3270_v24 = vmul.f32 %v4324_v13, %v3269_v46 }
 0xc21   : > { %3315 = vst [vmem:[%s5754_s0 + $0x10] sm:$0xff] %v3311_v3  ;;  %v3294_v21 = vsel %vm3293_vm14, %v4322_v19, %v3290_v9 }
 0xc22   : > { %v3298_v48 = vmul.f32 %v3294_v21, %v5636_v54  ;;  %v3274_v23 = vsel %vm3273_vm0, %v4324_v13, %v3270_v24 }
 0xc23   : > { %v3296_v37 = vmul.f32 %v3274_v23, %v5638_v51 }
 0xc24   : > { %v3305_v52 = vmul.f32 %v4315_v1, %v3298_v48 }
 0xc25   : > { %v3303_v39 = vmul.f32 %v4315_v1, %v3296_v37 }
 0xc26   : > { %v3312_v2 = vadd.f32 %v4316_v34, %v3305_v52 }
 0xc27   : > { %v3310_v25 = vadd.f32 %v4316_v34, %v3303_v39 }
 0xc28   : > { %3316 = vst [vmem:[%s5754_s0 + $0x18] sm:$0xff] %v3312_v2 }
 0xc29   : > { %3314 = vst [vmem:[%s5754_s0 + $0x8] sm:$0xff] %v3310_v25 }
 0xc2a PF: > { %s33_s29 = sadd.s32 1, %s4469_s29   ;;  %s5755_s6 = sld [smem:[#allocation10_spill]] }
 0xc2b   : > { %p30_p2 = scmp.ge.s32.totalorder %s33_s29, 4   ;;  %s5756_s26 = sld [smem:[#allocation13_spill]] }
 0xc2c   : > { %s5757_s27 = sld [smem:[#allocation11_spill]]  ;;  %s5759_s24 = smov %s4453_s25 }
 0xc2d   : > { %s5758_s28 = sld [smem:[#allocation12_spill]]  ;;  %32 = sbr.rel (!%p30_p2) target bundleno = 19 (0x13), region = 187 }
 0xc30   : > { %s5760_s25 = smov %s5755_s6 }
 0xc32   :  { %3339 = vsyncpa [#allocation4], 1 }
 0xc33   :  { %3341 = vsyncpa [#allocation4 + $0x1], 1 }
 0xc34   :  { %3342 = vsyncpa [#allocation6], 1 }
 0xc35   :  { %3344 = vsyncpa [#allocation6 + $0x1], 1 }

</bundles_post_ra>
